<compile_context>
chip_gen: v7x
topology: tpu7x:2x2x1
jax: 0.10.0
libtpu: 0.0.40
codegen_flags: <defaults>
</compile_context>

<pallas_src>
import numpy as np
import jax
import jax.numpy as jnp
from jax.experimental import pallas as pl
from jax.experimental.pallas import tpu as pltpu

WINDOW_SIZE = 11
_SIGMA = 1.5
C1 = 0.01 ** 2
C2 = 0.03 ** 2


def _gaussian_1d(window_size=WINDOW_SIZE, sigma=_SIGMA):
    x = np.arange(window_size, dtype=np.float64)
    g = np.exp(-((x - window_size // 2) ** 2) / (2.0 * sigma ** 2))
    return g / g.sum()


def _band_matrix(n, window_size=WINDOW_SIZE, sigma=_SIGMA):
    """Banded (n, n) matrix G with G[i, r] = g[r - i + pad] for |r - i| <= pad.

    G @ X is the vertical Gaussian pass, X @ G the horizontal one (G is
    symmetric since g is); the truncated bands at the borders reproduce
    F.conv2d's zero padding exactly, so no explicit padding is needed.
    """
    g = _gaussian_1d(window_size, sigma)
    pad = window_size // 2
    m = np.zeros((n, n), dtype=np.float64)
    for i in range(n):
        for r in range(max(0, i - pad), min(n, i + pad + 1)):
            m[i, r] = g[r - i + pad]
    return m.astype(np.float32)


def _ssim_kernel(x1_ref, x2_ref, gv_ref, gh_ref, out_ref):
    """One grid step: NB (batch*channel) image slices.

    x1_ref, x2_ref : (NB, H, W) f32
    gv_ref         : (H, H) f32 banded Gaussian (vertical pass)
    gh_ref         : (W, W) f32 banded Gaussian (horizontal pass)
    out_ref        : (NB, 1, 128) f32 -- per-slice SSIM-map sum, broadcast
                     across lanes so stores stay lane-dense.
    """
    gv = gv_ref[...]          # hoisted: loaded once per grid step
    gh = gh_ref[...]
    nb = x1_ref.shape[0]

    def blur(f):
        # Separable Gaussian (zero padding folded into the bands) on the MXU.
        fh = jnp.dot(f, gh, preferred_element_type=jnp.float32,
                     precision=jax.lax.Precision.HIGHEST)
        return jnp.dot(gv, fh, preferred_element_type=jnp.float32,
                       precision=jax.lax.Precision.HIGHEST)

    for n in range(nb):       # static unroll; NB kept small by the wrapper
        x1 = x1_ref[n]        # (H, W)
        x2 = x2_ref[n]

        mu1 = blur(x1)
        mu2 = blur(x2)
        s11 = blur(x1 * x1)
        s22 = blur(x2 * x2)
        s12 = blur(x1 * x2)

        mu1_sq = mu1 * mu1
        mu2_sq = mu2 * mu2
        mu12 = mu1 * mu2
        sigma1_sq = s11 - mu1_sq
        sigma2_sq = s22 - mu2_sq
        sigma12 = s12 - mu12

        num = (2.0 * mu12 + C1) * (2.0 * sigma12 + C2)
        den = (mu1_sq + mu2_sq + C1) * (sigma1_sq + sigma2_sq + C2)
        ssim = num / den

        slice_sum = jnp.sum(ssim)
        out_ref[n] = jnp.full((1, 128), slice_sum, dtype=jnp.float32)


def _slices_per_step(n_slices, h, w):
    """How many (b, c) slices one grid step processes."""
    slice_bytes = h * w * 4
    # 2 inputs x 2 pipeline buffers per slice + ~12 live f32 intermediates
    # for the slice being processed + double-buffered band matrices.
    fixed = 8 * (h * h + w * w) + 12 * slice_bytes
    budget = 32 * 1024 * 1024
    cap = 1 if budget <= fixed else max(1, (budget - fixed) // (16 * slice_bytes))
    cap = int(min(cap, 8))    # bound the static unroll
    best = 1
    for d in range(1, n_slices + 1):
        if n_slices % d != 0 or d > cap:
            continue
        if n_slices >= 2 and n_slices // d < 2:
            continue          # keep >= 2 grid steps so both v7x TCs get work
        best = d
    return best


def ssim_loss(img1, img2, weight=1.0, size_average=True,
              window_size=WINDOW_SIZE):
    """Equivalent of SSIM(window_size=11, size_average, weight).forward."""
    img1 = img1.astype(jnp.float32)
    img2 = img2.astype(jnp.float32)
    b, c, h, w = img1.shape
    n = b * c
    x1 = img1.reshape(n, h, w)
    x2 = img2.reshape(n, h, w)

    gv = jnp.asarray(_band_matrix(h, window_size))
    gh = jnp.asarray(_band_matrix(w, window_size))

    nb = _slices_per_step(n, h, w)
    grid = (n // nb,)

    matmul_flops = 10 * n * h * w * (h + w)   # 5 fields x 2 matmuls per slice
    ew_flops = 25 * n * h * w
    bytes_accessed = (4 * (2 * n * h * w + n * 128)
                      + 4 * (n // nb) * (h * h + w * w))

    sums = pl.pallas_call(
        _ssim_kernel,
        out_shape=jax.ShapeDtypeStruct((n, 1, 128), jnp.float32),
        grid=grid,
        in_specs=[
            pl.BlockSpec((nb, h, w), lambda i: (i, 0, 0)),
            pl.BlockSpec((nb, h, w), lambda i: (i, 0, 0)),
            pl.BlockSpec((h, h), lambda i: (0, 0)),
            pl.BlockSpec((w, w), lambda i: (0, 0)),
        ],
        out_specs=pl.BlockSpec((nb, 1, 128), lambda i: (i, 0, 0)),
        compiler_params=pltpu.CompilerParams(
            dimension_semantics=("parallel",),
            vmem_limit_bytes=48 * 1024 * 1024),
        cost_estimate=pl.CostEstimate(
            flops=int(matmul_flops + ew_flops),
            transcendentals=0,
            bytes_accessed=int(bytes_accessed)),
    )(x1, x2, gv, gh)

    per_slice_mean = sums[:, 0, 0] / float(h * w)     # mean SSIM per (b, c)
    if size_average:
        ssim_val = jnp.mean(per_slice_mean)
    else:
        ssim_val = jnp.mean(per_slice_mean.reshape(b, c), axis=1)
    return (1.0 - ssim_val) * weight


if __name__ == "__main__":
    key = jax.random.PRNGKey(0)
    k1, k2 = jax.random.split(key)
    # small NCHW inputs consistent with the module's forward
    img1 = jax.random.uniform(k1, (2, 4, 16, 16), dtype=jnp.float32)
    img2 = jax.random.uniform(k2, (2, 4, 16, 16), dtype=jnp.float32)

    loss = ssim_loss(img1, img2, weight=1.0, size_average=True)
    loss_per_batch = ssim_loss(img1, img2, weight=1.0, size_average=False)
    jax.block_until_ready((loss, loss_per_batch))
    print("KERNEL_OK")
</pallas_src>

<mosaic_0001>
module attributes {stable_mosaic.version = 11 : i64} {
  func.func @_ssim_kernel(%arg0: i32, %arg1: memref<4x16x16xf32, #tpu.memory_space<vmem>>, %arg2: memref<4x16x16xf32, #tpu.memory_space<vmem>>, %arg3: memref<16x16xf32, #tpu.memory_space<vmem>>, %arg4: memref<16x16xf32, #tpu.memory_space<vmem>>, %arg5: memref<4x1x128xf32, #tpu.memory_space<vmem>>) attributes {dimension_semantics = [#tpu.dimension_semantics<parallel>], iteration_bounds = array<i64: 2>, scalar_prefetch = 0 : i64, scratch_operands = 0 : i64, tpu.core_type = #tpu.core_type<tc>, window_params = [{transform_indices = @transform_0, window_bounds = array<i64: 4, 16, 16>}, {transform_indices = @transform_1, window_bounds = array<i64: 4, 16, 16>}, {pipeline_mode = #tpu.pipeline_mode<synchronous>, transform_indices = @transform_2, window_bounds = array<i64: 16, 16>}, {pipeline_mode = #tpu.pipeline_mode<synchronous>, transform_indices = @transform_3, window_bounds = array<i64: 16, 16>}, {transform_indices = @transform_4, window_bounds = array<i64: 4, 1, 128>}]} {
    %c0 = arith.constant 0 : index
    %c0_0 = arith.constant 0 : index
    %0 = vector.load %arg3[%c0, %c0_0] : memref<16x16xf32, #tpu.memory_space<vmem>>, vector<16x16xf32>
    %c0_1 = arith.constant 0 : index
    %c0_2 = arith.constant 0 : index
    %1 = vector.load %arg4[%c0_1, %c0_2] : memref<16x16xf32, #tpu.memory_space<vmem>>, vector<16x16xf32>
    %c0_3 = arith.constant 0 : index
    %c0_4 = arith.constant 0 : index
    %c0_5 = arith.constant 0 : index
    %2 = vector.load %arg1[%c0_3, %c0_4, %c0_5] : memref<4x16x16xf32, #tpu.memory_space<vmem>>, vector<1x16x16xf32>
    %3 = vector.shape_cast %2 : vector<1x16x16xf32> to vector<16x16xf32>
    %c0_6 = arith.constant 0 : index
    %c0_7 = arith.constant 0 : index
    %c0_8 = arith.constant 0 : index
    %4 = vector.load %arg2[%c0_6, %c0_7, %c0_8] : memref<4x16x16xf32, #tpu.memory_space<vmem>>, vector<1x16x16xf32>
    %5 = vector.shape_cast %4 : vector<1x16x16xf32> to vector<16x16xf32>
    %cst = arith.constant dense<0.000000e+00> : vector<16x16xf32>
    %6 = tpu.matmul %3, %1, %cst {dimension_numbers = #tpu.dot_dimension_numbers<[1], [0], [0], [1], [0, 0, 1, 1], [], []>, precision = #tpu.contract_precision<fp32>} : vector<16x16xf32>, vector<16x16xf32>, vector<16x16xf32> -> vector<16x16xf32>
    %cst_9 = arith.constant dense<0.000000e+00> : vector<16x16xf32>
    %7 = tpu.matmul %0, %6, %cst_9 {dimension_numbers = #tpu.dot_dimension_numbers<[1], [0], [0], [1], [0, 0, 1, 1], [], []>, precision = #tpu.contract_precision<fp32>} : vector<16x16xf32>, vector<16x16xf32>, vector<16x16xf32> -> vector<16x16xf32>
    %cst_10 = arith.constant dense<0.000000e+00> : vector<16x16xf32>
    %8 = tpu.matmul %5, %1, %cst_10 {dimension_numbers = #tpu.dot_dimension_numbers<[1], [0], [0], [1], [0, 0, 1, 1], [], []>, precision = #tpu.contract_precision<fp32>} : vector<16x16xf32>, vector<16x16xf32>, vector<16x16xf32> -> vector<16x16xf32>
    %cst_11 = arith.constant dense<0.000000e+00> : vector<16x16xf32>
    %9 = tpu.matmul %0, %8, %cst_11 {dimension_numbers = #tpu.dot_dimension_numbers<[1], [0], [0], [1], [0, 0, 1, 1], [], []>, precision = #tpu.contract_precision<fp32>} : vector<16x16xf32>, vector<16x16xf32>, vector<16x16xf32> -> vector<16x16xf32>
    %10 = arith.mulf %3, %3 : vector<16x16xf32>
    %cst_12 = arith.constant dense<0.000000e+00> : vector<16x16xf32>
    %11 = tpu.matmul %10, %1, %cst_12 {dimension_numbers = #tpu.dot_dimension_numbers<[1], [0], [0], [1], [0, 0, 1, 1], [], []>, precision = #tpu.contract_precision<fp32>} : vector<16x16xf32>, vector<16x16xf32>, vector<16x16xf32> -> vector<16x16xf32>
    %cst_13 = arith.constant dense<0.000000e+00> : vector<16x16xf32>
    %12 = tpu.matmul %0, %11, %cst_13 {dimension_numbers = #tpu.dot_dimension_numbers<[1], [0], [0], [1], [0, 0, 1, 1], [], []>, precision = #tpu.contract_precision<fp32>} : vector<16x16xf32>, vector<16x16xf32>, vector<16x16xf32> -> vector<16x16xf32>
    %13 = arith.mulf %5, %5 : vector<16x16xf32>
    %cst_14 = arith.constant dense<0.000000e+00> : vector<16x16xf32>
    %14 = tpu.matmul %13, %1, %cst_14 {dimension_numbers = #tpu.dot_dimension_numbers<[1], [0], [0], [1], [0, 0, 1, 1], [], []>, precision = #tpu.contract_precision<fp32>} : vector<16x16xf32>, vector<16x16xf32>, vector<16x16xf32> -> vector<16x16xf32>
    %cst_15 = arith.constant dense<0.000000e+00> : vector<16x16xf32>
    %15 = tpu.matmul %0, %14, %cst_15 {dimension_numbers = #tpu.dot_dimension_numbers<[1], [0], [0], [1], [0, 0, 1, 1], [], []>, precision = #tpu.contract_precision<fp32>} : vector<16x16xf32>, vector<16x16xf32>, vector<16x16xf32> -> vector<16x16xf32>
    %16 = arith.mulf %3, %5 : vector<16x16xf32>
    %cst_16 = arith.constant dense<0.000000e+00> : vector<16x16xf32>
    %17 = tpu.matmul %16, %1, %cst_16 {dimension_numbers = #tpu.dot_dimension_numbers<[1], [0], [0], [1], [0, 0, 1, 1], [], []>, precision = #tpu.contract_precision<fp32>} : vector<16x16xf32>, vector<16x16xf32>, vector<16x16xf32> -> vector<16x16xf32>
    %cst_17 = arith.constant dense<0.000000e+00> : vector<16x16xf32>
    %18 = tpu.matmul %0, %17, %cst_17 {dimension_numbers = #tpu.dot_dimension_numbers<[1], [0], [0], [1], [0, 0, 1, 1], [], []>, precision = #tpu.contract_precision<fp32>} : vector<16x16xf32>, vector<16x16xf32>, vector<16x16xf32> -> vector<16x16xf32>
    %19 = arith.mulf %7, %7 : vector<16x16xf32>
    %20 = arith.mulf %9, %9 : vector<16x16xf32>
    %21 = arith.mulf %7, %9 : vector<16x16xf32>
    %22 = arith.subf %12, %19 : vector<16x16xf32>
    %23 = arith.subf %15, %20 : vector<16x16xf32>
    %24 = arith.subf %18, %21 : vector<16x16xf32>
    %cst_18 = arith.constant 2.000000e+00 : f32
    %25 = vector.broadcast %cst_18 : f32 to vector<16x16xf32>
    %26 = arith.mulf %25, %21 : vector<16x16xf32>
    %cst_19 = arith.constant 9.99999974E-5 : f32
    %27 = vector.broadcast %cst_19 : f32 to vector<16x16xf32>
    %28 = arith.addf %26, %27 : vector<16x16xf32>
    %cst_20 = arith.constant 2.000000e+00 : f32
    %29 = vector.broadcast %cst_20 : f32 to vector<16x16xf32>
    %30 = arith.mulf %29, %24 : vector<16x16xf32>
    %cst_21 = arith.constant 8.99999984E-4 : f32
    %31 = vector.broadcast %cst_21 : f32 to vector<16x16xf32>
    %32 = arith.addf %30, %31 : vector<16x16xf32>
    %33 = arith.mulf %28, %32 : vector<16x16xf32>
    %34 = arith.addf %19, %20 : vector<16x16xf32>
    %cst_22 = arith.constant 9.99999974E-5 : f32
    %35 = vector.broadcast %cst_22 : f32 to vector<16x16xf32>
    %36 = arith.addf %34, %35 : vector<16x16xf32>
    %37 = arith.addf %22, %23 : vector<16x16xf32>
    %cst_23 = arith.constant 8.99999984E-4 : f32
    %38 = vector.broadcast %cst_23 : f32 to vector<16x16xf32>
    %39 = arith.addf %37, %38 : vector<16x16xf32>
    %40 = arith.mulf %36, %39 : vector<16x16xf32>
    %41 = arith.divf %33, %40 : vector<16x16xf32>
    %42 = vector.shape_cast %41 : vector<16x16xf32> to vector<1x16x16xf32>
    %cst_24 = arith.constant dense<0.000000e+00> : vector<1xf32>
    %43 = vector.multi_reduction <add>, %42, %cst_24 [1, 2] : vector<1x16x16xf32> to vector<1xf32>
    %44 = vector.shape_cast %43 : vector<1xf32> to vector<1x1x1xf32>
    %45 = vector.extract %44[0, 0, 0] : f32 from vector<1x1x1xf32>
    %46 = vector.broadcast %45 : f32 to vector<1x128xf32>
    %c0_25 = arith.constant 0 : index
    %c0_26 = arith.constant 0 : index
    %c0_27 = arith.constant 0 : index
    %47 = vector.load %arg5[%c0_25, %c0_26, %c0_27] : memref<4x1x128xf32, #tpu.memory_space<vmem>>, vector<1x1x128xf32>
    %48 = vector.shape_cast %47 : vector<1x1x128xf32> to vector<1x128xf32>
    %49 = vector.shape_cast %46 : vector<1x128xf32> to vector<1x1x128xf32>
    tpu.vector_store %arg5[%c0_25, %c0_26, %c0_27], %49 {strides = array<i32>} : memref<4x1x128xf32, #tpu.memory_space<vmem>>, vector<1x1x128xf32>,
    %c1 = arith.constant 1 : index
    %c0_28 = arith.constant 0 : index
    %c0_29 = arith.constant 0 : index
    %50 = vector.load %arg1[%c1, %c0_28, %c0_29] : memref<4x16x16xf32, #tpu.memory_space<vmem>>, vector<1x16x16xf32>
    %51 = vector.shape_cast %50 : vector<1x16x16xf32> to vector<16x16xf32>
    %c1_30 = arith.constant 1 : index
    %c0_31 = arith.constant 0 : index
    %c0_32 = arith.constant 0 : index
    %52 = vector.load %arg2[%c1_30, %c0_31, %c0_32] : memref<4x16x16xf32, #tpu.memory_space<vmem>>, vector<1x16x16xf32>
    %53 = vector.shape_cast %52 : vector<1x16x16xf32> to vector<16x16xf32>
    %cst_33 = arith.constant dense<0.000000e+00> : vector<16x16xf32>
    %54 = tpu.matmul %51, %1, %cst_33 {dimension_numbers = #tpu.dot_dimension_numbers<[1], [0], [0], [1], [0, 0, 1, 1], [], []>, precision = #tpu.contract_precision<fp32>} : vector<16x16xf32>, vector<16x16xf32>, vector<16x16xf32> -> vector<16x16xf32>
    %cst_34 = arith.constant dense<0.000000e+00> : vector<16x16xf32>
    %55 = tpu.matmul %0, %54, %cst_34 {dimension_numbers = #tpu.dot_dimension_numbers<[1], [0], [0], [1], [0, 0, 1, 1], [], []>, precision = #tpu.contract_precision<fp32>} : vector<16x16xf32>, vector<16x16xf32>, vector<16x16xf32> -> vector<16x16xf32>
    %cst_35 = arith.constant dense<0.000000e+00> : vector<16x16xf32>
    %56 = tpu.matmul %53, %1, %cst_35 {dimension_numbers = #tpu.dot_dimension_numbers<[1], [0], [0], [1], [0, 0, 1, 1], [], []>, precision = #tpu.contract_precision<fp32>} : vector<16x16xf32>, vector<16x16xf32>, vector<16x16xf32> -> vector<16x16xf32>
    %cst_36 = arith.constant dense<0.000000e+00> : vector<16x16xf32>
    %57 = tpu.matmul %0, %56, %cst_36 {dimension_numbers = #tpu.dot_dimension_numbers<[1], [0], [0], [1], [0, 0, 1, 1], [], []>, precision = #tpu.contract_precision<fp32>} : vector<16x16xf32>, vector<16x16xf32>, vector<16x16xf32> -> vector<16x16xf32>
    %58 = arith.mulf %51, %51 : vector<16x16xf32>
    %cst_37 = arith.constant dense<0.000000e+00> : vector<16x16xf32>
    %59 = tpu.matmul %58, %1, %cst_37 {dimension_numbers = #tpu.dot_dimension_numbers<[1], [0], [0], [1], [0, 0, 1, 1], [], []>, precision = #tpu.contract_precision<fp32>} : vector<16x16xf32>, vector<16x16xf32>, vector<16x16xf32> -> vector<16x16xf32>
    %cst_38 = arith.constant dense<0.000000e+00> : vector<16x16xf32>
    %60 = tpu.matmul %0, %59, %cst_38 {dimension_numbers = #tpu.dot_dimension_numbers<[1], [0], [0], [1], [0, 0, 1, 1], [], []>, precision = #tpu.contract_precision<fp32>} : vector<16x16xf32>, vector<16x16xf32>, vector<16x16xf32> -> vector<16x16xf32>
    %61 = arith.mulf %53, %53 : vector<16x16xf32>
    %cst_39 = arith.constant dense<0.000000e+00> : vector<16x16xf32>
    %62 = tpu.matmul %61, %1, %cst_39 {dimension_numbers = #tpu.dot_dimension_numbers<[1], [0], [0], [1], [0, 0, 1, 1], [], []>, precision = #tpu.contract_precision<fp32>} : vector<16x16xf32>, vector<16x16xf32>, vector<16x16xf32> -> vector<16x16xf32>
    %cst_40 = arith.constant dense<0.000000e+00> : vector<16x16xf32>
    %63 = tpu.matmul %0, %62, %cst_40 {dimension_numbers = #tpu.dot_dimension_numbers<[1], [0], [0], [1], [0, 0, 1, 1], [], []>, precision = #tpu.contract_precision<fp32>} : vector<16x16xf32>, vector<16x16xf32>, vector<16x16xf32> -> vector<16x16xf32>
    %64 = arith.mulf %51, %53 : vector<16x16xf32>
    %cst_41 = arith.constant dense<0.000000e+00> : vector<16x16xf32>
    %65 = tpu.matmul %64, %1, %cst_41 {dimension_numbers = #tpu.dot_dimension_numbers<[1], [0], [0], [1], [0, 0, 1, 1], [], []>, precision = #tpu.contract_precision<fp32>} : vector<16x16xf32>, vector<16x16xf32>, vector<16x16xf32> -> vector<16x16xf32>
    %cst_42 = arith.constant dense<0.000000e+00> : vector<16x16xf32>
    %66 = tpu.matmul %0, %65, %cst_42 {dimension_numbers = #tpu.dot_dimension_numbers<[1], [0], [0], [1], [0, 0, 1, 1], [], []>, precision = #tpu.contract_precision<fp32>} : vector<16x16xf32>, vector<16x16xf32>, vector<16x16xf32> -> vector<16x16xf32>
    %67 = arith.mulf %55, %55 : vector<16x16xf32>
    %68 = arith.mulf %57, %57 : vector<16x16xf32>
    %69 = arith.mulf %55, %57 : vector<16x16xf32>
    %70 = arith.subf %60, %67 : vector<16x16xf32>
    %71 = arith.subf %63, %68 : vector<16x16xf32>
    %72 = arith.subf %66, %69 : vector<16x16xf32>
    %cst_43 = arith.constant 2.000000e+00 : f32
    %73 = vector.broadcast %cst_43 : f32 to vector<16x16xf32>
    %74 = arith.mulf %73, %69 : vector<16x16xf32>
    %cst_44 = arith.constant 9.99999974E-5 : f32
    %75 = vector.broadcast %cst_44 : f32 to vector<16x16xf32>
    %76 = arith.addf %74, %75 : vector<16x16xf32>
    %cst_45 = arith.constant 2.000000e+00 : f32
    %77 = vector.broadcast %cst_45 : f32 to vector<16x16xf32>
    %78 = arith.mulf %77, %72 : vector<16x16xf32>
    %cst_46 = arith.constant 8.99999984E-4 : f32
    %79 = vector.broadcast %cst_46 : f32 to vector<16x16xf32>
    %80 = arith.addf %78, %79 : vector<16x16xf32>
    %81 = arith.mulf %76, %80 : vector<16x16xf32>
    %82 = arith.addf %67, %68 : vector<16x16xf32>
    %cst_47 = arith.constant 9.99999974E-5 : f32
    %83 = vector.broadcast %cst_47 : f32 to vector<16x16xf32>
    %84 = arith.addf %82, %83 : vector<16x16xf32>
    %85 = arith.addf %70, %71 : vector<16x16xf32>
    %cst_48 = arith.constant 8.99999984E-4 : f32
    %86 = vector.broadcast %cst_48 : f32 to vector<16x16xf32>
    %87 = arith.addf %85, %86 : vector<16x16xf32>
    %88 = arith.mulf %84, %87 : vector<16x16xf32>
    %89 = arith.divf %81, %88 : vector<16x16xf32>
    %90 = vector.shape_cast %89 : vector<16x16xf32> to vector<1x16x16xf32>
    %cst_49 = arith.constant dense<0.000000e+00> : vector<1xf32>
    %91 = vector.multi_reduction <add>, %90, %cst_49 [1, 2] : vector<1x16x16xf32> to vector<1xf32>
    %92 = vector.shape_cast %91 : vector<1xf32> to vector<1x1x1xf32>
    %93 = vector.extract %92[0, 0, 0] : f32 from vector<1x1x1xf32>
    %94 = vector.broadcast %93 : f32 to vector<1x128xf32>
    %c1_50 = arith.constant 1 : index
    %c0_51 = arith.constant 0 : index
    %c0_52 = arith.constant 0 : index
    %95 = vector.load %arg5[%c1_50, %c0_51, %c0_52] : memref<4x1x128xf32, #tpu.memory_space<vmem>>, vector<1x1x128xf32>
    %96 = vector.shape_cast %95 : vector<1x1x128xf32> to vector<1x128xf32>
    %97 = vector.shape_cast %94 : vector<1x128xf32> to vector<1x1x128xf32>
    tpu.vector_store %arg5[%c1_50, %c0_51, %c0_52], %97 {strides = array<i32>} : memref<4x1x128xf32, #tpu.memory_space<vmem>>, vector<1x1x128xf32>,
    %c2 = arith.constant 2 : index
    %c0_53 = arith.constant 0 : index
    %c0_54 = arith.constant 0 : index
    %98 = vector.load %arg1[%c2, %c0_53, %c0_54] : memref<4x16x16xf32, #tpu.memory_space<vmem>>, vector<1x16x16xf32>
    %99 = vector.shape_cast %98 : vector<1x16x16xf32> to vector<16x16xf32>
    %c2_55 = arith.constant 2 : index
    %c0_56 = arith.constant 0 : index
    %c0_57 = arith.constant 0 : index
    %100 = vector.load %arg2[%c2_55, %c0_56, %c0_57] : memref<4x16x16xf32, #tpu.memory_space<vmem>>, vector<1x16x16xf32>
    %101 = vector.shape_cast %100 : vector<1x16x16xf32> to vector<16x16xf32>
    %cst_58 = arith.constant dense<0.000000e+00> : vector<16x16xf32>
    %102 = tpu.matmul %99, %1, %cst_58 {dimension_numbers = #tpu.dot_dimension_numbers<[1], [0], [0], [1], [0, 0, 1, 1], [], []>, precision = #tpu.contract_precision<fp32>} : vector<16x16xf32>, vector<16x16xf32>, vector<16x16xf32> -> vector<16x16xf32>
    %cst_59 = arith.constant dense<0.000000e+00> : vector<16x16xf32>
    %103 = tpu.matmul %0, %102, %cst_59 {dimension_numbers = #tpu.dot_dimension_numbers<[1], [0], [0], [1], [0, 0, 1, 1], [], []>, precision = #tpu.contract_precision<fp32>} : vector<16x16xf32>, vector<16x16xf32>, vector<16x16xf32> -> vector<16x16xf32>
    %cst_60 = arith.constant dense<0.000000e+00> : vector<16x16xf32>
    %104 = tpu.matmul %101, %1, %cst_60 {dimension_numbers = #tpu.dot_dimension_numbers<[1], [0], [0], [1], [0, 0, 1, 1], [], []>, precision = #tpu.contract_precision<fp32>} : vector<16x16xf32>, vector<16x16xf32>, vector<16x16xf32> -> vector<16x16xf32>
    %cst_61 = arith.constant dense<0.000000e+00> : vector<16x16xf32>
    %105 = tpu.matmul %0, %104, %cst_61 {dimension_numbers = #tpu.dot_dimension_numbers<[1], [0], [0], [1], [0, 0, 1, 1], [], []>, precision = #tpu.contract_precision<fp32>} : vector<16x16xf32>, vector<16x16xf32>, vector<16x16xf32> -> vector<16x16xf32>
    %106 = arith.mulf %99, %99 : vector<16x16xf32>
    %cst_62 = arith.constant dense<0.000000e+00> : vector<16x16xf32>
    %107 = tpu.matmul %106, %1, %cst_62 {dimension_numbers = #tpu.dot_dimension_numbers<[1], [0], [0], [1], [0, 0, 1, 1], [], []>, precision = #tpu.contract_precision<fp32>} : vector<16x16xf32>, vector<16x16xf32>, vector<16x16xf32> -> vector<16x16xf32>
    %cst_63 = arith.constant dense<0.000000e+00> : vector<16x16xf32>
    %108 = tpu.matmul %0, %107, %cst_63 {dimension_numbers = #tpu.dot_dimension_numbers<[1], [0], [0], [1], [0, 0, 1, 1], [], []>, precision = #tpu.contract_precision<fp32>} : vector<16x16xf32>, vector<16x16xf32>, vector<16x16xf32> -> vector<16x16xf32>
    %109 = arith.mulf %101, %101 : vector<16x16xf32>
    %cst_64 = arith.constant dense<0.000000e+00> : vector<16x16xf32>
    %110 = tpu.matmul %109, %1, %cst_64 {dimension_numbers = #tpu.dot_dimension_numbers<[1], [0], [0], [1], [0, 0, 1, 1], [], []>, precision = #tpu.contract_precision<fp32>} : vector<16x16xf32>, vector<16x16xf32>, vector<16x16xf32> -> vector<16x16xf32>
    %cst_65 = arith.constant dense<0.000000e+00> : vector<16x16xf32>
    %111 = tpu.matmul %0, %110, %cst_65 {dimension_numbers = #tpu.dot_dimension_numbers<[1], [0], [0], [1], [0, 0, 1, 1], [], []>, precision = #tpu.contract_precision<fp32>} : vector<16x16xf32>, vector<16x16xf32>, vector<16x16xf32> -> vector<16x16xf32>
    %112 = arith.mulf %99, %101 : vector<16x16xf32>
    %cst_66 = arith.constant dense<0.000000e+00> : vector<16x16xf32>
    %113 = tpu.matmul %112, %1, %cst_66 {dimension_numbers = #tpu.dot_dimension_numbers<[1], [0], [0], [1], [0, 0, 1, 1], [], []>, precision = #tpu.contract_precision<fp32>} : vector<16x16xf32>, vector<16x16xf32>, vector<16x16xf32> -> vector<16x16xf32>
    %cst_67 = arith.constant dense<0.000000e+00> : vector<16x16xf32>
    %114 = tpu.matmul %0, %113, %cst_67 {dimension_numbers = #tpu.dot_dimension_numbers<[1], [0], [0], [1], [0, 0, 1, 1], [], []>, precision = #tpu.contract_precision<fp32>} : vector<16x16xf32>, vector<16x16xf32>, vector<16x16xf32> -> vector<16x16xf32>
    %115 = arith.mulf %103, %103 : vector<16x16xf32>
    %116 = arith.mulf %105, %105 : vector<16x16xf32>
    %117 = arith.mulf %103, %105 : vector<16x16xf32>
    %118 = arith.subf %108, %115 : vector<16x16xf32>
    %119 = arith.subf %111, %116 : vector<16x16xf32>
    %120 = arith.subf %114, %117 : vector<16x16xf32>
    %cst_68 = arith.constant 2.000000e+00 : f32
    %121 = vector.broadcast %cst_68 : f32 to vector<16x16xf32>
    %122 = arith.mulf %121, %117 : vector<16x16xf32>
    %cst_69 = arith.constant 9.99999974E-5 : f32
    %123 = vector.broadcast %cst_69 : f32 to vector<16x16xf32>
    %124 = arith.addf %122, %123 : vector<16x16xf32>
    %cst_70 = arith.constant 2.000000e+00 : f32
    %125 = vector.broadcast %cst_70 : f32 to vector<16x16xf32>
    %126 = arith.mulf %125, %120 : vector<16x16xf32>
    %cst_71 = arith.constant 8.99999984E-4 : f32
    %127 = vector.broadcast %cst_71 : f32 to vector<16x16xf32>
    %128 = arith.addf %126, %127 : vector<16x16xf32>
    %129 = arith.mulf %124, %128 : vector<16x16xf32>
    %130 = arith.addf %115, %116 : vector<16x16xf32>
    %cst_72 = arith.constant 9.99999974E-5 : f32
    %131 = vector.broadcast %cst_72 : f32 to vector<16x16xf32>
    %132 = arith.addf %130, %131 : vector<16x16xf32>
    %133 = arith.addf %118, %119 : vector<16x16xf32>
    %cst_73 = arith.constant 8.99999984E-4 : f32
    %134 = vector.broadcast %cst_73 : f32 to vector<16x16xf32>
    %135 = arith.addf %133, %134 : vector<16x16xf32>
    %136 = arith.mulf %132, %135 : vector<16x16xf32>
    %137 = arith.divf %129, %136 : vector<16x16xf32>
    %138 = vector.shape_cast %137 : vector<16x16xf32> to vector<1x16x16xf32>
    %cst_74 = arith.constant dense<0.000000e+00> : vector<1xf32>
    %139 = vector.multi_reduction <add>, %138, %cst_74 [1, 2] : vector<1x16x16xf32> to vector<1xf32>
    %140 = vector.shape_cast %139 : vector<1xf32> to vector<1x1x1xf32>
    %141 = vector.extract %140[0, 0, 0] : f32 from vector<1x1x1xf32>
    %142 = vector.broadcast %141 : f32 to vector<1x128xf32>
    %c2_75 = arith.constant 2 : index
    %c0_76 = arith.constant 0 : index
    %c0_77 = arith.constant 0 : index
    %143 = vector.load %arg5[%c2_75, %c0_76, %c0_77] : memref<4x1x128xf32, #tpu.memory_space<vmem>>, vector<1x1x128xf32>
    %144 = vector.shape_cast %143 : vector<1x1x128xf32> to vector<1x128xf32>
    %145 = vector.shape_cast %142 : vector<1x128xf32> to vector<1x1x128xf32>
    tpu.vector_store %arg5[%c2_75, %c0_76, %c0_77], %145 {strides = array<i32>} : memref<4x1x128xf32, #tpu.memory_space<vmem>>, vector<1x1x128xf32>,
    %c3 = arith.constant 3 : index
    %c0_78 = arith.constant 0 : index
    %c0_79 = arith.constant 0 : index
    %146 = vector.load %arg1[%c3, %c0_78, %c0_79] : memref<4x16x16xf32, #tpu.memory_space<vmem>>, vector<1x16x16xf32>
    %147 = vector.shape_cast %146 : vector<1x16x16xf32> to vector<16x16xf32>
    %c3_80 = arith.constant 3 : index
    %c0_81 = arith.constant 0 : index
    %c0_82 = arith.constant 0 : index
    %148 = vector.load %arg2[%c3_80, %c0_81, %c0_82] : memref<4x16x16xf32, #tpu.memory_space<vmem>>, vector<1x16x16xf32>
    %149 = vector.shape_cast %148 : vector<1x16x16xf32> to vector<16x16xf32>
    %cst_83 = arith.constant dense<0.000000e+00> : vector<16x16xf32>
    %150 = tpu.matmul %147, %1, %cst_83 {dimension_numbers = #tpu.dot_dimension_numbers<[1], [0], [0], [1], [0, 0, 1, 1], [], []>, precision = #tpu.contract_precision<fp32>} : vector<16x16xf32>, vector<16x16xf32>, vector<16x16xf32> -> vector<16x16xf32>
    %cst_84 = arith.constant dense<0.000000e+00> : vector<16x16xf32>
    %151 = tpu.matmul %0, %150, %cst_84 {dimension_numbers = #tpu.dot_dimension_numbers<[1], [0], [0], [1], [0, 0, 1, 1], [], []>, precision = #tpu.contract_precision<fp32>} : vector<16x16xf32>, vector<16x16xf32>, vector<16x16xf32> -> vector<16x16xf32>
    %cst_85 = arith.constant dense<0.000000e+00> : vector<16x16xf32>
    %152 = tpu.matmul %149, %1, %cst_85 {dimension_numbers = #tpu.dot_dimension_numbers<[1], [0], [0], [1], [0, 0, 1, 1], [], []>, precision = #tpu.contract_precision<fp32>} : vector<16x16xf32>, vector<16x16xf32>, vector<16x16xf32> -> vector<16x16xf32>
    %cst_86 = arith.constant dense<0.000000e+00> : vector<16x16xf32>
    %153 = tpu.matmul %0, %152, %cst_86 {dimension_numbers = #tpu.dot_dimension_numbers<[1], [0], [0], [1], [0, 0, 1, 1], [], []>, precision = #tpu.contract_precision<fp32>} : vector<16x16xf32>, vector<16x16xf32>, vector<16x16xf32> -> vector<16x16xf32>
    %154 = arith.mulf %147, %147 : vector<16x16xf32>
    %cst_87 = arith.constant dense<0.000000e+00> : vector<16x16xf32>
    %155 = tpu.matmul %154, %1, %cst_87 {dimension_numbers = #tpu.dot_dimension_numbers<[1], [0], [0], [1], [0, 0, 1, 1], [], []>, precision = #tpu.contract_precision<fp32>} : vector<16x16xf32>, vector<16x16xf32>, vector<16x16xf32> -> vector<16x16xf32>
    %cst_88 = arith.constant dense<0.000000e+00> : vector<16x16xf32>
    %156 = tpu.matmul %0, %155, %cst_88 {dimension_numbers = #tpu.dot_dimension_numbers<[1], [0], [0], [1], [0, 0, 1, 1], [], []>, precision = #tpu.contract_precision<fp32>} : vector<16x16xf32>, vector<16x16xf32>, vector<16x16xf32> -> vector<16x16xf32>
    %157 = arith.mulf %149, %149 : vector<16x16xf32>
    %cst_89 = arith.constant dense<0.000000e+00> : vector<16x16xf32>
    %158 = tpu.matmul %157, %1, %cst_89 {dimension_numbers = #tpu.dot_dimension_numbers<[1], [0], [0], [1], [0, 0, 1, 1], [], []>, precision = #tpu.contract_precision<fp32>} : vector<16x16xf32>, vector<16x16xf32>, vector<16x16xf32> -> vector<16x16xf32>
    %cst_90 = arith.constant dense<0.000000e+00> : vector<16x16xf32>
    %159 = tpu.matmul %0, %158, %cst_90 {dimension_numbers = #tpu.dot_dimension_numbers<[1], [0], [0], [1], [0, 0, 1, 1], [], []>, precision = #tpu.contract_precision<fp32>} : vector<16x16xf32>, vector<16x16xf32>, vector<16x16xf32> -> vector<16x16xf32>
    %160 = arith.mulf %147, %149 : vector<16x16xf32>
    %cst_91 = arith.constant dense<0.000000e+00> : vector<16x16xf32>
    %161 = tpu.matmul %160, %1, %cst_91 {dimension_numbers = #tpu.dot_dimension_numbers<[1], [0], [0], [1], [0, 0, 1, 1], [], []>, precision = #tpu.contract_precision<fp32>} : vector<16x16xf32>, vector<16x16xf32>, vector<16x16xf32> -> vector<16x16xf32>
    %cst_92 = arith.constant dense<0.000000e+00> : vector<16x16xf32>
    %162 = tpu.matmul %0, %161, %cst_92 {dimension_numbers = #tpu.dot_dimension_numbers<[1], [0], [0], [1], [0, 0, 1, 1], [], []>, precision = #tpu.contract_precision<fp32>} : vector<16x16xf32>, vector<16x16xf32>, vector<16x16xf32> -> vector<16x16xf32>
    %163 = arith.mulf %151, %151 : vector<16x16xf32>
    %164 = arith.mulf %153, %153 : vector<16x16xf32>
    %165 = arith.mulf %151, %153 : vector<16x16xf32>
    %166 = arith.subf %156, %163 : vector<16x16xf32>
    %167 = arith.subf %159, %164 : vector<16x16xf32>
    %168 = arith.subf %162, %165 : vector<16x16xf32>
    %cst_93 = arith.constant 2.000000e+00 : f32
    %169 = vector.broadcast %cst_93 : f32 to vector<16x16xf32>
    %170 = arith.mulf %169, %165 : vector<16x16xf32>
    %cst_94 = arith.constant 9.99999974E-5 : f32
    %171 = vector.broadcast %cst_94 : f32 to vector<16x16xf32>
    %172 = arith.addf %170, %171 : vector<16x16xf32>
    %cst_95 = arith.constant 2.000000e+00 : f32
    %173 = vector.broadcast %cst_95 : f32 to vector<16x16xf32>
    %174 = arith.mulf %173, %168 : vector<16x16xf32>
    %cst_96 = arith.constant 8.99999984E-4 : f32
    %175 = vector.broadcast %cst_96 : f32 to vector<16x16xf32>
    %176 = arith.addf %174, %175 : vector<16x16xf32>
    %177 = arith.mulf %172, %176 : vector<16x16xf32>
    %178 = arith.addf %163, %164 : vector<16x16xf32>
    %cst_97 = arith.constant 9.99999974E-5 : f32
    %179 = vector.broadcast %cst_97 : f32 to vector<16x16xf32>
    %180 = arith.addf %178, %179 : vector<16x16xf32>
    %181 = arith.addf %166, %167 : vector<16x16xf32>
    %cst_98 = arith.constant 8.99999984E-4 : f32
    %182 = vector.broadcast %cst_98 : f32 to vector<16x16xf32>
    %183 = arith.addf %181, %182 : vector<16x16xf32>
    %184 = arith.mulf %180, %183 : vector<16x16xf32>
    %185 = arith.divf %177, %184 : vector<16x16xf32>
    %186 = vector.shape_cast %185 : vector<16x16xf32> to vector<1x16x16xf32>
    %cst_99 = arith.constant dense<0.000000e+00> : vector<1xf32>
    %187 = vector.multi_reduction <add>, %186, %cst_99 [1, 2] : vector<1x16x16xf32> to vector<1xf32>
    %188 = vector.shape_cast %187 : vector<1xf32> to vector<1x1x1xf32>
    %189 = vector.extract %188[0, 0, 0] : f32 from vector<1x1x1xf32>
    %190 = vector.broadcast %189 : f32 to vector<1x128xf32>
    %c3_100 = arith.constant 3 : index
    %c0_101 = arith.constant 0 : index
    %c0_102 = arith.constant 0 : index
    %191 = vector.load %arg5[%c3_100, %c0_101, %c0_102] : memref<4x1x128xf32, #tpu.memory_space<vmem>>, vector<1x1x128xf32>
    %192 = vector.shape_cast %191 : vector<1x1x128xf32> to vector<1x128xf32>
    %193 = vector.shape_cast %190 : vector<1x128xf32> to vector<1x1x128xf32>
    tpu.vector_store %arg5[%c3_100, %c0_101, %c0_102], %193 {strides = array<i32>} : memref<4x1x128xf32, #tpu.memory_space<vmem>>, vector<1x1x128xf32>,
    return
  }
  func.func @transform_0(%arg0: i32) -> (i32, i32, i32) {
    %c0_i32 = arith.constant 0 : i32
    %c0_i32_0 = arith.constant 0 : i32
    %c0_i32_1 = arith.constant 0 : i32
    return %arg0, %c0_i32, %c0_i32_0 : i32, i32, i32
  }
  func.func @transform_1(%arg0: i32) -> (i32, i32, i32) {
    %c0_i32 = arith.constant 0 : i32
    %c0_i32_0 = arith.constant 0 : i32
    %c0_i32_1 = arith.constant 0 : i32
    return %arg0, %c0_i32, %c0_i32_0 : i32, i32, i32
  }
  func.func @transform_2(%arg0: i32) -> (i32, i32) {
    %c0_i32 = arith.constant 0 : i32
    %c0_i32_0 = arith.constant 0 : i32
    %c0_i32_1 = arith.constant 0 : i32
    return %c0_i32, %c0_i32_0 : i32, i32
  }
  func.func @transform_3(%arg0: i32) -> (i32, i32) {
    %c0_i32 = arith.constant 0 : i32
    %c0_i32_0 = arith.constant 0 : i32
    %c0_i32_1 = arith.constant 0 : i32
    return %c0_i32, %c0_i32_0 : i32, i32
  }
  func.func @transform_4(%arg0: i32) -> (i32, i32, i32) {
    %c0_i32 = arith.constant 0 : i32
    %c0_i32_0 = arith.constant 0 : i32
    %c0_i32_1 = arith.constant 0 : i32
    return %arg0, %c0_i32, %c0_i32_0 : i32, i32, i32
  }
}

</mosaic_0001>

<bundles_post_ra>
// kernel: tpu_custom_call.1
= control target key start
LH: loop header
LB: loop body
LE: loop exit
PB: predicated region body
PF: predicated region fallthrough
CT: control target
= control target key end

     0   :  { %s26804_s0 = inlined_call_operand.hbm [shape: f32[8,16,16], index: 0, kind: input, shape index: {}]   ;;  %s26805_s1 = inlined_call_operand.hbm [shape: f32[8,16,16], index: 1, kind: input, shape index: {}]   ;;  %s26806_s2 = inlined_call_operand.hbm [shape: f32[16,16], index: 2, kind: input, shape index: {}]   ;;  %s26807_s3 = inlined_call_operand.hbm [shape: f32[16,16], index: 3, kind: input, shape index: {}]   ;;  %s26808_s4 = inlined_call_operand.hbm [shape: f32[8,1,128], index: 4, kind: output, shape index: {}]  }
   0x1   :  { %26816 = sst [smem:[#allocation16_spill]] %s26804_s0 }
   0x2   :  { %9 = vsyncpa [#allocation3], 0 }
   0x3   :  { %11 = vsyncpa [#allocation3 + $0x1], 0 }
   0x4   :  { %12 = vsyncpa [#allocation6], 0 }
   0x5   :  { %14 = vsyncpa [#allocation6 + $0x1], 0 }
   0x6   :  { %15 = vsyncpa [#allocation9], 0 }
   0x7   :  { %16 = vsyncpa [#allocation4], 0 }
   0x8   :  { %18 = vsyncpa [#allocation4 + $0x1], 0  ;;  %s25253_s15 = smov 0   ;;  %s25255_s16 = smov 0  }
   0x9   :  { %s25257_s17 = smov 0   ;;  %s25259_s18 = smov 0  }
   0xa LB: > { %s25274_s19 = sadd.s32 4294967295, %s25217_s18   ;;  %s20879_s20 = sadd.s32 4294967294, %s25217_s18   ;;  %s25217_s18 = sphi %s25259_s18, %s26838_s18   ;;  %s25213_s17 = sphi %s25257_s17, %s26837_s17   ;;  %s25209_s16 = sphi %s25255_s16, %s26836_s16   ;;  %s25205_s15 = sphi %s25253_s15, %s26835_s15  }
   0xb   : > { %p44_p0 = scmp.ne.s32.totalorder %s25209_s16, %s25205_s15  ;;  %p26809_p1 = scmp.eq.s32.totalorder %s25274_s19, 0 }
   0xc   : > { %p142_p3 = scmp.eq.s32.totalorder %s20879_s20, 1  ;;  %p20880_p5 = scmp.ge.s32.totalorder %s25217_s18, 1 }
   0xd   : > { %p25283_p4 = por %p26809_p1, %p44_p0  ;;  %p149_p7 = scmp.lt.s32.totalorder %s25217_s18, 3 }
   0xe   : > { %p25288_p6 = por %p142_p3, %p44_p0  ;;  %s25219_s24 = smov [#allocation7]  }
   0xf   : > { %s26817_s21 = scalar_select %p25283_p4, 1, 0 }
  0x10   : > { %s26818_s22 = scalar_select %p25288_p6, 1, 0 }
  0x11   : > { %p25293_p8 = pnand %p20880_p5, %p149_p7  ;;  %s161_s25 = sshll.u32 %s25219_s24, 4  ;;  %s25297_s25 = int_to_ptr.vmem [resolvable:$true] %s161_s25 }
  0x12   : > { %s25220_s27 = smov [#allocation8]   ;;  %s25023_s5 = scalar_lea.hbm %s26806_s2, 256 }
  0x13   : > { %p24945_p9 = pneg %p25293_p8  ;;  %s174_s28 = sshll.u32 %s25220_s27, 4  ;;  %s25308_s28 = int_to_ptr.vmem [resolvable:$true] %s174_s28 }
  0x14   : > { %p25024_p12 = scmp.ne.s32.totalorder %s26806_s2, %s25023_s5  ;;  %p25030_p5 = scmp.lt.u32.totalorder %s25023_s5, %s26806_s2 }
  0x15   : > { %p25304_p11 = pnand %p24945_p9, %p26809_p1 }
  0x17   : > { %p25025_p13 = pneg %p25304_p11 }
  0x19   : > { %p25026_p0 = pnand %p25025_p13, %p25024_p12 }
  0x1b   : > { %p25027_p3 = pneg %p25026_p0 }
  0x1d   : > { %p25032_p7 = pnand %p25030_p5, %p25027_p3 }
  0x1f   : > { %25035 = shalt.err (!%p25032_p7)
}
  0x20   : > { %s25036_s10 = scalar_lea.vmem %s25297_s25, 256  ;;  %p25044_p2 = scmp.lt.s32.totalorder %s25297_s25, %s25297_s25 }
  0x21   : > { %p25037_p9 = scmp.ne.s32.totalorder %s25297_s25, %s25036_s10  ;;  %p25045_p12 = scmp.lt.s32.totalorder %s25036_s10, %s25036_s10 }
  0x23   : > { %p25039_p10 = pnand %p25037_p9, %p25025_p13  ;;  %p25046_p0 = por %p25045_p12, %p25044_p2 }
  0x25   : > { %p25040_p1 = pneg %p25039_p10 }
  0x27   : > { %p25047_p6 = pnand %p25046_p0, %p25040_p1 }
  0x29   : > { %25050 = shalt.err (!%p25047_p6)
}
  0x2a   : > { %s26810_s11 = smov 128   ;;  %s26812_s12 = smov 8  }
  0x2b   : > { %24948 = dma.hbm_to_vmem [thread:$0]  (!%p25304_p11), %s26806_s2, 256, %s25297_s25, [#allocation6], %s26810_s11, %s26810_s11, %s26812_s12  }
  0x2c   : > { %s25051_s27 = scalar_lea.hbm %s26807_s3, 256 }
  0x2d   : > { %p25052_p1 = scmp.ne.s32.totalorder %s26807_s3, %s25051_s27  ;;  %p25058_p10 = scmp.lt.u32.totalorder %s25051_s27, %s26807_s3 }
  0x2f   : > { %p25054_p2 = pnand %p25052_p1, %p25025_p13 }
  0x31   : > { %p25055_p6 = pneg %p25054_p2 }
  0x33   : > { %p25060_p3 = pnand %p25058_p10, %p25055_p6 }
  0x35   : > { %25063 = shalt.err (!%p25060_p3)
}
  0x36   : > { %s25064_s25 = scalar_lea.vmem %s25308_s28, 256  ;;  %p25072_p12 = scmp.lt.s32.totalorder %s25308_s28, %s25308_s28 }
  0x37   : > { %p25065_p5 = scmp.ne.s32.totalorder %s25308_s28, %s25064_s25  ;;  %p25073_p0 = scmp.lt.s32.totalorder %s25064_s25, %s25064_s25 }
  0x39   : > { %p25067_p7 = pnand %p25065_p5, %p25025_p13  ;;  %p25074_p1 = por %p25073_p0, %p25072_p12 }
  0x3b   : > { %p25068_p9 = pneg %p25067_p7 }
  0x3d   : > { %p25075_p2 = pnand %p25074_p1, %p25068_p9 }
  0x3f   : > { %25078 = shalt.err (!%p25075_p2)
}
  0x40   : > { %24951 = dma.hbm_to_vmem [thread:$0]  (!%p25304_p11), %s26807_s3, 256, %s25308_s28, [#allocation9], %s26810_s11, %s26810_s11, %s26812_s12  }
  0x41   : > { %s25369_s26 = sadd.s32 1, %s25217_s18   ;;  %s31_s9 = sadd.s32 1, %s25213_s17 }
  0x42   : > { %s28_s10 = ssub.s32 %s25217_s18, %s25369_s26  ;;  %p38_p13 = scmp.ne.s32.totalorder %s25213_s17, %s25209_s16 }
  0x43   : > { %p29_p6 = scmp.eq.s32.totalorder %s28_s10, 0  ;;  %p39_p10 = scmp.eq.s32.totalorder %s25217_s18, 0 }
  0x44   : > { %p26821_p3 = scmp.eq.s32.totalorder %s25274_s19, 1  ;;  %p24965_p7 = scmp.lt.s32.totalorder %s25217_s18, 2 }
  0x45   : > { %s25385_s14 = scalar_select %p29_p6, %s25213_s17, %s31_s9  }
  0x46   : > { %p25379_p5 = por %p26821_p3, %p38_p13  ;;  %p40_p9 = por %p39_p10, %p38_p13 }
  0x47   : > { %s188_s20 = sand.u32 1, %s25213_s17   ;;  %s20919_s28 = sshll.u32 %s25217_s18, 10 }
  0x48   : > { %s26822_s13 = scalar_select %p25379_p5, 1, 0 }
  0x49   : > { %s20884_s24 = sshll.u32 %s188_s20, 6  ;;  %s26823_s0 = sld [smem:[#allocation16_spill]] }
  0x4a   : > { %s192_s5 = scalar_lea.vmem [#allocation2], %s20884_s24  ;;  %p25396_p11 = pnand %p24965_p7, %p40_p9 }
  0x4b   : > { %s200_s6 = sshll.u32 %s192_s5, 4  ;;  %s25403_s9 = scalar_lea.hbm %s26805_s1, %s20919_s28  ;;  %s25394_s6 = int_to_ptr.vmem [resolvable:$true] %s200_s6 }
  0x4c   : > { %s214_s10 = scalar_lea.vmem [#allocation5], %s20884_s24  ;;  %s25407_s29 = scalar_lea.sflag [#allocation3], %s188_s20 }
  0x4d   : > { %s25405_s27 = sshll.u32 %s214_s10, 4  ;;  %p25081_p0 = pneg %p25396_p11  ;;  %s25439_s27 = int_to_ptr.vmem [resolvable:$true] %s25405_s27 }
  0x4f   : > { %s25392_s30 = scalar_lea.hbm %s26823_s0, %s20919_s28  ;;  %s25084_s7 = scalar_lea.hbm %s26823_s0, 2048 }
  0x50   : > { %s25079_s5 = scalar_lea.hbm %s25392_s30, 1024  ;;  %p25085_p13 = scmp.lt.u32.totalorder %s25392_s30, %s26823_s0 }
  0x51   : > { %p25080_p12 = scmp.ne.s32.totalorder %s25392_s30, %s25079_s5  ;;  %p25086_p6 = scmp.lt.u32.totalorder %s25084_s7, %s25079_s5 }
  0x52   : > { %p25088_p3 = scmp.lt.u32.totalorder %s25079_s5, %s25392_s30 }
  0x53   : > { %p25082_p1 = pnand %p25081_p0, %p25080_p12  ;;  %p25087_p10 = por %p25086_p6, %p25085_p13 }
  0x55   : > { %p25083_p2 = pneg %p25082_p1  ;;  %p25089_p7 = por %p25088_p3, %p25087_p10 }
  0x57   : > { %p25090_p9 = pnand %p25089_p7, %p25083_p2 }
  0x59   : > { %25093 = shalt.err (!%p25090_p9)
}
  0x5a   : > { %s25094_s20 = scalar_lea.vmem %s25394_s6, 1024  ;;  %s25223_s11 = smov [#allocation2]  }
  0x5b   : > { %p25095_p12 = scmp.ne.s32.totalorder %s25394_s6, %s25094_s20  ;;  %s25099_s12 = sshll.u32 %s25223_s11, 4  ;;  %s25100_s12 = int_to_ptr.vmem [resolvable:$false] %s25099_s12 }
  0x5c   : > { %s25101_s24 = scalar_lea.vmem %s25100_s12, 2048  ;;  %p25102_p4 = scmp.lt.s32.totalorder %s25394_s6, %s25100_s12 }
  0x5d   : > { %p25097_p1 = pnand %p25095_p12, %p25081_p0  ;;  %p25103_p13 = scmp.lt.s32.totalorder %s25101_s24, %s25094_s20 }
  0x5f   : > { %p25098_p5 = pneg %p25097_p1  ;;  %p25104_p6 = por %p25103_p13, %p25102_p4 }
  0x61   : > { %p25105_p10 = pnand %p25104_p6, %p25098_p5 }
  0x63   : > { %25108 = shalt.err (!%p25105_p10)
}
  0x64   : > { %s26825_s10 = smov 8   ;;  %s26826_s5 = smov 128  }
  0x65   : > { %24955 = dma.hbm_to_vmem [thread:$0]  (!%p25396_p11), %s25392_s30, 1024, %s25394_s6, %s25407_s29, %s26826_s5, %s26826_s5, %s26825_s10  }
  0x66   : > { %s210_s7 = sand.u32 1, %s25217_s18   ;;  %s25109_s28 = scalar_lea.hbm %s25403_s9, 1024 }
  0x67   : > { %s25442_s8 = scalar_lea.sflag [#allocation6], %s210_s7  ;;  %p25110_p4 = scmp.ne.s32.totalorder %s25403_s9, %s25109_s28 }
  0x68   : > { %s25114_s12 = scalar_lea.hbm %s26805_s1, 2048  ;;  %p25115_p3 = scmp.lt.u32.totalorder %s25403_s9, %s26805_s1 }
  0x69   : > { %p25112_p5 = pnand %p25110_p4, %p25081_p0  ;;  %p25116_p7 = scmp.lt.u32.totalorder %s25114_s12, %s25109_s28 }
  0x6a   : > { %p25118_p12 = scmp.lt.u32.totalorder %s25109_s28, %s25403_s9 }
  0x6b   : > { %p25113_p2 = pneg %p25112_p5  ;;  %p25117_p9 = por %p25116_p7, %p25115_p3 }
  0x6d   : > { %p25119_p1 = por %p25118_p12, %p25117_p9 }
  0x6f   : > { %p25120_p13 = pnand %p25119_p1, %p25113_p2 }
  0x71   : > { %25123 = shalt.err (!%p25120_p13)
}
  0x72   : > { %s25124_s30 = scalar_lea.vmem %s25439_s27, 1024  ;;  %s25224_s6 = smov [#allocation5]  }
  0x73   : > { %p25125_p6 = scmp.ne.s32.totalorder %s25439_s27, %s25124_s30  ;;  %s25129_s29 = sshll.u32 %s25224_s6, 4  ;;  %s25130_s29 = int_to_ptr.vmem [resolvable:$false] %s25129_s29 }
  0x74   : > { %s25131_s0 = scalar_lea.vmem %s25130_s29, 2048  ;;  %p25132_p5 = scmp.lt.s32.totalorder %s25439_s27, %s25130_s29 }
  0x75   : > { %p25127_p10 = pnand %p25125_p6, %p25081_p0  ;;  %p25133_p3 = scmp.lt.s32.totalorder %s25131_s0, %s25124_s30 }
  0x77   : > { %p25128_p4 = pneg %p25127_p10  ;;  %p25134_p7 = por %p25133_p3, %p25132_p5 }
  0x79   : > { %p25135_p9 = pnand %p25134_p7, %p25128_p4 }
  0x7b   : > { %25138 = shalt.err (!%p25135_p9)
}
  0x7c   : > { %24958 = dma.hbm_to_vmem [thread:$0]  (!%p25396_p11), %s25403_s9, 1024, %s25439_s27, %s25442_s8, %s26826_s5, %s26826_s5, %s26825_s10  }
  0x7d   : > { %234 = sbr.rel (%p25293_p8) target bundleno = 1739 (0x6cb), region = 36  ;;  %s25474_s7 = sand.u32 (!%p25293_p8), 1, %s25209_s16  }
  0x7e   : > { %s20893_s28 = sshll.u32 (!%p25293_p8), %s25474_s7, 6  ;;  %s237_s20 = scalar_lea.sflag (!%p25293_p8), [#allocation3], %s25474_s7 }
  0x7f   : > { %s25478_s11 = scalar_lea.vmem (!%p25293_p8), [#allocation2], %s20893_s28  ;;  %p26827_p0 = scmp.ne.s32.totalorder (!%p25293_p8), %s26817_s21, 0 }
  0x84   : > { %25184 = dma.done.wait (%p26827_p0), %s237_s20, 1024  }
  0x85   : > { %25186 = vsyncadd (%p26827_p0), %s237_s20, 4294966272  ;;  %s245_s25 = sand.u32 1, %s25274_s19   ;;  %s25485_s9 = scalar_lea.vmem [#allocation5], %s20893_s28 }
  0x86   : > { %s246_s23 = scalar_lea.sflag [#allocation6], %s245_s25 }
  0x87   : > { %25188 = dma.done.wait (%p26827_p0), %s246_s23, 1024  }
  0x88   : > { %25190 = vsyncadd (%p26827_p0), %s246_s23, 4294966272  ;;  %p26828_p8 = scmp.eq.s32.totalorder %s25274_s19, 0 }
  0x8a   : > { %25192 = dma.done.wait (%p26828_p8), [#allocation6], 256   ;;  %p26829_p11 = pmov %p26828_p8 }
  0x8b   : > { %p26830_p2 = pmov %p26828_p8 }
  0x8c   : > { %25194 = vsyncadd (%p26829_p11), [#allocation6], 4294967040 }
  0x8d   : > { %25196 = dma.done.wait (%p26830_p2), [#allocation9], 256   ;;  %p26831_p12 = pmov %p26830_p2 }
  0x8e   : > { %vm298_vm0 = vcmask 130048   ;;  %v292_v0 = vld [vmem:[#allocation8] sm:$0xff]  ;;  %v293_v1 = vld [vmem:[#allocation8 + $0x8] sm:$0xff]  ;;  %v25500_v2 = vld [vmem:[%s25478_s11] sm:$0xff]  ;;  %s20897_s21 = sshll.u32 %s25474_s7, 2  ;;  %s20922_s24 = sshll.u32 %s25274_s19, 6 }
  0x8f   : > { %25198 = vsyncadd (%p26831_p12), [#allocation9], 4294967040  ;;  %v306_v3 = vand.u32 4294901760, %v292_v0  ;;  %v309_v4 = vand.u32 4294901760, %v293_v1  ;;  %v25503_v5 = vld [vmem:[%s25485_s9] sm:$0xff]  ;;  %v300_v6 = vsel %vm298_vm0, %v25500_v2, 0  ;;  %v2325_v46 = vmul.f32 %v25500_v2, %v25500_v2  ;;  %s26759_s29 = scalar_lea.hbm %s26808_s4, %s20922_s24 }
  0x90   : > { %v25508_v7 = vld [vmem:[%s25478_s11 + $0x8] sm:$0xff]  ;;  %v372_v8 = vand.u32 4294901760, %v300_v6  ;;  %v25512_v9 = vmul.f32 %v25503_v5, %v25500_v2  ;;  %v1316_v34 = vsel %vm298_vm0, %v25503_v5, 0  ;;  %v3337_v60 = vmul.f32 %v25503_v5, %v25503_v5  ;;  %s26644_s10 = scalar_lea.vmem [#allocation10], %s20897_s21  ;;  %s20751_s28 = scalar_lea.sflag [#allocation4], %s25474_s7 }
  0x91   : > { %v25515_v10 = vld [vmem:[%s25485_s9 + $0x8] sm:$0xff]  ;;  %v303_v11 = vsel %vm298_vm0, %v25508_v7, 0  ;;  %v25519_v12 = vpack.c.bf16 %v309_v4, %v306_v3  ;;  %v394_v15 = vsub.f32 %v292_v0, %v306_v3  ;;  %v401_v17 = vsub.f32 %v293_v1, %v309_v4  ;;  %s20764_s12 = sshll.u32 %s26644_s10, 4  ;;  %p26832_p13 = scmp.ne.s32.totalorder %s26822_s13, 0  ;;  %s26754_s12 = int_to_ptr.vmem [resolvable:$true] %s20764_s12 }
  0x92   : > { %v382_v13 = vand.u32 4294901760, %v303_v11  ;;  %v25523_v14 = vmul.f32 %v25515_v10, %v25508_v7  ;;  %v373_v16 = vsub.f32 %v300_v6, %v372_v8  ;;  %v1388_v35 = vand.u32 4294901760, %v1316_v34  ;;  %v290_v6 = vld [vmem:[#allocation7] sm:$0xff]  ;;  %s25139_s20 = scalar_lea.vmem %s26754_s12, 64  ;;  %s25225_s19 = smov [#allocation10]  }
  0x93   : > { %23564 = vmatprep.subr.bf16.mxu0 %v25519_v12  ;;  %v395_v19 = vand.u32 4294901760, %v394_v15  ;;  %v402_v21 = vand.u32 4294901760, %v401_v17  ;;  %v25529_v32 = vpack.c.bf16 %v401_v17, %v394_v15  ;;  %v1319_v36 = vsel %vm298_vm0, %v25515_v10, 0  ;;  %p25140_p1 = scmp.ne.s32.totalorder %s26754_s12, %s25139_s20 }
  0x94   : > { %v383_v18 = vsub.f32 %v303_v11, %v382_v13  ;;  %23566 = vmatpush3.bf16.msra.mxu0 %v25519_v12  ;;  %v374_v20 = vand.u32 4294901760, %v373_v16  ;;  %v1398_v37 = vand.u32 4294901760, %v1319_v36  ;;  %v1389_v38 = vsub.f32 %v1316_v34, %v1388_v35 }
  0x95   : > { %v396_v23 = vsub.f32 %v394_v15, %v395_v19  ;;  %v403_v25 = vsub.f32 %v401_v17, %v402_v21  ;;  %v25536_v33 = vpack.c.bf16 %v402_v21, %v395_v19  ;;  %v2326_v47 = vmul.f32 %v25508_v7, %v25508_v7  ;;  %p25141_p6 = pnand %p25140_p1, %p26832_p13 }
  0x96   : > { %v384_v22 = vand.u32 4294901760, %v383_v18  ;;  %v375_v24 = vsub.f32 %v373_v16, %v374_v20  ;;  %v1399_v39 = vsub.f32 %v1319_v36, %v1398_v37  ;;  %v1390_v40 = vand.u32 4294901760, %v1389_v38 }
  0x97   : > { %v397_v27 = vand.u32 4294901760, %v396_v23  ;;  %v404_v29 = vand.u32 4294901760, %v403_v25  ;;  %v2328_v48 = vsel %vm298_vm0, %v2325_v46, 0  ;;  %v2331_v50 = vsel %vm298_vm0, %v2326_v47, 0  ;;  %v291_v47 = vld [vmem:[#allocation7 + $0x8] sm:$0xff]  ;;  %p25142_p10 = pneg %p25141_p6 }
  0x98   : > { %v385_v26 = vsub.f32 %v383_v18, %v384_v22  ;;  %v376_v28 = vand.u32 4294901760, %v375_v24  ;;  %v1400_v41 = vand.u32 4294901760, %v1399_v39  ;;  %v1391_v42 = vsub.f32 %v1389_v38, %v1390_v40 }
  0x99   : > { %v25527_v31 = vpack.c.bf16 %v404_v29, %v397_v27  ;;  %v2400_v49 = vand.u32 4294901760, %v2328_v48  ;;  %v2410_v51 = vand.u32 4294901760, %v2331_v50  ;;  %v3338_v61 = vmul.f32 %v25515_v10, %v25515_v10 }
  0x9a   : > { %v386_v30 = vand.u32 4294901760, %v385_v26  ;;  %21887 = vmatprep.mubr.f32.mxu0 %v376_v28  ;;  %v1401_v43 = vsub.f32 %v1399_v39, %v1400_v41  ;;  %v1392_v44 = vand.u32 4294901760, %v1391_v42  ;;  %v3340_v62 = vsel %vm298_vm0, %v3337_v60, 0 }
  0x9b   : > { %23568 = vmatprep.subr.bf16.mxu0 %v25527_v31  ;;  %v2401_v52 = vsub.f32 %v2328_v48, %v2400_v49  ;;  %v2411_v53 = vsub.f32 %v2331_v50, %v2410_v51  ;;  %v3412_v63 = vand.u32 4294901760, %v3340_v62  ;;  %v3343_v0 = vsel %vm298_vm0, %v3338_v61, 0  ;;  %v25647_v48 = vld [vmem:[%s25485_s9 + $0x10] sm:$0xff]  ;;  %v25653_v50 = vld [vmem:[%s25485_s9 + $0x18] sm:$0xff] }
  0x9c   : > { %21888 = vmatmul.mubr.f32.vlgmr.msra.gmra.mrb[0].mxu0 %v386_v30  ;;  %v1402_v45 = vand.u32 4294901760, %v1401_v43  ;;  %v3422_v1 = vand.u32 4294901760, %v3343_v0  ;;  %v25621_v30 = vld [vmem:[%s25478_s11 + $0x10] sm:$0xff] }
  0x9d   : > { %21894 = vmatprep.mubr.f32.mxu0 %v372_v8  ;;  %23570 = vmatpush3.bf16.msra.mxu0 %v25527_v31  ;;  %v2402_v54 = vand.u32 4294901760, %v2401_v52  ;;  %v2412_v55 = vand.u32 4294901760, %v2411_v53  ;;  %v3413_v2 = vsub.f32 %v3340_v62, %v3412_v63  ;;  %v5418_v34 = vsel %vm298_vm0, %v25621_v30, 0 }
  0x9e   : > { %23572 = vmatprep.subr.bf16.mxu0 %v25529_v32  ;;  %v3423_v3 = vsub.f32 %v3343_v0, %v3422_v1  ;;  %v5490_v36 = vand.u32 4294901760, %v5418_v34 }
  0x9f   : > { %v2403_v56 = vsub.f32 %v2401_v52, %v2402_v54  ;;  %v2413_v57 = vsub.f32 %v2411_v53, %v2412_v55  ;;  %v3414_v4 = vand.u32 4294901760, %v3413_v2 }
  0xa0   : > { %v3424_v5 = vand.u32 4294901760, %v3423_v3 }
  0xa1   : > { %v2404_v58 = vand.u32 4294901760, %v2403_v56  ;;  %v2414_v59 = vand.u32 4294901760, %v2413_v57  ;;  %v3415_v7 = vsub.f32 %v3413_v2, %v3414_v4 }
  0xa2   : > { %v3425_v11 = vsub.f32 %v3423_v3, %v3424_v5 }
  0xa3   : > { %v3416_v15 = vand.u32 4294901760, %v3415_v7 }
  0xa4   : > { %21895 = vmatmul.mubr.f32.vlgmr.msra.gmra.mrb[0].mxu0 %v382_v13  ;;  %v3426_v17 = vand.u32 4294901760, %v3425_v11 }
  0xa5   : > { %23574 = vmatpush3.bf16.msra.mxu0 %v25529_v32  ;;  %21901 = vmatprep.mubr.f32.mxu0 %v373_v16 }
  0xa6   : > { %23576 = vmatprep.subr.bf16.mxu0 %v25519_v12 }
  0xac   : > { %21902 = vmatmul.mubr.f32.vlgmr.msra.gmra.mrb[0].mxu0 %v383_v18 }
  0xad   : > { %23578 = vmatpush3.bf16.msra.mxu0 %v25519_v12  ;;  %21908 = vmatprep.mubr.f32.mxu0 %v374_v20  ;;  %v4352_v20 = vsel %vm298_vm0, %v25512_v9, 0 }
  0xae   : > { %23580 = vmatprep.subr.bf16.mxu0 %v25536_v33  ;;  %v4424_v21 = vand.u32 4294901760, %v4352_v20 }
  0xb0   : > { %v4425_v24 = vsub.f32 %v4352_v20, %v4424_v21 }
  0xb2   : > { %v4426_v26 = vand.u32 4294901760, %v4425_v24 }
  0xb4   : > { %21909 = vmatmul.mubr.f32.vlgmr.msra.gmra.mrb[0].mxu0 %v384_v22  ;;  %v4355_v22 = vsel %vm298_vm0, %v25523_v14, 0  ;;  %v4427_v9 = vsub.f32 %v4425_v24, %v4426_v26 }
  0xb5   : > { %23582 = vmatpush3.bf16.msra.mxu0 %v25536_v33  ;;  %21915 = vmatprep.mubr.f32.mxu0 %v372_v8  ;;  %v4434_v23 = vand.u32 4294901760, %v4355_v22 }
  0xb6   : > { %23584 = vmatprep.subr.bf16.mxu0 %v25519_v12  ;;  %v4428_v28 = vand.u32 4294901760, %v4427_v9 }
  0xb7   : > { %v4435_v25 = vsub.f32 %v4355_v22, %v4434_v23 }
  0xb9   : > { %v4436_v27 = vand.u32 4294901760, %v4435_v25 }
  0xbb   : > { %v4437_v14 = vsub.f32 %v4435_v25, %v4436_v27 }
  0xbc   : > { %21916 = vmatmul.mubr.f32.vlgmr.msra.gmra.mrb[0].mxu0 %v382_v13 }
  0xbd   : > { %23586 = vmatpush3.bf16.msra.mxu0 %v25519_v12  ;;  %21922 = vmatprep.mubr.f32.mxu0 %v372_v8  ;;  %v808_v8 = vsel %vm298_vm0, %v290_v6, 0  ;;  %v4438_v29 = vand.u32 4294901760, %v4437_v14 }
  0xbe   : > { %23612 = vmatprep.subr.bf16.mxu0 %v25519_v12  ;;  %v25585_v10 = vand.u32 4294901760, %v808_v8 }
  0xc4   : > { %21923 = vmatmul.mubr.f32.vlgmr.msra.gmra.mrb[0].mxu0 %v382_v13  ;;  %v25588_v13 = vsub.f32 %v808_v8, %v25585_v10 }
  0xc5   : > { %23614 = vmatpush3.bf16.msra.mxu0 %v25519_v12  ;;  %21971 = vmatprep.mubr.f32.mxu0 %v1392_v44 }
  0xc6   : > { %23616 = vmatprep.subr.bf16.mxu0 %v25527_v31  ;;  %v25591_v16 = vand.u32 4294901760, %v25588_v13 }
  0xc8   : > { %21972 = vmatmul.mubr.f32.vlgmr.msra.gmra.mrb[2].mxu0 %v1402_v45  ;;  %v883_v18 = vsub.f32 %v25588_v13, %v25591_v16 }
  0xc9   : > { %23618 = vmatpush3.bf16.msra.mxu0 %v25527_v31  ;;  %21978 = vmatprep.mubr.f32.mxu0 %v1388_v35 }
  0xca   : > { %23620 = vmatprep.subr.bf16.mxu0 %v25529_v32  ;;  %v25597_v19 = vand.u32 4294901760, %v883_v18 }
  0xcc   : > { %21929 = vmatprep.mubr.f32.mxu1 %v25597_v19 }
  0xd0   : > { %21979 = vmatmul.mubr.f32.vlgmr.msra.gmra.mrb[2].mxu0 %v1398_v37 }
  0xd1   : > { %23622 = vmatpush3.bf16.msra.mxu0 %v25529_v32  ;;  %21985 = vmatprep.mubr.f32.mxu0 %v1389_v38 }
  0xd2   : > { %23624 = vmatprep.subr.bf16.mxu0 %v25519_v12 }
  0xd8   : > { %21986 = vmatmul.mubr.f32.vlgmr.msra.gmra.mrb[2].mxu0 %v1399_v39  ;;  %v5491_v39 = vsub.f32 %v5418_v34, %v5490_v36 }
  0xd9   : > { %23626 = vmatpush3.bf16.msra.mxu0 %v25519_v12  ;;  %21992 = vmatprep.mubr.f32.mxu0 %v1390_v40 }
  0xda   : > { %23628 = vmatprep.subr.bf16.mxu0 %v25536_v33 }
  0xe0   : > { %21993 = vmatmul.mubr.f32.vlgmr.msra.gmra.mrb[2].mxu0 %v1400_v41  ;;  %v5492_v41 = vand.u32 4294901760, %v5491_v39 }
  0xe1   : > { %23630 = vmatpush3.bf16.msra.mxu0 %v25536_v33  ;;  %21999 = vmatprep.mubr.f32.mxu0 %v1388_v35 }
  0xe2   : > { %23632 = vmatprep.subr.bf16.mxu0 %v25519_v12  ;;  %v5493_v43 = vsub.f32 %v5491_v39, %v5492_v41 }
  0xe4   : > { %v5494_v45 = vand.u32 4294901760, %v5493_v43 }
  0xe8   : > { %22000 = vmatmul.mubr.f32.vlgmr.msra.gmra.mrb[2].mxu0 %v1398_v37 }
  0xe9   : > { %23634 = vmatpush3.bf16.msra.mxu0 %v25519_v12  ;;  %22006 = vmatprep.mubr.f32.mxu0 %v1388_v35  ;;  %v25628_v35 = vld [vmem:[%s25478_s11 + $0x18] sm:$0xff] }
  0xea   : > { %23660 = vmatprep.subr.bf16.mxu0 %v25519_v12  ;;  %v7438_v9 = vmul.f32 %v25628_v35, %v25628_v35 }
  0xf0   : > { %22007 = vmatmul.mubr.f32.vlgmr.msra.gmra.mrb[2].mxu0 %v1398_v37  ;;  %v5421_v37 = vsel %vm298_vm0, %v25628_v35, 0 }
  0xf1   : > { %23662 = vmatpush3.bf16.msra.mxu0 %v25519_v12  ;;  %22055 = vmatprep.mubr.f32.mxu0 %v2404_v58  ;;  %v25632_v38 = vand.u32 4294901760, %v5421_v37 }
  0xf2   : > { %23664 = vmatprep.subr.bf16.mxu0 %v25527_v31 }
  0xf3   : > { %v5501_v40 = vsub.f32 %v5421_v37, %v25632_v38 }
  0xf4   : > { %22056 = vmatmul.mubr.f32.vlgmr.msra.gmra.mrb[4].mxu0 %v2414_v59 }
  0xf5   : > { %23666 = vmatpush3.bf16.msra.mxu0 %v25527_v31  ;;  %22062 = vmatprep.mubr.f32.mxu0 %v2400_v49  ;;  %v5502_v42 = vand.u32 4294901760, %v5501_v40 }
  0xf6   : > { %23668 = vmatprep.subr.bf16.mxu0 %v25529_v32 }
  0xf7   : > { %v5503_v44 = vsub.f32 %v5501_v40, %v5502_v42 }
  0xf9   : > { %v5504_v46 = vand.u32 4294901760, %v5503_v44 }
  0xfc   : > { %22063 = vmatmul.mubr.f32.vlgmr.msra.gmra.mrb[4].mxu0 %v2410_v51 }
  0xfd   : > { %23670 = vmatpush3.bf16.msra.mxu0 %v25529_v32  ;;  %22069 = vmatprep.mubr.f32.mxu0 %v2401_v52 }
  0xfe   : > { %23672 = vmatprep.subr.bf16.mxu0 %v25519_v12 }
 0x104   : > { %22070 = vmatmul.mubr.f32.vlgmr.msra.gmra.mrb[4].mxu0 %v2411_v53  ;;  %v6431_v53 = vsel %vm298_vm0, %v25653_v50, 0 }
 0x105   : > { %23674 = vmatpush3.bf16.msra.mxu0 %v25519_v12  ;;  %22076 = vmatprep.mubr.f32.mxu0 %v2402_v54 }
 0x106   : > { %23676 = vmatprep.subr.bf16.mxu0 %v25536_v33 }
 0x10c   : > { %22077 = vmatmul.mubr.f32.vlgmr.msra.gmra.mrb[4].mxu0 %v2412_v55  ;;  %v25663_v55 = vand.u32 4294901760, %v6431_v53 }
 0x10d   : > { %23678 = vmatpush3.bf16.msra.mxu0 %v25536_v33  ;;  %22083 = vmatprep.mubr.f32.mxu0 %v2400_v49 }
 0x10e   : > { %23680 = vmatprep.subr.bf16.mxu0 %v25519_v12  ;;  %v25672_v58 = vsub.f32 %v6431_v53, %v25663_v55 }
 0x110   : > { %v6512_v0 = vand.u32 4294901760, %v25672_v58 }
 0x112   : > { %v6513_v8 = vsub.f32 %v25672_v58, %v6512_v0 }
 0x114   : > { %22084 = vmatmul.mubr.f32.vlgmr.msra.gmra.mrb[4].mxu0 %v2410_v51 }
 0x115   : > { %23682 = vmatpush3.bf16.msra.mxu0 %v25519_v12  ;;  %22090 = vmatprep.mubr.f32.mxu0 %v2400_v49  ;;  %v811_v49 = vsel %vm298_vm0, %v291_v47, 0 }
 0x116   : > { %23708 = vmatprep.subr.bf16.mxu0 %v25519_v12  ;;  %v25657_v52 = vand.u32 4294901760, %v811_v49 }
 0x118   : > { %v25667_v56 = vsub.f32 %v811_v49, %v25657_v52 }
 0x11a   : > { %v25675_v59 = vand.u32 4294901760, %v25667_v56 }
 0x11c   : > { %22091 = vmatmul.mubr.f32.vlgmr.msra.gmra.mrb[4].mxu0 %v2410_v51  ;;  %v6428_v51 = vsel %vm298_vm0, %v25647_v48, 0 }
 0x11d   : > { %23710 = vmatpush3.bf16.msra.mxu0 %v25519_v12  ;;  %22139 = vmatprep.mubr.f32.mxu0 %v3416_v15  ;;  %v25661_v54 = vand.u32 4294901760, %v6428_v51 }
 0x11e   : > { %23712 = vmatprep.subr.bf16.mxu0 %v25527_v31 }
 0x11f   : > { %v6501_v57 = vsub.f32 %v6428_v51, %v25661_v54 }
 0x120   : > { %22140 = vmatmul.mubr.f32.vlgmr.msra.gmra.mrb[6].mxu0 %v3426_v17 }
 0x121   : > { %23714 = vmatpush3.bf16.msra.mxu0 %v25527_v31  ;;  %22146 = vmatprep.mubr.f32.mxu0 %v3412_v63  ;;  %v6502_v60 = vand.u32 4294901760, %v6501_v57 }
 0x122   : > { %23716 = vmatprep.subr.bf16.mxu0 %v25529_v32 }
 0x128   : > { %22147 = vmatmul.mubr.f32.vlgmr.msra.gmra.mrb[6].mxu0 %v3422_v1 }
 0x129   : > { %23718 = vmatpush3.bf16.msra.mxu0 %v25529_v32  ;;  %22153 = vmatprep.mubr.f32.mxu0 %v3413_v2  ;;  %v893_v2 = vsub.f32 %v25667_v56, %v25675_v59 }
 0x12a   : > { %23720 = vmatprep.subr.bf16.mxu0 %v25519_v12 }
 0x12b   : > { %v25684_v15 = vand.u32 4294901760, %v893_v2  ;;  %v8450_v2 = vmul.f32 %v25653_v50, %v25653_v50 }
 0x130   : > { %22154 = vmatmul.mubr.f32.vlgmr.msra.gmra.mrb[6].mxu0 %v3423_v3 }
 0x131   : > { %23722 = vmatpush3.bf16.msra.mxu0 %v25519_v12  ;;  %22160 = vmatprep.mubr.f32.mxu0 %v3414_v4  ;;  %v6503_v4 = vsub.f32 %v6501_v57, %v6502_v60 }
 0x132   : > { %23724 = vmatprep.subr.bf16.mxu0 %v25536_v33 }
 0x133   : > { %v6504_v20 = vand.u32 4294901760, %v6503_v4  ;;  %v8455_v4 = vsel %vm298_vm0, %v8450_v2, 0 }
 0x138   : > { %22161 = vmatmul.mubr.f32.vlgmr.msra.gmra.mrb[6].mxu0 %v3424_v5 }
 0x139   : > { %23726 = vmatpush3.bf16.msra.mxu0 %v25536_v33  ;;  %22167 = vmatprep.mubr.f32.mxu0 %v3412_v63 }
 0x13a   : > { %23728 = vmatprep.subr.bf16.mxu0 %v25519_v12 }
 0x140   : > { %22168 = vmatmul.mubr.f32.vlgmr.msra.gmra.mrb[6].mxu0 %v3422_v1 }
 0x141   : > { %23730 = vmatpush3.bf16.msra.mxu0 %v25519_v12  ;;  %22174 = vmatprep.mubr.f32.mxu0 %v3412_v63 }
 0x142   : > { %23756 = vmatprep.subr.bf16.mxu0 %v25519_v12 }
 0x148   : > { %22175 = vmatmul.mubr.f32.vlgmr.msra.gmra.mrb[6].mxu0 %v3422_v1 }
 0x149   : > { %23758 = vmatpush3.bf16.msra.mxu0 %v25519_v12  ;;  %22223 = vmatprep.mubr.f32.mxu0 %v4428_v28  ;;  %v7443_v28 = vsel %vm298_vm0, %v7438_v9, 0 }
 0x14a   : > { %23760 = vmatprep.subr.bf16.mxu0 %v25527_v31  ;;  %v25714_v34 = vand.u32 4294901760, %v7443_v28 }
 0x14c   : > { %22224 = vmatmul.mubr.f32.vlgmr.msra.gmra.mrb[8].mxu0 %v4438_v29  ;;  %v25723_v37 = vsub.f32 %v7443_v28, %v25714_v34 }
 0x14d   : > { %23762 = vmatpush3.bf16.msra.mxu0 %v25527_v31  ;;  %22230 = vmatprep.mubr.f32.mxu0 %v4424_v21 }
 0x14e   : > { %23764 = vmatprep.subr.bf16.mxu0 %v25529_v32 }
 0x154   : > { %22231 = vmatmul.mubr.f32.vlgmr.msra.gmra.mrb[8].mxu0 %v4434_v23 }
 0x155   : > { %23766 = vmatpush3.bf16.msra.mxu0 %v25529_v32  ;;  %22237 = vmatprep.mubr.f32.mxu0 %v4425_v24 }
 0x156   : > { %23768 = vmatprep.subr.bf16.mxu0 %v25519_v12 }
 0x15c   : > { %22238 = vmatmul.mubr.f32.vlgmr.msra.gmra.mrb[8].mxu0 %v4435_v25 }
 0x15d   : > { %23770 = vmatpush3.bf16.msra.mxu0 %v25519_v12  ;;  %22244 = vmatprep.mubr.f32.mxu0 %v4426_v26 }
 0x15e   : > { %23772 = vmatprep.subr.bf16.mxu0 %v25536_v33 }
 0x164   : > { %22245 = vmatmul.mubr.f32.vlgmr.msra.gmra.mrb[8].mxu0 %v4436_v27  ;;  %v7437_v27 = vmul.f32 %v25621_v30, %v25621_v30 }
 0x165   : > { %23774 = vmatpush3.bf16.msra.mxu0 %v25536_v33  ;;  %22251 = vmatprep.mubr.f32.mxu0 %v4424_v21 }
 0x166   : > { %23776 = vmatprep.subr.bf16.mxu0 %v25519_v12  ;;  %v7440_v14 = vsel %vm298_vm0, %v7437_v27, 0 }
 0x167   : > { %v25712_v29 = vand.u32 4294901760, %v7440_v14 }
 0x16c   : > { %22252 = vmatmul.mubr.f32.vlgmr.msra.gmra.mrb[8].mxu0 %v4434_v23 }
 0x16d   : > { %23778 = vmatpush3.bf16.msra.mxu0 %v25519_v12  ;;  %22258 = vmatprep.mubr.f32.mxu0 %v4424_v21 }
 0x16e   : > { %23804 = vmatprep.subr.bf16.mxu0 %v25519_v12 }
 0x174   : > { %22259 = vmatmul.mubr.f32.vlgmr.msra.gmra.mrb[8].mxu0 %v4434_v23  ;;  %v6514_v23 = vand.u32 4294901760, %v6513_v8 }
 0x175   : > { %23806 = vmatpush3.bf16.msra.mxu0 %v25519_v12  ;;  %22307 = vmatprep.mubr.f32.mxu0 %v5494_v45 }
 0x176   : > { %23808 = vmatprep.subr.bf16.mxu0 %v25527_v31 }
 0x178   : > { %22308 = vmatmul.mubr.f32.vlgmr.msra.gmra.mrb[10].mxu0 %v5504_v46 }
 0x179   : > { %23810 = vmatpush3.bf16.msra.mxu0 %v25527_v31  ;;  %22314 = vmatprep.mubr.f32.mxu0 %v5490_v36 }
 0x17a   : > { %23812 = vmatprep.subr.bf16.mxu0 %v25529_v32 }
 0x180   : > { %22315 = vmatmul.mubr.f32.vlgmr.msra.gmra.mrb[10].mxu0 %v25632_v38 }
 0x181   : > { %23814 = vmatpush3.bf16.msra.mxu0 %v25529_v32  ;;  %22321 = vmatprep.mubr.f32.mxu0 %v5491_v39 }
 0x182   : > { %23816 = vmatprep.subr.bf16.mxu0 %v25519_v12 }
 0x188   : > { %22322 = vmatmul.mubr.f32.vlgmr.msra.gmra.mrb[10].mxu0 %v5501_v40 }
 0x189   : > { %23818 = vmatpush3.bf16.msra.mxu0 %v25519_v12  ;;  %22328 = vmatprep.mubr.f32.mxu0 %v5492_v41 }
 0x18a   : > { %23820 = vmatprep.subr.bf16.mxu0 %v25536_v33 }
 0x190   : > { %22329 = vmatmul.mubr.f32.vlgmr.msra.gmra.mrb[10].mxu0 %v5502_v42  ;;  %v7524_v42 = vand.u32 4294901760, %v25723_v37 }
 0x191   : > { %23822 = vmatpush3.bf16.msra.mxu0 %v25536_v33  ;;  %22335 = vmatprep.mubr.f32.mxu0 %v5490_v36 }
 0x192   : > { %23824 = vmatprep.subr.bf16.mxu0 %v25519_v12  ;;  %v7525_v51 = vsub.f32 %v25723_v37, %v7524_v42 }
 0x197   : > { %v21924_v61 = vpop.f32.mrb[0].mxu0 }
 0x198   : > { %v817_v62 = vand.u32 4294901760, %v21924_v61  ;;  %v797_v63 = vpop.f32.mrb[1].mxu0  ;;  %22336 = vmatmul.mubr.f32.vlgmr.msra.gmra.mrb[10].mxu0 %v25632_v38 }
 0x199   : > { %v814_v1 = vand.u32 4294901760, %v797_v63  ;;  %23826 = vmatpush3.bf16.msra.mxu0 %v25519_v12  ;;  %22342 = vmatprep.mubr.f32.mxu0 %v5490_v36  ;;  %v25720_v36 = vsub.f32 %v7440_v14, %v25712_v29 }
 0x19a   : > { %v909_v3 = vsub.f32 %v21924_v61, %v817_v62  ;;  %23852 = vmatprep.subr.bf16.mxu0 %v25519_v12 }
 0x19b   : > { %v23587_v5 = vpack.c.bf16 %v817_v62, %v814_v1  ;;  %v902_v6 = vsub.f32 %v797_v63, %v814_v1  ;;  %v7526_v62 = vand.u32 4294901760, %v7525_v51 }
 0x19c   : > { %v910_v7 = vand.u32 4294901760, %v909_v3 }
 0x19d   : > { %v903_v11 = vand.u32 4294901760, %v902_v6  ;;  %23588 = vmatprep.subr.bf16.mxu1 %v23587_v5  ;;  %v23595_v17 = vpack.c.bf16 %v909_v3, %v902_v6 }
 0x19e   : > { %v911_v18 = vsub.f32 %v909_v3, %v910_v7  ;;  %23590 = vmatpush3.bf16.msra.mxu1 %v23587_v5 }
 0x19f   : > { %v904_v21 = vsub.f32 %v902_v6, %v903_v11  ;;  %v23603_v22 = vpack.c.bf16 %v910_v7, %v903_v11  ;;  %v25773_v6 = vand.u32 4294901760, %v8455_v4 }
 0x1a0   : > { %22343 = vmatmul.mubr.f32.vlgmr.msra.gmra.mrb[10].mxu0 %v25632_v38  ;;  %v912_v24 = vand.u32 4294901760, %v911_v18  ;;  %v7514_v38 = vand.u32 4294901760, %v25720_v36 }
 0x1a1   : > { %21930 = vmatmul.mubr.f32.vlgmr.msra.gmra.mrb[0].mxu1 %v25684_v15  ;;  %23854 = vmatpush3.bf16.msra.mxu0 %v25519_v12  ;;  %v905_v25 = vand.u32 4294901760, %v904_v21  ;;  %v25782_v8 = vsub.f32 %v8455_v4, %v25773_v6 }
 0x1a2   : > { %22391 = vmatprep.mubr.f32.mxu0 %v6504_v20  ;;  %21936 = vmatprep.mubr.f32.mxu1 %v25585_v10  ;;  %v7515_v45 = vsub.f32 %v25720_v36, %v7514_v38 }
 0x1a3   : > { %v23591_v26 = vpack.c.bf16 %v912_v24, %v905_v25  ;;  %23856 = vmatprep.subr.bf16.mxu0 %v25527_v31  ;;  %v8536_v21 = vand.u32 4294901760, %v25782_v8 }
 0x1a4   : > { %22392 = vmatmul.mubr.f32.vlgmr.msra.gmra.mrb[12].mxu0 %v6514_v23 }
 0x1a5   : > { %23592 = vmatprep.subr.bf16.mxu1 %v23591_v26  ;;  %23858 = vmatpush3.bf16.msra.mxu0 %v25527_v31  ;;  %v8537_v9 = vsub.f32 %v25782_v8, %v8536_v21 }
 0x1a6   : > { %23594 = vmatpush3.bf16.msra.mxu1 %v23591_v26  ;;  %22398 = vmatprep.mubr.f32.mxu0 %v25661_v54 }
 0x1a7   : > { %23596 = vmatprep.subr.bf16.mxu1 %v23595_v17  ;;  %23860 = vmatprep.subr.bf16.mxu0 %v25529_v32 }
 0x1a9   : > { %21937 = vmatmul.mubr.f32.vlgmr.msra.gmra.mrb[0].mxu1 %v25657_v52 }
 0x1aa   : > { %23598 = vmatpush3.bf16.msra.mxu1 %v23595_v17  ;;  %21943 = vmatprep.mubr.f32.mxu1 %v25588_v13 }
 0x1ab   : > { %23600 = vmatprep.subr.bf16.mxu1 %v23587_v5 }
 0x1ac   : > { %22399 = vmatmul.mubr.f32.vlgmr.msra.gmra.mrb[12].mxu0 %v25663_v55 }
 0x1ad   : > { %23862 = vmatpush3.bf16.msra.mxu0 %v25529_v32  ;;  %22405 = vmatprep.mubr.f32.mxu0 %v6501_v57 }
 0x1ae   : > { %23864 = vmatprep.subr.bf16.mxu0 %v25519_v12 }
 0x1b1   : > { %21944 = vmatmul.mubr.f32.vlgmr.msra.gmra.mrb[0].mxu1 %v25667_v56 }
 0x1b2   : > { %23602 = vmatpush3.bf16.msra.mxu1 %v23587_v5  ;;  %21950 = vmatprep.mubr.f32.mxu1 %v25591_v16 }
 0x1b3   : > { %23604 = vmatprep.subr.bf16.mxu1 %v23603_v22 }
 0x1b4   : > { %22406 = vmatmul.mubr.f32.vlgmr.msra.gmra.mrb[12].mxu0 %v25672_v58 }
 0x1b5   : > { %23866 = vmatpush3.bf16.msra.mxu0 %v25519_v12  ;;  %22412 = vmatprep.mubr.f32.mxu0 %v6502_v60 }
 0x1b6   : > { %23868 = vmatprep.subr.bf16.mxu0 %v25536_v33 }
 0x1b9   : > { %21951 = vmatmul.mubr.f32.vlgmr.msra.gmra.mrb[0].mxu1 %v25675_v59 }
 0x1ba   : > { %23606 = vmatpush3.bf16.msra.mxu1 %v23603_v22  ;;  %21957 = vmatprep.mubr.f32.mxu1 %v25585_v10 }
 0x1bb   : > { %23608 = vmatprep.subr.bf16.mxu1 %v23587_v5 }
 0x1bc   : > { %22413 = vmatmul.mubr.f32.vlgmr.msra.gmra.mrb[12].mxu0 %v6512_v0 }
 0x1bd   : > { %23870 = vmatpush3.bf16.msra.mxu0 %v25536_v33  ;;  %22419 = vmatprep.mubr.f32.mxu0 %v25661_v54 }
 0x1be   : > { %23872 = vmatprep.subr.bf16.mxu0 %v25519_v12 }
 0x1c1   : > { %21958 = vmatmul.mubr.f32.vlgmr.msra.gmra.mrb[0].mxu1 %v25657_v52 }
 0x1c2   : > { %23610 = vmatpush3.bf16.msra.mxu1 %v23587_v5  ;;  %21964 = vmatprep.mubr.f32.mxu1 %v25585_v10 }
 0x1c3   : > { %v22008_v39 = vpop.f32.mrb[2].mxu0 }
 0x1c4   : > { %v1827_v40 = vand.u32 4294901760, %v22008_v39  ;;  %v1813_v41 = vpop.f32.mrb[3].mxu0  ;;  %22420 = vmatmul.mubr.f32.vlgmr.msra.gmra.mrb[12].mxu0 %v25663_v55 }
 0x1c5   : > { %v1824_v43 = vand.u32 4294901760, %v1813_v41  ;;  %23874 = vmatpush3.bf16.msra.mxu0 %v25519_v12  ;;  %22426 = vmatprep.mubr.f32.mxu0 %v25661_v54  ;;  %v7516_v54 = vand.u32 4294901760, %v7515_v45 }
 0x1c6   : > { %v1919_v44 = vsub.f32 %v22008_v39, %v1827_v40  ;;  %23900 = vmatprep.subr.bf16.mxu0 %v25519_v12  ;;  %v8538_v39 = vand.u32 4294901760, %v8537_v9 }
 0x1c7   : > { %v25734_v46 = vpack.c.bf16 %v1827_v40, %v1824_v43  ;;  %v1912_v47 = vsub.f32 %v1813_v41, %v1824_v43  ;;  %v9462_v43 = vmul.f32 %v25653_v50, %v25628_v35 }
 0x1c8   : > { %v1920_v49 = vand.u32 4294901760, %v1919_v44 }
 0x1c9   : > { %v1913_v53 = vand.u32 4294901760, %v1912_v47  ;;  %21965 = vmatmul.mubr.f32.vlgmr.msra.gmra.mrb[0].mxu1 %v25657_v52  ;;  %23636 = vmatprep.subr.bf16.mxu1 %v25734_v46  ;;  %v23643_v57 = vpack.c.bf16 %v1919_v44, %v1912_v47  ;;  %v9467_v45 = vsel %vm298_vm0, %v9462_v43, 0 }
 0x1ca   : > { %v1921_v58 = vsub.f32 %v1919_v44, %v1920_v49  ;;  %23638 = vmatpush3.bf16.msra.mxu1 %v25734_v46  ;;  %22013 = vmatprep.mubr.f32.mxu1 %v25597_v19 }
 0x1cb   : > { %v1914_v60 = vsub.f32 %v1912_v47, %v1913_v53  ;;  %v23651_v61 = vpack.c.bf16 %v1920_v49, %v1913_v53 }
 0x1cc   : > { %22427 = vmatmul.mubr.f32.vlgmr.msra.gmra.mrb[12].mxu0 %v25663_v55  ;;  %v1922_v63 = vand.u32 4294901760, %v1921_v58  ;;  %v8449_v55 = vmul.f32 %v25647_v48, %v25647_v48 }
 0x1cd   : > { %22014 = vmatmul.mubr.f32.vlgmr.msra.gmra.mrb[2].mxu1 %v25684_v15  ;;  %23902 = vmatpush3.bf16.msra.mxu0 %v25519_v12  ;;  %v1915_v0 = vand.u32 4294901760, %v1914_v60 }
 0x1ce   : > { %22475 = vmatprep.mubr.f32.mxu0 %v7516_v54  ;;  %22020 = vmatprep.mubr.f32.mxu1 %v25585_v10  ;;  %v8452_v3 = vsel %vm298_vm0, %v8449_v55, 0 }
 0x1cf   : > { %v23639_v1 = vpack.c.bf16 %v1922_v63, %v1915_v0  ;;  %23904 = vmatprep.subr.bf16.mxu0 %v25527_v31  ;;  %v25770_v5 = vand.u32 4294901760, %v8452_v3 }
 0x1d0   : > { %22476 = vmatmul.mubr.f32.vlgmr.msra.gmra.mrb[14].mxu0 %v7526_v62 }
 0x1d1   : > { %23640 = vmatprep.subr.bf16.mxu1 %v23639_v1  ;;  %23906 = vmatpush3.bf16.msra.mxu0 %v25527_v31  ;;  %v25779_v7 = vsub.f32 %v8452_v3, %v25770_v5 }
 0x1d2   : > { %23642 = vmatpush3.bf16.msra.mxu1 %v23639_v1  ;;  %22482 = vmatprep.mubr.f32.mxu0 %v25712_v29 }
 0x1d3   : > { %23644 = vmatprep.subr.bf16.mxu1 %v23643_v57  ;;  %23908 = vmatprep.subr.bf16.mxu0 %v25529_v32  ;;  %v8526_v11 = vand.u32 4294901760, %v25779_v7 }
 0x1d5   : > { %22021 = vmatmul.mubr.f32.vlgmr.msra.gmra.mrb[2].mxu1 %v25657_v52  ;;  %v8527_v24 = vsub.f32 %v25779_v7, %v8526_v11 }
 0x1d6   : > { %23646 = vmatpush3.bf16.msra.mxu1 %v23643_v57  ;;  %22027 = vmatprep.mubr.f32.mxu1 %v25588_v13 }
 0x1d7   : > { %23648 = vmatprep.subr.bf16.mxu1 %v25734_v46 }
 0x1d8   : > { %22483 = vmatmul.mubr.f32.vlgmr.msra.gmra.mrb[14].mxu0 %v25714_v34 }
 0x1d9   : > { %23910 = vmatpush3.bf16.msra.mxu0 %v25529_v32  ;;  %22489 = vmatprep.mubr.f32.mxu0 %v25720_v36 }
 0x1da   : > { %23912 = vmatprep.subr.bf16.mxu0 %v25519_v12 }
 0x1dd   : > { %22028 = vmatmul.mubr.f32.vlgmr.msra.gmra.mrb[2].mxu1 %v25667_v56 }
 0x1de   : > { %23650 = vmatpush3.bf16.msra.mxu1 %v25734_v46  ;;  %22034 = vmatprep.mubr.f32.mxu1 %v25591_v16 }
 0x1df   : > { %23652 = vmatprep.subr.bf16.mxu1 %v23651_v61 }
 0x1e0   : > { %22490 = vmatmul.mubr.f32.vlgmr.msra.gmra.mrb[14].mxu0 %v25723_v37 }
 0x1e1   : > { %23914 = vmatpush3.bf16.msra.mxu0 %v25519_v12  ;;  %22496 = vmatprep.mubr.f32.mxu0 %v7514_v38 }
 0x1e2   : > { %23916 = vmatprep.subr.bf16.mxu0 %v25536_v33 }
 0x1e5   : > { %22035 = vmatmul.mubr.f32.vlgmr.msra.gmra.mrb[2].mxu1 %v25675_v59 }
 0x1e6   : > { %23654 = vmatpush3.bf16.msra.mxu1 %v23651_v61  ;;  %22041 = vmatprep.mubr.f32.mxu1 %v25585_v10 }
 0x1e7   : > { %23656 = vmatprep.subr.bf16.mxu1 %v25734_v46 }
 0x1e8   : > { %22497 = vmatmul.mubr.f32.vlgmr.msra.gmra.mrb[14].mxu0 %v7524_v42 }
 0x1e9   : > { %23918 = vmatpush3.bf16.msra.mxu0 %v25536_v33  ;;  %22503 = vmatprep.mubr.f32.mxu0 %v25712_v29 }
 0x1ea   : > { %23920 = vmatprep.subr.bf16.mxu0 %v25519_v12 }
 0x1ed   : > { %22042 = vmatmul.mubr.f32.vlgmr.msra.gmra.mrb[2].mxu1 %v25657_v52 }
 0x1ee   : > { %23658 = vmatpush3.bf16.msra.mxu1 %v25734_v46  ;;  %22048 = vmatprep.mubr.f32.mxu1 %v25585_v10 }
 0x1ef   : > { %v22092_v17 = vpop.f32.mrb[4].mxu0 }
 0x1f0   : > { %v2839_v18 = vand.u32 4294901760, %v22092_v17  ;;  %v2825_v20 = vpop.f32.mrb[5].mxu0  ;;  %22504 = vmatmul.mubr.f32.vlgmr.msra.gmra.mrb[14].mxu0 %v25714_v34 }
 0x1f1   : > { %v2836_v22 = vand.u32 4294901760, %v2825_v20  ;;  %23922 = vmatpush3.bf16.msra.mxu0 %v25519_v12  ;;  %22510 = vmatprep.mubr.f32.mxu0 %v25712_v29  ;;  %v8528_v29 = vand.u32 4294901760, %v8527_v24 }
 0x1f2   : > { %v2931_v23 = vsub.f32 %v22092_v17, %v2839_v18  ;;  %23948 = vmatprep.subr.bf16.mxu0 %v25519_v12  ;;  %v25886_v17 = vld [vmem:[%s25478_s11 + $0x28] sm:$0xff] }
 0x1f3   : > { %v25794_v25 = vpack.c.bf16 %v2839_v18, %v2836_v22  ;;  %v2924_v26 = vsub.f32 %v2825_v20, %v2836_v22  ;;  %v10534_v20 = vsel %vm298_vm0, %v25886_v17, 0 }
 0x1f4   : > { %v2932_v27 = vand.u32 4294901760, %v2931_v23  ;;  %v25897_v22 = vand.u32 4294901760, %v10534_v20 }
 0x1f5   : > { %v2925_v14 = vand.u32 4294901760, %v2924_v26  ;;  %22049 = vmatmul.mubr.f32.vlgmr.msra.gmra.mrb[2].mxu1 %v25657_v52  ;;  %23684 = vmatprep.subr.bf16.mxu1 %v25794_v25  ;;  %v23691_v28 = vpack.c.bf16 %v2931_v23, %v2924_v26 }
 0x1f6   : > { %v2933_v36 = vsub.f32 %v2931_v23, %v2932_v27  ;;  %23686 = vmatpush3.bf16.msra.mxu1 %v25794_v25  ;;  %22097 = vmatprep.mubr.f32.mxu1 %v25597_v19  ;;  %v25906_v24 = vsub.f32 %v10534_v20, %v25897_v22 }
 0x1f7   : > { %v2926_v37 = vsub.f32 %v2924_v26, %v2925_v14  ;;  %v23699_v38 = vpack.c.bf16 %v2932_v27, %v2925_v14 }
 0x1f8   : > { %22511 = vmatmul.mubr.f32.vlgmr.msra.gmra.mrb[14].mxu0 %v25714_v34  ;;  %v2934_v40 = vand.u32 4294901760, %v2933_v36  ;;  %v9461_v34 = vmul.f32 %v25647_v48, %v25621_v30  ;;  %v25833_v48 = vand.u32 4294901760, %v9467_v45  ;;  %v10615_v14 = vand.u32 4294901760, %v25906_v24 }
 0x1f9   : > { %22098 = vmatmul.mubr.f32.vlgmr.msra.gmra.mrb[4].mxu1 %v25684_v15  ;;  %23950 = vmatpush3.bf16.msra.mxu0 %v25519_v12  ;;  %v2927_v41 = vand.u32 4294901760, %v2926_v37 }
 0x1fa   : > { %22559 = vmatprep.mubr.f32.mxu0 %v8528_v29  ;;  %22104 = vmatprep.mubr.f32.mxu1 %v25585_v10  ;;  %v9464_v44 = vsel %vm298_vm0, %v9461_v34, 0  ;;  %v25842_v50 = vsub.f32 %v9467_v45, %v25833_v48 }
 0x1fb   : > { %v23687_v42 = vpack.c.bf16 %v2934_v40, %v2927_v41  ;;  %23952 = vmatprep.subr.bf16.mxu0 %v25527_v31  ;;  %v25830_v30 = vand.u32 4294901760, %v9464_v44  ;;  %v10616_v40 = vsub.f32 %v25906_v24, %v10615_v14 }
 0x1fc   : > { %22560 = vmatmul.mubr.f32.vlgmr.msra.gmra.mrb[16].mxu0 %v8538_v39  ;;  %v9548_v53 = vand.u32 4294901760, %v25842_v50 }
 0x1fd   : > { %23688 = vmatprep.subr.bf16.mxu1 %v23687_v42  ;;  %23954 = vmatpush3.bf16.msra.mxu0 %v25527_v31  ;;  %v25839_v35 = vsub.f32 %v9464_v44, %v25830_v30 }
 0x1fe   : > { %23690 = vmatpush3.bf16.msra.mxu1 %v23687_v42  ;;  %22566 = vmatprep.mubr.f32.mxu0 %v25770_v5  ;;  %v9549_v63 = vsub.f32 %v25842_v50, %v9548_v53 }
 0x1ff   : > { %23692 = vmatprep.subr.bf16.mxu1 %v23691_v28  ;;  %23956 = vmatprep.subr.bf16.mxu0 %v25529_v32  ;;  %v9538_v46 = vand.u32 4294901760, %v25839_v35 }
 0x201   : > { %22105 = vmatmul.mubr.f32.vlgmr.msra.gmra.mrb[4].mxu1 %v25657_v52  ;;  %v9539_v54 = vsub.f32 %v25839_v35, %v9538_v46 }
 0x202   : > { %23694 = vmatpush3.bf16.msra.mxu1 %v23691_v28  ;;  %22111 = vmatprep.mubr.f32.mxu1 %v25588_v13 }
 0x203   : > { %23696 = vmatprep.subr.bf16.mxu1 %v25794_v25  ;;  %v9540_v2 = vand.u32 4294901760, %v9539_v54 }
 0x204   : > { %22567 = vmatmul.mubr.f32.vlgmr.msra.gmra.mrb[16].mxu0 %v25773_v6 }
 0x205   : > { %23958 = vmatpush3.bf16.msra.mxu0 %v25529_v32  ;;  %22573 = vmatprep.mubr.f32.mxu0 %v25779_v7 }
 0x206   : > { %23960 = vmatprep.subr.bf16.mxu0 %v25519_v12 }
 0x209   : > { %22112 = vmatmul.mubr.f32.vlgmr.msra.gmra.mrb[4].mxu1 %v25667_v56 }
 0x20a   : > { %23698 = vmatpush3.bf16.msra.mxu1 %v25794_v25  ;;  %22118 = vmatprep.mubr.f32.mxu1 %v25591_v16 }
 0x20b   : > { %23700 = vmatprep.subr.bf16.mxu1 %v23699_v38 }
 0x20c   : > { %22574 = vmatmul.mubr.f32.vlgmr.msra.gmra.mrb[16].mxu0 %v25782_v8 }
 0x20d   : > { %23962 = vmatpush3.bf16.msra.mxu0 %v25519_v12  ;;  %22580 = vmatprep.mubr.f32.mxu0 %v8526_v11 }
 0x20e   : > { %23964 = vmatprep.subr.bf16.mxu0 %v25536_v33 }
 0x211   : > { %22119 = vmatmul.mubr.f32.vlgmr.msra.gmra.mrb[4].mxu1 %v25675_v59 }
 0x212   : > { %23702 = vmatpush3.bf16.msra.mxu1 %v23699_v38  ;;  %22125 = vmatprep.mubr.f32.mxu1 %v25585_v10 }
 0x213   : > { %23704 = vmatprep.subr.bf16.mxu1 %v25794_v25 }
 0x214   : > { %22581 = vmatmul.mubr.f32.vlgmr.msra.gmra.mrb[16].mxu0 %v8536_v21 }
 0x215   : > { %23966 = vmatpush3.bf16.msra.mxu0 %v25536_v33  ;;  %22587 = vmatprep.mubr.f32.mxu0 %v25770_v5 }
 0x216   : > { %23968 = vmatprep.subr.bf16.mxu0 %v25519_v12 }
 0x219   : > { %22126 = vmatmul.mubr.f32.vlgmr.msra.gmra.mrb[4].mxu1 %v25657_v52 }
 0x21a   : > { %23706 = vmatpush3.bf16.msra.mxu1 %v25794_v25  ;;  %22132 = vmatprep.mubr.f32.mxu1 %v25585_v10 }
 0x21b   : > { %v22176_v47 = vpop.f32.mrb[6].mxu0 }
 0x21c   : > { %v3851_v49 = vand.u32 4294901760, %v22176_v47  ;;  %v3837_v51 = vpop.f32.mrb[7].mxu0  ;;  %22588 = vmatmul.mubr.f32.vlgmr.msra.gmra.mrb[16].mxu0 %v25773_v6 }
 0x21d   : > { %v3848_v57 = vand.u32 4294901760, %v3837_v51  ;;  %23970 = vmatpush3.bf16.msra.mxu0 %v25519_v12  ;;  %22594 = vmatprep.mubr.f32.mxu0 %v25770_v5  ;;  %v9550_v5 = vand.u32 4294901760, %v9549_v63 }
 0x21e   : > { %v3943_v58 = vsub.f32 %v22176_v47, %v3851_v49  ;;  %23996 = vmatprep.subr.bf16.mxu0 %v25519_v12  ;;  %v25950_v47 = vld [vmem:[%s25485_s9 + $0x28] sm:$0xff] }
 0x21f   : > { %v25854_v60 = vpack.c.bf16 %v3851_v49, %v3848_v57  ;;  %v3936_v61 = vsub.f32 %v3837_v51, %v3848_v57  ;;  %v11544_v51 = vsel %vm298_vm0, %v25950_v47, 0 }
 0x220   : > { %v3944_v62 = vand.u32 4294901760, %v3943_v58  ;;  %v25961_v57 = vand.u32 4294901760, %v11544_v51 }
 0x221   : > { %v3937_v0 = vand.u32 4294901760, %v3936_v61  ;;  %22133 = vmatmul.mubr.f32.vlgmr.msra.gmra.mrb[4].mxu1 %v25657_v52  ;;  %23732 = vmatprep.subr.bf16.mxu1 %v25854_v60  ;;  %v23739_v1 = vpack.c.bf16 %v3943_v58, %v3936_v61 }
 0x222   : > { %v3945_v55 = vsub.f32 %v3943_v58, %v3944_v62  ;;  %23734 = vmatpush3.bf16.msra.mxu1 %v25854_v60  ;;  %22181 = vmatprep.mubr.f32.mxu1 %v25597_v19  ;;  %v25970_v54 = vsub.f32 %v11544_v51, %v25961_v57 }
 0x223   : > { %v3938_v3 = vsub.f32 %v3936_v61, %v3937_v0  ;;  %v23747_v4 = vpack.c.bf16 %v3944_v62, %v3937_v0 }
 0x224   : > { %22595 = vmatmul.mubr.f32.vlgmr.msra.gmra.mrb[16].mxu0 %v25773_v6  ;;  %v3946_v7 = vand.u32 4294901760, %v3945_v55  ;;  %v25881_v6 = vld [vmem:[%s25478_s11 + $0x20] sm:$0xff]  ;;  %v11625_v0 = vand.u32 4294901760, %v25970_v54 }
 0x225   : > { %22182 = vmatmul.mubr.f32.vlgmr.msra.gmra.mrb[6].mxu1 %v25684_v15  ;;  %23998 = vmatpush3.bf16.msra.mxu0 %v25519_v12  ;;  %v3939_v8 = vand.u32 4294901760, %v3938_v3  ;;  %v10531_v18 = vsel %vm298_vm0, %v25881_v6, 0 }
 0x226   : > { %22643 = vmatprep.mubr.f32.mxu0 %v9540_v2  ;;  %22188 = vmatprep.mubr.f32.mxu1 %v25585_v10  ;;  %v25894_v21 = vand.u32 4294901760, %v10531_v18 }
 0x227   : > { %v23735_v11 = vpack.c.bf16 %v3946_v7, %v3939_v8  ;;  %24000 = vmatprep.subr.bf16.mxu0 %v25527_v31  ;;  %v11626_v7 = vsub.f32 %v25970_v54, %v11625_v0 }
 0x228   : > { %22644 = vmatmul.mubr.f32.vlgmr.msra.gmra.mrb[18].mxu0 %v9550_v5  ;;  %v25903_v23 = vsub.f32 %v10531_v18, %v25894_v21 }
 0x229   : > { %23736 = vmatprep.subr.bf16.mxu1 %v23735_v11  ;;  %24002 = vmatpush3.bf16.msra.mxu0 %v25527_v31 }
 0x22a   : > { %23738 = vmatpush3.bf16.msra.mxu1 %v23735_v11  ;;  %22650 = vmatprep.mubr.f32.mxu0 %v25830_v30  ;;  %v10605_v25 = vand.u32 4294901760, %v25903_v23 }
 0x22b   : > { %23740 = vmatprep.subr.bf16.mxu1 %v23739_v1  ;;  %24004 = vmatprep.subr.bf16.mxu0 %v25529_v32 }
 0x22c   : > { %v10606_v29 = vsub.f32 %v25903_v23, %v10605_v25 }
 0x22d   : > { %22189 = vmatmul.mubr.f32.vlgmr.msra.gmra.mrb[6].mxu1 %v25657_v52 }
 0x22e   : > { %23742 = vmatpush3.bf16.msra.mxu1 %v23739_v1  ;;  %22195 = vmatprep.mubr.f32.mxu1 %v25588_v13  ;;  %v10607_v43 = vand.u32 4294901760, %v10606_v29 }
 0x22f   : > { %23744 = vmatprep.subr.bf16.mxu1 %v25854_v60 }
 0x230   : > { %22651 = vmatmul.mubr.f32.vlgmr.msra.gmra.mrb[18].mxu0 %v25833_v48 }
 0x231   : > { %24006 = vmatpush3.bf16.msra.mxu0 %v25529_v32  ;;  %22657 = vmatprep.mubr.f32.mxu0 %v25839_v35 }
 0x232   : > { %24008 = vmatprep.subr.bf16.mxu0 %v25519_v12 }
 0x235   : > { %22196 = vmatmul.mubr.f32.vlgmr.msra.gmra.mrb[6].mxu1 %v25667_v56 }
 0x236   : > { %23746 = vmatpush3.bf16.msra.mxu1 %v25854_v60  ;;  %22202 = vmatprep.mubr.f32.mxu1 %v25591_v16 }
 0x237   : > { %23748 = vmatprep.subr.bf16.mxu1 %v23747_v4 }
 0x238   : > { %22658 = vmatmul.mubr.f32.vlgmr.msra.gmra.mrb[18].mxu0 %v25842_v50 }
 0x239   : > { %24010 = vmatpush3.bf16.msra.mxu0 %v25519_v12  ;;  %22664 = vmatprep.mubr.f32.mxu0 %v9538_v46 }
 0x23a   : > { %24012 = vmatprep.subr.bf16.mxu0 %v25536_v33 }
 0x23d   : > { %22203 = vmatmul.mubr.f32.vlgmr.msra.gmra.mrb[6].mxu1 %v25675_v59 }
 0x23e   : > { %23750 = vmatpush3.bf16.msra.mxu1 %v23747_v4  ;;  %22209 = vmatprep.mubr.f32.mxu1 %v25585_v10 }
 0x23f   : > { %23752 = vmatprep.subr.bf16.mxu1 %v25854_v60 }
 0x240   : > { %22665 = vmatmul.mubr.f32.vlgmr.msra.gmra.mrb[18].mxu0 %v9548_v53 }
 0x241   : > { %24014 = vmatpush3.bf16.msra.mxu0 %v25536_v33  ;;  %22671 = vmatprep.mubr.f32.mxu0 %v25830_v30 }
 0x242   : > { %24016 = vmatprep.subr.bf16.mxu0 %v25519_v12 }
 0x245   : > { %22210 = vmatmul.mubr.f32.vlgmr.msra.gmra.mrb[6].mxu1 %v25657_v52 }
 0x246   : > { %23754 = vmatpush3.bf16.msra.mxu1 %v25854_v60  ;;  %22216 = vmatprep.mubr.f32.mxu1 %v25585_v10 }
 0x247   : > { %v22260_v26 = vpop.f32.mrb[8].mxu0 }
 0x248   : > { %v4863_v27 = vand.u32 4294901760, %v22260_v26  ;;  %v4849_v9 = vpop.f32.mrb[9].mxu0  ;;  %22672 = vmatmul.mubr.f32.vlgmr.msra.gmra.mrb[18].mxu0 %v25833_v48 }
 0x249   : > { %v4860_v28 = vand.u32 4294901760, %v4849_v9  ;;  %24018 = vmatpush3.bf16.msra.mxu0 %v25519_v12  ;;  %22678 = vmatprep.mubr.f32.mxu0 %v25830_v30  ;;  %v10617_v30 = vand.u32 4294901760, %v10616_v40 }
 0x24a   : > { %v4955_v36 = vsub.f32 %v22260_v26, %v4863_v27  ;;  %24044 = vmatprep.subr.bf16.mxu0 %v25519_v12 }
 0x24b   : > { %v25918_v37 = vpack.c.bf16 %v4863_v27, %v4860_v28  ;;  %v4948_v38 = vsub.f32 %v4849_v9, %v4860_v28  ;;  %v12551_v9 = vmul.f32 %v25886_v17, %v25886_v17 }
 0x24c   : > { %v4956_v39 = vand.u32 4294901760, %v4955_v36 }
 0x24d   : > { %v4949_v41 = vand.u32 4294901760, %v4948_v38  ;;  %22217 = vmatmul.mubr.f32.vlgmr.msra.gmra.mrb[6].mxu1 %v25657_v52  ;;  %23780 = vmatprep.subr.bf16.mxu1 %v25918_v37  ;;  %v23787_v42 = vpack.c.bf16 %v4955_v36, %v4948_v38  ;;  %v12556_v28 = vsel %vm298_vm0, %v12551_v9, 0 }
 0x24e   : > { %v4957_v34 = vsub.f32 %v4955_v36, %v4956_v39  ;;  %23782 = vmatpush3.bf16.msra.mxu1 %v25918_v37  ;;  %22265 = vmatprep.mubr.f32.mxu1 %v25597_v19  ;;  %v26021_v29 = vand.u32 4294901760, %v12556_v28 }
 0x24f   : > { %v4950_v44 = vsub.f32 %v4948_v38, %v4949_v41  ;;  %v23795_v45 = vpack.c.bf16 %v4956_v39, %v4949_v41 }
 0x250   : > { %22679 = vmatmul.mubr.f32.vlgmr.msra.gmra.mrb[18].mxu0 %v25833_v48  ;;  %v4958_v35 = vand.u32 4294901760, %v4957_v34  ;;  %v25945_v48 = vld [vmem:[%s25485_s9 + $0x20] sm:$0xff]  ;;  %v26032_v39 = vsub.f32 %v12556_v28, %v26021_v29 }
 0x251   : > { %22266 = vmatmul.mubr.f32.vlgmr.msra.gmra.mrb[8].mxu1 %v25684_v15  ;;  %24046 = vmatpush3.bf16.msra.mxu0 %v25519_v12  ;;  %v4951_v50 = vand.u32 4294901760, %v4950_v44  ;;  %v11541_v49 = vsel %vm298_vm0, %v25945_v48, 0 }
 0x252   : > { %22727 = vmatprep.mubr.f32.mxu0 %v10607_v43  ;;  %22272 = vmatprep.mubr.f32.mxu1 %v25585_v10  ;;  %v25958_v53 = vand.u32 4294901760, %v11541_v49  ;;  %v12637_v44 = vand.u32 4294901760, %v26032_v39 }
 0x253   : > { %v23783_v46 = vpack.c.bf16 %v4958_v35, %v4951_v50  ;;  %24048 = vmatprep.subr.bf16.mxu0 %v25527_v31 }
 0x254   : > { %22728 = vmatmul.mubr.f32.vlgmr.msra.gmra.mrb[20].mxu0 %v10617_v30  ;;  %v25967_v58 = vsub.f32 %v11541_v49, %v25958_v53  ;;  %v12638_v51 = vsub.f32 %v26032_v39, %v12637_v44 }
 0x255   : > { %23784 = vmatprep.subr.bf16.mxu1 %v23783_v46  ;;  %24050 = vmatpush3.bf16.msra.mxu0 %v25527_v31 }
 0x256   : > { %23786 = vmatpush3.bf16.msra.mxu1 %v23783_v46  ;;  %22734 = vmatprep.mubr.f32.mxu0 %v25894_v21  ;;  %v11615_v60 = vand.u32 4294901760, %v25967_v58 }
 0x257   : > { %23788 = vmatprep.subr.bf16.mxu1 %v23787_v42  ;;  %24052 = vmatprep.subr.bf16.mxu0 %v25529_v32 }
 0x258   : > { %v11616_v2 = vsub.f32 %v25967_v58, %v11615_v60 }
 0x259   : > { %22273 = vmatmul.mubr.f32.vlgmr.msra.gmra.mrb[8].mxu1 %v25657_v52 }
 0x25a   : > { %23790 = vmatpush3.bf16.msra.mxu1 %v23787_v42  ;;  %22279 = vmatprep.mubr.f32.mxu1 %v25588_v13  ;;  %v11617_v20 = vand.u32 4294901760, %v11616_v2  ;;  %v13563_v2 = vmul.f32 %v25950_v47, %v25950_v47 }
 0x25b   : > { %23792 = vmatprep.subr.bf16.mxu1 %v25918_v37 }
 0x25c   : > { %22735 = vmatmul.mubr.f32.vlgmr.msra.gmra.mrb[20].mxu0 %v25897_v22 }
 0x25d   : > { %24054 = vmatpush3.bf16.msra.mxu0 %v25529_v32  ;;  %22741 = vmatprep.mubr.f32.mxu0 %v25903_v23 }
 0x25e   : > { %24056 = vmatprep.subr.bf16.mxu0 %v25519_v12 }
 0x261   : > { %22280 = vmatmul.mubr.f32.vlgmr.msra.gmra.mrb[8].mxu1 %v25667_v56 }
 0x262   : > { %23794 = vmatpush3.bf16.msra.mxu1 %v25918_v37  ;;  %22286 = vmatprep.mubr.f32.mxu1 %v25591_v16 }
 0x263   : > { %23796 = vmatprep.subr.bf16.mxu1 %v23795_v45 }
 0x264   : > { %22742 = vmatmul.mubr.f32.vlgmr.msra.gmra.mrb[20].mxu0 %v25906_v24  ;;  %v11627_v24 = vand.u32 4294901760, %v11626_v7 }
 0x265   : > { %24058 = vmatpush3.bf16.msra.mxu0 %v25519_v12  ;;  %22748 = vmatprep.mubr.f32.mxu0 %v10605_v25 }
 0x266   : > { %24060 = vmatprep.subr.bf16.mxu0 %v25536_v33 }
 0x269   : > { %22287 = vmatmul.mubr.f32.vlgmr.msra.gmra.mrb[8].mxu1 %v25675_v59 }
 0x26a   : > { %23798 = vmatpush3.bf16.msra.mxu1 %v23795_v45  ;;  %22293 = vmatprep.mubr.f32.mxu1 %v25585_v10 }
 0x26b   : > { %23800 = vmatprep.subr.bf16.mxu1 %v25918_v37 }
 0x26c   : > { %22749 = vmatmul.mubr.f32.vlgmr.msra.gmra.mrb[20].mxu0 %v10615_v14 }
 0x26d   : > { %24062 = vmatpush3.bf16.msra.mxu0 %v25536_v33  ;;  %22755 = vmatprep.mubr.f32.mxu0 %v25894_v21 }
 0x26e   : > { %24064 = vmatprep.subr.bf16.mxu0 %v25519_v12 }
 0x271   : > { %22294 = vmatmul.mubr.f32.vlgmr.msra.gmra.mrb[8].mxu1 %v25657_v52 }
 0x272   : > { %23802 = vmatpush3.bf16.msra.mxu1 %v25918_v37  ;;  %22300 = vmatprep.mubr.f32.mxu1 %v25585_v10 }
 0x273   : > { %v22344_v61 = vpop.f32.mrb[10].mxu0 }
 0x274   : > { %v5929_v62 = vand.u32 4294901760, %v22344_v61  ;;  %v5915_v63 = vpop.f32.mrb[11].mxu0  ;;  %22756 = vmatmul.mubr.f32.vlgmr.msra.gmra.mrb[20].mxu0 %v25897_v22 }
 0x275   : > { %v5926_v1 = vand.u32 4294901760, %v5915_v63  ;;  %24066 = vmatpush3.bf16.msra.mxu0 %v25519_v12  ;;  %22762 = vmatprep.mubr.f32.mxu0 %v25894_v21 }
 0x276   : > { %v6021_v55 = vsub.f32 %v22344_v61, %v5929_v62  ;;  %24092 = vmatprep.subr.bf16.mxu0 %v25519_v12 }
 0x277   : > { %v25982_v3 = vpack.c.bf16 %v5929_v62, %v5926_v1  ;;  %v6014_v4 = vsub.f32 %v5915_v63, %v5926_v1  ;;  %v12639_v63 = vand.u32 4294901760, %v12638_v51 }
 0x278   : > { %v6022_v5 = vand.u32 4294901760, %v6021_v55 }
 0x279   : > { %v6015_v8 = vand.u32 4294901760, %v6014_v4  ;;  %22301 = vmatmul.mubr.f32.vlgmr.msra.gmra.mrb[8].mxu1 %v25657_v52  ;;  %23828 = vmatprep.subr.bf16.mxu1 %v25982_v3  ;;  %v23835_v11 = vpack.c.bf16 %v6021_v55, %v6014_v4 }
 0x27a   : > { %v6023_v18 = vsub.f32 %v6021_v55, %v6022_v5  ;;  %23830 = vmatpush3.bf16.msra.mxu1 %v25982_v3  ;;  %22349 = vmatprep.mubr.f32.mxu1 %v25597_v19 }
 0x27b   : > { %v6016_v21 = vsub.f32 %v6014_v4, %v6015_v8  ;;  %v23843_v23 = vpack.c.bf16 %v6022_v5, %v6015_v8  ;;  %v13568_v4 = vsel %vm298_vm0, %v13563_v2, 0 }
 0x27c   : > { %22763 = vmatmul.mubr.f32.vlgmr.msra.gmra.mrb[20].mxu0 %v25897_v22  ;;  %v6024_v25 = vand.u32 4294901760, %v6023_v18  ;;  %v12550_v22 = vmul.f32 %v25881_v6, %v25881_v6  ;;  %v26085_v7 = vand.u32 4294901760, %v13568_v4 }
 0x27d   : > { %22350 = vmatmul.mubr.f32.vlgmr.msra.gmra.mrb[10].mxu1 %v25684_v15  ;;  %24094 = vmatpush3.bf16.msra.mxu0 %v25519_v12  ;;  %v6017_v26 = vand.u32 4294901760, %v6016_v21 }
 0x27e   : > { %22811 = vmatprep.mubr.f32.mxu0 %v11617_v20  ;;  %22356 = vmatprep.mubr.f32.mxu1 %v25585_v10  ;;  %v12553_v14 = vsel %vm298_vm0, %v12550_v22, 0  ;;  %v26094_v18 = vsub.f32 %v13568_v4, %v26085_v7 }
 0x27f   : > { %v23831_v27 = vpack.c.bf16 %v6024_v25, %v6017_v26  ;;  %24096 = vmatprep.subr.bf16.mxu0 %v25527_v31  ;;  %v26018_v36 = vand.u32 4294901760, %v12553_v14 }
 0x280   : > { %22812 = vmatmul.mubr.f32.vlgmr.msra.gmra.mrb[22].mxu0 %v11627_v24 }
 0x281   : > { %23832 = vmatprep.subr.bf16.mxu1 %v23831_v27  ;;  %24098 = vmatpush3.bf16.msra.mxu0 %v25527_v31  ;;  %v26027_v37 = vsub.f32 %v12553_v14, %v26018_v36 }
 0x282   : > { %23834 = vmatpush3.bf16.msra.mxu1 %v23831_v27  ;;  %22818 = vmatprep.mubr.f32.mxu0 %v25958_v53 }
 0x283   : > { %23836 = vmatprep.subr.bf16.mxu1 %v23835_v11  ;;  %24100 = vmatprep.subr.bf16.mxu0 %v25529_v32  ;;  %v12627_v41 = vand.u32 4294901760, %v26027_v37 }
 0x285   : > { %22357 = vmatmul.mubr.f32.vlgmr.msra.gmra.mrb[10].mxu1 %v25657_v52  ;;  %v12628_v35 = vsub.f32 %v26027_v37, %v12627_v41 }
 0x286   : > { %23838 = vmatpush3.bf16.msra.mxu1 %v23835_v11  ;;  %22363 = vmatprep.mubr.f32.mxu1 %v25588_v13 }
 0x287   : > { %23840 = vmatprep.subr.bf16.mxu1 %v25982_v3 }
 0x288   : > { %22819 = vmatmul.mubr.f32.vlgmr.msra.gmra.mrb[22].mxu0 %v25961_v57 }
 0x289   : > { %24102 = vmatpush3.bf16.msra.mxu0 %v25529_v32  ;;  %22825 = vmatprep.mubr.f32.mxu0 %v25967_v58 }
 0x28a   : > { %24104 = vmatprep.subr.bf16.mxu0 %v25519_v12 }
 0x28d   : > { %22364 = vmatmul.mubr.f32.vlgmr.msra.gmra.mrb[10].mxu1 %v25667_v56 }
 0x28e   : > { %23842 = vmatpush3.bf16.msra.mxu1 %v25982_v3  ;;  %22370 = vmatprep.mubr.f32.mxu1 %v25591_v16 }
 0x28f   : > { %23844 = vmatprep.subr.bf16.mxu1 %v23843_v23 }
 0x290   : > { %22826 = vmatmul.mubr.f32.vlgmr.msra.gmra.mrb[22].mxu0 %v25970_v54 }
 0x291   : > { %24106 = vmatpush3.bf16.msra.mxu0 %v25519_v12  ;;  %22832 = vmatprep.mubr.f32.mxu0 %v11615_v60 }
 0x292   : > { %24108 = vmatprep.subr.bf16.mxu0 %v25536_v33 }
 0x295   : > { %22371 = vmatmul.mubr.f32.vlgmr.msra.gmra.mrb[10].mxu1 %v25675_v59 }
 0x296   : > { %23846 = vmatpush3.bf16.msra.mxu1 %v23843_v23  ;;  %22377 = vmatprep.mubr.f32.mxu1 %v25585_v10 }
 0x297   : > { %23848 = vmatprep.subr.bf16.mxu1 %v25982_v3 }
 0x298   : > { %22833 = vmatmul.mubr.f32.vlgmr.msra.gmra.mrb[22].mxu0 %v11625_v0 }
 0x299   : > { %24110 = vmatpush3.bf16.msra.mxu0 %v25536_v33  ;;  %22839 = vmatprep.mubr.f32.mxu0 %v25958_v53 }
 0x29a   : > { %24112 = vmatprep.subr.bf16.mxu0 %v25519_v12 }
 0x29c   : > { %v26029_v38 = vpop.f32.mrb[0].mxu1 }
 0x29d   : > { %v26034_v40 = vpop.f32.mrb[1].mxu1  ;;  %22378 = vmatmul.mubr.f32.vlgmr.msra.gmra.mrb[10].mxu1 %v25657_v52  ;;  %v26098_v20 = vmul.f32 %v26029_v38, %v26029_v38 }
 0x29e   : > { %23850 = vmatpush3.bf16.msra.mxu1 %v25982_v3  ;;  %22384 = vmatprep.mubr.f32.mxu1 %v25585_v10  ;;  %v26108_v25 = vmul.f32 %v26034_v40, %v26034_v40 }
 0x29f   : > { %v22428_v42 = vpop.f32.mrb[12].mxu0 }
 0x2a0   : > { %v6939_v34 = vand.u32 4294901760, %v22428_v42  ;;  %v6925_v43 = vpop.f32.mrb[13].mxu0  ;;  %22840 = vmatmul.mubr.f32.vlgmr.msra.gmra.mrb[22].mxu0 %v25961_v57 }
 0x2a1   : > { %v6936_v45 = vand.u32 4294901760, %v6925_v43  ;;  %24114 = vmatpush3.bf16.msra.mxu0 %v25519_v12  ;;  %22846 = vmatprep.mubr.f32.mxu0 %v25958_v53  ;;  %v12629_v53 = vand.u32 4294901760, %v12628_v35 }
 0x2a2   : > { %v7031_v30 = vsub.f32 %v22428_v42, %v6939_v34  ;;  %24140 = vmatprep.subr.bf16.mxu0 %v25519_v12 }
 0x2a3   : > { %v26046_v50 = vpack.c.bf16 %v6939_v34, %v6936_v45  ;;  %v7024_v46 = vsub.f32 %v6925_v43, %v6936_v45 }
 0x2a4   : > { %v7032_v49 = vand.u32 4294901760, %v7031_v30 }
 0x2a5   : > { %v7025_v58 = vand.u32 4294901760, %v7024_v46  ;;  %22385 = vmatmul.mubr.f32.vlgmr.msra.gmra.mrb[10].mxu1 %v25657_v52  ;;  %23876 = vmatprep.subr.bf16.mxu1 %v26046_v50  ;;  %v23883_v54 = vpack.c.bf16 %v7031_v30, %v7024_v46 }
 0x2a6   : > { %v7033_v60 = vsub.f32 %v7031_v30, %v7032_v49  ;;  %23878 = vmatpush3.bf16.msra.mxu1 %v26046_v50  ;;  %22433 = vmatprep.mubr.f32.mxu1 %v25597_v19 }
 0x2a7   : > { %v7026_v61 = vsub.f32 %v7024_v46, %v7025_v58  ;;  %v23891_v62 = vpack.c.bf16 %v7032_v49, %v7025_v58 }
 0x2a8   : > { %22847 = vmatmul.mubr.f32.vlgmr.msra.gmra.mrb[22].mxu0 %v25961_v57  ;;  %v7034_v0 = vand.u32 4294901760, %v7033_v60  ;;  %v13562_v57 = vmul.f32 %v25945_v48, %v25945_v48 }
 0x2a9   : > { %22434 = vmatmul.mubr.f32.vlgmr.msra.gmra.mrb[12].mxu1 %v25684_v15  ;;  %24142 = vmatpush3.bf16.msra.mxu0 %v25519_v12  ;;  %v7027_v1 = vand.u32 4294901760, %v7026_v61 }
 0x2aa   : > { %22895 = vmatprep.mubr.f32.mxu0 %v12629_v53  ;;  %22440 = vmatprep.mubr.f32.mxu1 %v25585_v10  ;;  %v13565_v3 = vsel %vm298_vm0, %v13562_v57, 0  ;;  %v14575_v53 = vmul.f32 %v25950_v47, %v25886_v17 }
 0x2ab   : > { %v23879_v55 = vpack.c.bf16 %v7034_v0, %v7027_v1  ;;  %24144 = vmatprep.subr.bf16.mxu0 %v25527_v31  ;;  %v26082_v5 = vand.u32 4294901760, %v13565_v3 }
 0x2ac   : > { %22896 = vmatmul.mubr.f32.vlgmr.msra.gmra.mrb[24].mxu0 %v12639_v63 }
 0x2ad   : > { %23880 = vmatprep.subr.bf16.mxu1 %v23879_v55  ;;  %24146 = vmatpush3.bf16.msra.mxu0 %v25527_v31  ;;  %v26091_v8 = vsub.f32 %v13565_v3, %v26082_v5 }
 0x2ae   : > { %23882 = vmatpush3.bf16.msra.mxu1 %v23879_v55  ;;  %22902 = vmatprep.mubr.f32.mxu0 %v26018_v36 }
 0x2af   : > { %23884 = vmatprep.subr.bf16.mxu1 %v23883_v54  ;;  %24148 = vmatprep.subr.bf16.mxu0 %v25529_v32  ;;  %v13639_v22 = vand.u32 4294901760, %v26091_v8 }
 0x2b1   : > { %22441 = vmatmul.mubr.f32.vlgmr.msra.gmra.mrb[12].mxu1 %v25657_v52  ;;  %v13640_v42 = vsub.f32 %v26091_v8, %v13639_v22 }
 0x2b2   : > { %23886 = vmatpush3.bf16.msra.mxu1 %v23883_v54  ;;  %22447 = vmatprep.mubr.f32.mxu1 %v25588_v13 }
 0x2b3   : > { %23888 = vmatprep.subr.bf16.mxu1 %v26046_v50 }
 0x2b4   : > { %22903 = vmatmul.mubr.f32.vlgmr.msra.gmra.mrb[24].mxu0 %v26021_v29 }
 0x2b5   : > { %24150 = vmatpush3.bf16.msra.mxu0 %v25529_v32  ;;  %22909 = vmatprep.mubr.f32.mxu0 %v26027_v37 }
 0x2b6   : > { %24152 = vmatprep.subr.bf16.mxu0 %v25519_v12 }
 0x2b9   : > { %22448 = vmatmul.mubr.f32.vlgmr.msra.gmra.mrb[12].mxu1 %v25667_v56 }
 0x2ba   : > { %23890 = vmatpush3.bf16.msra.mxu1 %v26046_v50  ;;  %22454 = vmatprep.mubr.f32.mxu1 %v25591_v16 }
 0x2bb   : > { %23892 = vmatprep.subr.bf16.mxu1 %v23891_v62 }
 0x2bc   : > { %22910 = vmatmul.mubr.f32.vlgmr.msra.gmra.mrb[24].mxu0 %v26032_v39  ;;  %v13649_v39 = vand.u32 4294901760, %v26094_v18 }
 0x2bd   : > { %24154 = vmatpush3.bf16.msra.mxu0 %v25519_v12  ;;  %22916 = vmatprep.mubr.f32.mxu0 %v12627_v41 }
 0x2be   : > { %24156 = vmatprep.subr.bf16.mxu0 %v25536_v33  ;;  %v13650_v45 = vsub.f32 %v26094_v18, %v13649_v39 }
 0x2c0   : > { %v13651_v51 = vand.u32 4294901760, %v13650_v45 }
 0x2c1   : > { %22455 = vmatmul.mubr.f32.vlgmr.msra.gmra.mrb[12].mxu1 %v25675_v59 }
 0x2c2   : > { %23894 = vmatpush3.bf16.msra.mxu1 %v23891_v62  ;;  %22461 = vmatprep.mubr.f32.mxu1 %v25585_v10  ;;  %v14580_v62 = vsel %vm298_vm0, %v14575_v53, 0 }
 0x2c3   : > { %23896 = vmatprep.subr.bf16.mxu1 %v26046_v50 }
 0x2c4   : > { %22917 = vmatmul.mubr.f32.vlgmr.msra.gmra.mrb[24].mxu0 %v12637_v44 }
 0x2c5   : > { %24158 = vmatpush3.bf16.msra.mxu0 %v25536_v33  ;;  %22923 = vmatprep.mubr.f32.mxu0 %v26018_v36 }
 0x2c6   : > { %24160 = vmatprep.subr.bf16.mxu0 %v25519_v12 }
 0x2c8   : > { %v22050_v11 = vpop.f32.mrb[2].mxu1 }
 0x2c9   : > { %v26100_v21 = vmul.f32 %v22050_v11, %v22050_v11  ;;  %v26103_v23 = vmul.f32 %v22050_v11, %v26029_v38  ;;  %v2315_v24 = vpop.f32.mrb[3].mxu1  ;;  %22462 = vmatmul.mubr.f32.vlgmr.msra.gmra.mrb[12].mxu1 %v25657_v52 }
 0x2ca   : > { %v26110_v26 = vmul.f32 %v2315_v24, %v2315_v24  ;;  %v26113_v27 = vmul.f32 %v2315_v24, %v26034_v40  ;;  %23898 = vmatpush3.bf16.msra.mxu1 %v26046_v50  ;;  %22468 = vmatprep.mubr.f32.mxu1 %v25585_v10 }
 0x2cb   : > { %v26120_v9 = vadd.f32 %v26100_v21, %v26098_v20  ;;  %v22512_v14 = vpop.f32.mrb[14].mxu0 }
 0x2cc   : > { %v26124_v28 = vadd.f32 %v26110_v26, %v26108_v25  ;;  %v7951_v37 = vand.u32 4294901760, %v22512_v14  ;;  %v7937_v38 = vpop.f32.mrb[15].mxu0  ;;  %22924 = vmatmul.mubr.f32.vlgmr.msra.gmra.mrb[24].mxu0 %v26021_v29 }
 0x2cd   : > { %v7948_v40 = vand.u32 4294901760, %v7937_v38  ;;  %24162 = vmatpush3.bf16.msra.mxu0 %v25519_v12  ;;  %22930 = vmatprep.mubr.f32.mxu0 %v26018_v36  ;;  %v13641_v36 = vand.u32 4294901760, %v13640_v42 }
 0x2ce   : > { %v8043_v41 = vsub.f32 %v22512_v14, %v7951_v37  ;;  %24188 = vmatprep.subr.bf16.mxu0 %v25519_v12 }
 0x2cf   : > { %v26132_v34 = vpack.c.bf16 %v7951_v37, %v7948_v40  ;;  %v8036_v43 = vsub.f32 %v7937_v38, %v7948_v40 }
 0x2d0   : > { %v8044_v44 = vand.u32 4294901760, %v8043_v41 }
 0x2d1   : > { %v8037_v30 = vand.u32 4294901760, %v8036_v43  ;;  %22469 = vmatmul.mubr.f32.vlgmr.msra.gmra.mrb[12].mxu1 %v25657_v52  ;;  %23924 = vmatprep.subr.bf16.mxu1 %v26132_v34  ;;  %v23931_v35 = vpack.c.bf16 %v8043_v41, %v8036_v43 }
 0x2d2   : > { %v8045_v50 = vsub.f32 %v8043_v41, %v8044_v44  ;;  %23926 = vmatpush3.bf16.msra.mxu1 %v26132_v34  ;;  %22517 = vmatprep.mubr.f32.mxu1 %v25597_v19 }
 0x2d3   : > { %v8038_v46 = vsub.f32 %v8036_v43, %v8037_v30  ;;  %v23939_v49 = vpack.c.bf16 %v8044_v44, %v8037_v30 }
 0x2d4   : > { %22931 = vmatmul.mubr.f32.vlgmr.msra.gmra.mrb[24].mxu0 %v26021_v29  ;;  %v8046_v58 = vand.u32 4294901760, %v8045_v50  ;;  %v14574_v29 = vmul.f32 %v25945_v48, %v25881_v6  ;;  %v26171_v48 = vand.u32 4294901760, %v14580_v62 }
 0x2d5   : > { %22518 = vmatmul.mubr.f32.vlgmr.msra.gmra.mrb[14].mxu1 %v25684_v15  ;;  %24190 = vmatpush3.bf16.msra.mxu0 %v25519_v12  ;;  %v8039_v54 = vand.u32 4294901760, %v8038_v46 }
 0x2d6   : > { %22979 = vmatprep.mubr.f32.mxu0 %v13641_v36  ;;  %22524 = vmatprep.mubr.f32.mxu1 %v25585_v10  ;;  %v14577_v61 = vsel %vm298_vm0, %v14574_v29, 0  ;;  %v26182_v63 = vsub.f32 %v14580_v62, %v26171_v48 }
 0x2d7   : > { %v23927_v60 = vpack.c.bf16 %v8046_v58, %v8039_v54  ;;  %24192 = vmatprep.subr.bf16.mxu0 %v25527_v31  ;;  %v26168_v6 = vand.u32 4294901760, %v14577_v61 }
 0x2d8   : > { %22980 = vmatmul.mubr.f32.vlgmr.msra.gmra.mrb[26].mxu0 %v13651_v51 }
 0x2d9   : > { %23928 = vmatprep.subr.bf16.mxu1 %v23927_v60  ;;  %24194 = vmatpush3.bf16.msra.mxu0 %v25527_v31  ;;  %v26177_v17 = vsub.f32 %v14577_v61, %v26168_v6 }
 0x2da   : > { %23930 = vmatpush3.bf16.msra.mxu1 %v23927_v60  ;;  %22986 = vmatprep.mubr.f32.mxu0 %v26082_v5 }
 0x2db   : > { %23932 = vmatprep.subr.bf16.mxu1 %v23931_v35  ;;  %24196 = vmatprep.subr.bf16.mxu0 %v25529_v32  ;;  %v14651_v57 = vand.u32 4294901760, %v26177_v17 }
 0x2dd   : > { %22525 = vmatmul.mubr.f32.vlgmr.msra.gmra.mrb[14].mxu1 %v25657_v52  ;;  %v14652_v24 = vsub.f32 %v26177_v17, %v14651_v57 }
 0x2de   : > { %23934 = vmatpush3.bf16.msra.mxu1 %v23931_v35  ;;  %22531 = vmatprep.mubr.f32.mxu1 %v25588_v13  ;;  %v26232_v35 = vld [vmem:[%s25478_s11 + $0x38] sm:$0xff] }
 0x2df   : > { %23936 = vmatprep.subr.bf16.mxu1 %v26132_v34  ;;  %v15647_v36 = vsel %vm298_vm0, %v26232_v35, 0 }
 0x2e0   : > { %22987 = vmatmul.mubr.f32.vlgmr.msra.gmra.mrb[26].mxu0 %v26085_v7 }
 0x2e1   : > { %24198 = vmatpush3.bf16.msra.mxu0 %v25529_v32  ;;  %22993 = vmatprep.mubr.f32.mxu0 %v26091_v8  ;;  %v14661_v8 = vand.u32 4294901760, %v26182_v63 }
 0x2e2   : > { %24200 = vmatprep.subr.bf16.mxu0 %v25519_v12 }
 0x2e3   : > { %v14662_v38 = vsub.f32 %v26182_v63, %v14661_v8 }
 0x2e5   : > { %22532 = vmatmul.mubr.f32.vlgmr.msra.gmra.mrb[14].mxu1 %v25667_v56  ;;  %v14663_v43 = vand.u32 4294901760, %v14662_v38 }
 0x2e6   : > { %23938 = vmatpush3.bf16.msra.mxu1 %v26132_v34  ;;  %22538 = vmatprep.mubr.f32.mxu1 %v25591_v16 }
 0x2e7   : > { %23940 = vmatprep.subr.bf16.mxu1 %v23939_v49 }
 0x2e8   : > { %22994 = vmatmul.mubr.f32.vlgmr.msra.gmra.mrb[26].mxu0 %v26094_v18 }
 0x2e9   : > { %24202 = vmatpush3.bf16.msra.mxu0 %v25519_v12  ;;  %23000 = vmatprep.mubr.f32.mxu0 %v13639_v22 }
 0x2ea   : > { %24204 = vmatprep.subr.bf16.mxu0 %v25536_v33 }
 0x2ed   : > { %22539 = vmatmul.mubr.f32.vlgmr.msra.gmra.mrb[14].mxu1 %v25675_v59 }
 0x2ee   : > { %23942 = vmatpush3.bf16.msra.mxu1 %v23939_v49  ;;  %22545 = vmatprep.mubr.f32.mxu1 %v25585_v10  ;;  %v26243_v49 = vand.u32 4294901760, %v15647_v36 }
 0x2ef   : > { %23944 = vmatprep.subr.bf16.mxu1 %v26132_v34 }
 0x2f0   : > { %23001 = vmatmul.mubr.f32.vlgmr.msra.gmra.mrb[26].mxu0 %v13649_v39  ;;  %v26252_v54 = vsub.f32 %v15647_v36, %v26243_v49  ;;  %v5374_v36 = vmul.f32 2.0, %v26103_v23 }
 0x2f1   : > { %24206 = vmatpush3.bf16.msra.mxu0 %v25536_v33  ;;  %23007 = vmatprep.mubr.f32.mxu0 %v26082_v5 }
 0x2f2   : > { %24208 = vmatprep.subr.bf16.mxu0 %v25519_v12 }
 0x2f4   : > { %v26179_v47 = vpop.f32.mrb[4].mxu1 }
 0x2f5   : > { %v5368_v0 = vsub.f32 %v26179_v47, %v26098_v20  ;;  %v26186_v1 = vpop.f32.mrb[5].mxu1  ;;  %22546 = vmatmul.mubr.f32.vlgmr.msra.gmra.mrb[14].mxu1 %v25657_v52  ;;  %v5385_v20 = vadd.f32 0.0001, %v26124_v28 }
 0x2f6   : > { %v5367_v55 = vsub.f32 %v26186_v1, %v26108_v25  ;;  %23946 = vmatpush3.bf16.msra.mxu1 %v26132_v34  ;;  %22552 = vmatprep.mubr.f32.mxu1 %v25585_v10 }
 0x2f7   : > { %v22596_v2 = vpop.f32.mrb[16].mxu0 }
 0x2f8   : > { %v8963_v3 = vand.u32 4294901760, %v22596_v2  ;;  %v8949_v4 = vpop.f32.mrb[17].mxu0  ;;  %23008 = vmatmul.mubr.f32.vlgmr.msra.gmra.mrb[26].mxu0 %v26085_v7 }
 0x2f9   : > { %v8960_v11 = vand.u32 4294901760, %v8949_v4  ;;  %24210 = vmatpush3.bf16.msra.mxu0 %v25519_v12  ;;  %23014 = vmatprep.mubr.f32.mxu0 %v26082_v5  ;;  %v14653_v5 = vand.u32 4294901760, %v14652_v24 }
 0x2fa   : > { %v9055_v18 = vsub.f32 %v22596_v2, %v8963_v3  ;;  %24236 = vmatprep.subr.bf16.mxu0 %v25519_v12  ;;  %v5386_v2 = vadd.f32 0.0001, %v26120_v9 }
 0x2fb   : > { %v26200_v22 = vpack.c.bf16 %v8963_v3, %v8960_v11  ;;  %v9048_v14 = vsub.f32 %v8949_v4, %v8960_v11 }
 0x2fc   : > { %v9056_v37 = vand.u32 4294901760, %v9055_v18 }
 0x2fd   : > { %v9049_v39 = vand.u32 4294901760, %v9048_v14  ;;  %22553 = vmatmul.mubr.f32.vlgmr.msra.gmra.mrb[14].mxu1 %v25657_v52  ;;  %23972 = vmatprep.subr.bf16.mxu1 %v26200_v22  ;;  %v23979_v40 = vpack.c.bf16 %v9055_v18, %v9048_v14 }
 0x2fe   : > { %v9057_v41 = vsub.f32 %v9055_v18, %v9056_v37  ;;  %23974 = vmatpush3.bf16.msra.mxu1 %v26200_v22  ;;  %22601 = vmatprep.mubr.f32.mxu1 %v25597_v19 }
 0x2ff   : > { %v9050_v42 = vsub.f32 %v9048_v14, %v9049_v39  ;;  %v23987_v34 = vpack.c.bf16 %v9056_v37, %v9049_v39 }
 0x300   : > { %23015 = vmatmul.mubr.f32.vlgmr.msra.gmra.mrb[26].mxu0 %v26085_v7  ;;  %v9058_v44 = vand.u32 4294901760, %v9057_v41  ;;  %v26227_v7 = vld [vmem:[%s25478_s11 + $0x30] sm:$0xff]  ;;  %s25143_s11 = sshll.u32 %s25225_s19, 4  ;;  %s25144_s11 = int_to_ptr.vmem [resolvable:$false] %s25143_s11 }
 0x301   : > { %22602 = vmatmul.mubr.f32.vlgmr.msra.gmra.mrb[16].mxu1 %v25684_v15  ;;  %24238 = vmatpush3.bf16.msra.mxu0 %v25519_v12  ;;  %v9051_v45 = vand.u32 4294901760, %v9050_v42  ;;  %v15644_v50 = vsel %vm298_vm0, %v26227_v7, 0  ;;  %s25145_s25 = scalar_lea.vmem %s25144_s11, 128  ;;  %p25146_p4 = scmp.lt.s32.totalorder %s26754_s12, %s25144_s11 }
 0x302   : > { %23063 = vmatprep.mubr.f32.mxu0 %v14653_v5  ;;  %22608 = vmatprep.mubr.f32.mxu1 %v25585_v10  ;;  %v26240_v46 = vand.u32 4294901760, %v15644_v50  ;;  %v26312_v5 = vld [vmem:[%s25485_s9 + $0x38] sm:$0xff]  ;;  %p25147_p5 = scmp.lt.s32.totalorder %s25145_s25, %s25139_s20 }
 0x303   : > { %v23975_v30 = vpack.c.bf16 %v9058_v44, %v9051_v45  ;;  %24240 = vmatprep.subr.bf16.mxu0 %v25527_v31 }
 0x304   : > { %23064 = vmatmul.mubr.f32.vlgmr.msra.gmra.mrb[28].mxu0 %v14663_v43  ;;  %v26249_v51 = vsub.f32 %v15644_v50, %v26240_v46  ;;  %p25148_p3 = por %p25147_p5, %p25146_p4 }
 0x305   : > { %23976 = vmatprep.subr.bf16.mxu1 %v23975_v30  ;;  %24242 = vmatpush3.bf16.msra.mxu0 %v25527_v31 }
 0x306   : > { %23978 = vmatpush3.bf16.msra.mxu1 %v23975_v30  ;;  %23070 = vmatprep.mubr.f32.mxu0 %v26168_v6  ;;  %v15718_v61 = vand.u32 4294901760, %v26249_v51  ;;  %p25149_p7 = pnand %p25148_p3, %p25142_p10 }
 0x307   : > { %23980 = vmatprep.subr.bf16.mxu1 %v23979_v40  ;;  %24244 = vmatprep.subr.bf16.mxu0 %v25529_v32 }
 0x308   : > { %v15719_v25 = vsub.f32 %v26249_v51, %v15718_v61 }
 0x309   : > { %22609 = vmatmul.mubr.f32.vlgmr.msra.gmra.mrb[16].mxu1 %v25657_v52 }
 0x30a   : > { %23982 = vmatpush3.bf16.msra.mxu1 %v23979_v40  ;;  %22615 = vmatprep.mubr.f32.mxu1 %v25588_v13 }
 0x30b   : > { %23984 = vmatprep.subr.bf16.mxu1 %v26200_v22 }
 0x30c   : > { %23071 = vmatmul.mubr.f32.vlgmr.msra.gmra.mrb[28].mxu0 %v26171_v48 }
 0x30d   : > { %24246 = vmatpush3.bf16.msra.mxu0 %v25529_v32  ;;  %23077 = vmatprep.mubr.f32.mxu0 %v26177_v17 }
 0x30e   : > { %24248 = vmatprep.subr.bf16.mxu0 %v25519_v12 }
 0x311   : > { %22616 = vmatmul.mubr.f32.vlgmr.msra.gmra.mrb[16].mxu1 %v25667_v56 }
 0x312   : > { %23986 = vmatpush3.bf16.msra.mxu1 %v26200_v22  ;;  %22622 = vmatprep.mubr.f32.mxu1 %v25591_v16 }
 0x313   : > { %23988 = vmatprep.subr.bf16.mxu1 %v23987_v34 }
 0x314   : > { %23078 = vmatmul.mubr.f32.vlgmr.msra.gmra.mrb[28].mxu0 %v26182_v63 }
 0x315   : > { %24250 = vmatpush3.bf16.msra.mxu0 %v25519_v12  ;;  %23084 = vmatprep.mubr.f32.mxu0 %v14651_v57 }
 0x316   : > { %24252 = vmatprep.subr.bf16.mxu0 %v25536_v33 }
 0x319   : > { %22623 = vmatmul.mubr.f32.vlgmr.msra.gmra.mrb[16].mxu1 %v25675_v59 }
 0x31a   : > { %23990 = vmatpush3.bf16.msra.mxu1 %v23987_v34  ;;  %22629 = vmatprep.mubr.f32.mxu1 %v25585_v10  ;;  %v16657_v34 = vsel %vm298_vm0, %v26312_v5, 0 }
 0x31b   : > { %23992 = vmatprep.subr.bf16.mxu1 %v26200_v22  ;;  %v26325_v44 = vand.u32 4294901760, %v16657_v34 }
 0x31c   : > { %23085 = vmatmul.mubr.f32.vlgmr.msra.gmra.mrb[28].mxu0 %v14661_v8 }
 0x31d   : > { %24254 = vmatpush3.bf16.msra.mxu0 %v25536_v33  ;;  %23091 = vmatprep.mubr.f32.mxu0 %v26168_v6  ;;  %v26334_v50 = vsub.f32 %v16657_v34, %v26325_v44 }
 0x31e   : > { %24256 = vmatprep.subr.bf16.mxu0 %v25519_v12 }
 0x320   : > { %v22218_v58 = vpop.f32.mrb[6].mxu1 }
 0x321   : > { %v5370_v60 = vsub.f32 %v22218_v58, %v26100_v21  ;;  %v4339_v29 = vpop.f32.mrb[7].mxu1  ;;  %22630 = vmatmul.mubr.f32.vlgmr.msra.gmra.mrb[16].mxu1 %v25657_v52 }
 0x322   : > { %v5369_v53 = vsub.f32 %v4339_v29, %v26110_v26  ;;  %23994 = vmatpush3.bf16.msra.mxu1 %v26200_v22  ;;  %22636 = vmatprep.mubr.f32.mxu1 %v25585_v10  ;;  %v15728_v26 = vand.u32 4294901760, %v26252_v54  ;;  %v15720_v22 = vand.u32 4294901760, %v15719_v25 }
 0x323   : > { %v5388_v62 = vadd.f32 %v5370_v60, %v5368_v0  ;;  %v22680_v17 = vpop.f32.mrb[18].mxu0 }
 0x324   : > { %v5387_v21 = vadd.f32 %v5369_v53, %v5367_v55  ;;  %v9975_v63 = vand.u32 4294901760, %v22680_v17  ;;  %v9961_v57 = vpop.f32.mrb[19].mxu0  ;;  %23092 = vmatmul.mubr.f32.vlgmr.msra.gmra.mrb[28].mxu0 %v26171_v48 }
 0x325   : > { %v5390_v3 = vadd.f32 0.0009, %v5388_v62  ;;  %v9972_v4 = vand.u32 4294901760, %v9961_v57  ;;  %24258 = vmatpush3.bf16.msra.mxu0 %v25519_v12  ;;  %23098 = vmatprep.mubr.f32.mxu0 %v26168_v6  ;;  %v15729_v6 = vsub.f32 %v26252_v54, %v15728_v26 }
 0x326   : > { %v5389_v47 = vadd.f32 0.0009, %v5387_v21  ;;  %v10067_v0 = vsub.f32 %v22680_v17, %v9975_v63  ;;  %24284 = vmatprep.subr.bf16.mxu0 %v25519_v12 }
 0x327   : > { %v5392_v1 = vmul.f32 %v5390_v3, %v5386_v2  ;;  %v26276_v55 = vpack.c.bf16 %v9975_v63, %v9972_v4  ;;  %v10060_v9 = vsub.f32 %v9961_v57, %v9972_v4  ;;  %v15730_v38 = vand.u32 4294901760, %v15729_v6 }
 0x328   : > { %v5391_v8 = vmul.f32 %v5389_v47, %v5385_v20  ;;  %v10068_v11 = vand.u32 4294901760, %v10067_v0  ;;  %v5376_v63 = vadd.f32 0.0001, %v5374_v36 }
 0x329   : > { %v10061_v18 = vand.u32 4294901760, %v10060_v9  ;;  %22637 = vmatmul.mubr.f32.vlgmr.msra.gmra.mrb[16].mxu1 %v25657_v52  ;;  %24020 = vmatprep.subr.bf16.mxu1 %v26276_v55  ;;  %v24027_v28 = vpack.c.bf16 %v10067_v0, %v10060_v9  ;;  %25007 = vrcp.f32 %v5392_v1 }
 0x32a   : > { %v10069_v24 = vsub.f32 %v10067_v0, %v10068_v11  ;;  %24022 = vmatpush3.bf16.msra.mxu1 %v26276_v55  ;;  %22685 = vmatprep.mubr.f32.mxu1 %v25597_v19  ;;  %25009 = vrcp.f32 %v5391_v8 }
 0x32b   : > { %v10062_v14 = vsub.f32 %v10060_v9, %v10061_v18  ;;  %v24035_v37 = vpack.c.bf16 %v10068_v11, %v10061_v18 }
 0x32c   : > { %23099 = vmatmul.mubr.f32.vlgmr.msra.gmra.mrb[28].mxu0 %v26171_v48  ;;  %v10070_v39 = vand.u32 4294901760, %v10069_v24  ;;  %v26305_v48 = vld [vmem:[%s25485_s9 + $0x30] sm:$0xff] }
 0x32d   : > { %22686 = vmatmul.mubr.f32.vlgmr.msra.gmra.mrb[18].mxu1 %v25684_v15  ;;  %24286 = vmatpush3.bf16.msra.mxu0 %v25519_v12  ;;  %v10063_v40 = vand.u32 4294901760, %v10062_v14  ;;  %v16654_v42 = vsel %vm298_vm0, %v26305_v48, 0 }
 0x32e   : > { %23147 = vmatprep.mubr.f32.mxu0 %v15720_v22  ;;  %22692 = vmatprep.mubr.f32.mxu1 %v25585_v10  ;;  %v26320_v43 = vand.u32 4294901760, %v16654_v42 }
 0x32f   : > { %v24023_v41 = vpack.c.bf16 %v10070_v39, %v10063_v40  ;;  %24288 = vmatprep.subr.bf16.mxu0 %v25527_v31 }
 0x330   : > { %23148 = vmatmul.mubr.f32.vlgmr.msra.gmra.mrb[30].mxu0 %v15730_v38  ;;  %v26331_v45 = vsub.f32 %v16654_v42, %v26320_v43 }
 0x331   : > { %24024 = vmatprep.subr.bf16.mxu1 %v24023_v41  ;;  %24290 = vmatpush3.bf16.msra.mxu0 %v25527_v31 }
 0x332   : > { %24026 = vmatpush3.bf16.msra.mxu1 %v24023_v41  ;;  %23154 = vmatprep.mubr.f32.mxu0 %v26240_v46  ;;  %v16728_v29 = vand.u32 4294901760, %v26331_v45 }
 0x333   : > { %24028 = vmatprep.subr.bf16.mxu1 %v24027_v28  ;;  %24292 = vmatprep.subr.bf16.mxu0 %v25529_v32  ;;  %v25008_v25 = vpop.eup %25007 }
 0x334   : > { %v16729_v4 = vsub.f32 %v26331_v45, %v16728_v29  ;;  %v25010_v9 = vpop.eup %25009 }
 0x335   : > { %22693 = vmatmul.mubr.f32.vlgmr.msra.gmra.mrb[18].mxu1 %v25657_v52 }
 0x336   : > { %24030 = vmatpush3.bf16.msra.mxu1 %v24027_v28  ;;  %22699 = vmatprep.mubr.f32.mxu1 %v25588_v13  ;;  %v16730_v28 = vand.u32 4294901760, %v16729_v4 }
 0x337   : > { %24032 = vmatprep.subr.bf16.mxu1 %v26276_v55 }
 0x338   : > { %23155 = vmatmul.mubr.f32.vlgmr.msra.gmra.mrb[30].mxu0 %v26243_v49 }
 0x339   : > { %24294 = vmatpush3.bf16.msra.mxu0 %v25529_v32  ;;  %23161 = vmatprep.mubr.f32.mxu0 %v26249_v51 }
 0x33a   : > { %24296 = vmatprep.subr.bf16.mxu0 %v25519_v12 }
 0x33d   : > { %22700 = vmatmul.mubr.f32.vlgmr.msra.gmra.mrb[18].mxu1 %v25667_v56 }
 0x33e   : > { %24034 = vmatpush3.bf16.msra.mxu1 %v26276_v55  ;;  %22706 = vmatprep.mubr.f32.mxu1 %v25591_v16 }
 0x33f   : > { %24036 = vmatprep.subr.bf16.mxu1 %v24035_v37 }
 0x340   : > { %23162 = vmatmul.mubr.f32.vlgmr.msra.gmra.mrb[30].mxu0 %v26252_v54  ;;  %v5373_v54 = vmul.f32 2.0, %v26113_v27 }
 0x341   : > { %24298 = vmatpush3.bf16.msra.mxu0 %v25519_v12  ;;  %23168 = vmatprep.mubr.f32.mxu0 %v15718_v61 }
 0x342   : > { %24300 = vmatprep.subr.bf16.mxu0 %v25536_v33 }
 0x345   : > { %22707 = vmatmul.mubr.f32.vlgmr.msra.gmra.mrb[18].mxu1 %v25675_v59 }
 0x346   : > { %24038 = vmatpush3.bf16.msra.mxu1 %v24035_v37  ;;  %22713 = vmatprep.mubr.f32.mxu1 %v25585_v10 }
 0x347   : > { %24040 = vmatprep.subr.bf16.mxu1 %v26276_v55 }
 0x348   : > { %23169 = vmatmul.mubr.f32.vlgmr.msra.gmra.mrb[30].mxu0 %v15728_v26 }
 0x349   : > { %24302 = vmatpush3.bf16.msra.mxu0 %v25536_v33  ;;  %23175 = vmatprep.mubr.f32.mxu0 %v26240_v46 }
 0x34a   : > { %24304 = vmatprep.subr.bf16.mxu0 %v25519_v12 }
 0x34c   : > { %v22302_v30 = vpop.f32.mrb[8].mxu1 }
 0x34d   : > { %v5372_v51 = vsub.f32 %v22302_v30, %v26103_v23  ;;  %v5351_v58 = vpop.f32.mrb[9].mxu1  ;;  %22714 = vmatmul.mubr.f32.vlgmr.msra.gmra.mrb[18].mxu1 %v25657_v52  ;;  %v16738_v23 = vand.u32 4294901760, %v26334_v50  ;;  %v17664_v30 = vmul.f32 %v26232_v35, %v26232_v35 }
 0x34e   : > { %v5371_v60 = vsub.f32 %v5351_v58, %v26113_v27  ;;  %24042 = vmatpush3.bf16.msra.mxu1 %v26276_v55  ;;  %22720 = vmatprep.mubr.f32.mxu1 %v25585_v10  ;;  %v5375_v27 = vadd.f32 0.0001, %v5373_v54 }
 0x34f   : > { %v5378_v53 = vmul.f32 2.0, %v5372_v51  ;;  %v22764_v61 = vpop.f32.mrb[20].mxu0  ;;  %v17669_v51 = vsel %vm298_vm0, %v17664_v30, 0 }
 0x350   : > { %v5377_v62 = vmul.f32 2.0, %v5371_v60  ;;  %v11042_v17 = vand.u32 4294901760, %v22764_v61  ;;  %v11028_v21 = vpop.f32.mrb[21].mxu0  ;;  %23176 = vmatmul.mubr.f32.vlgmr.msra.gmra.mrb[30].mxu0 %v26243_v49 }
 0x351   : > { %v5380_v57 = vadd.f32 0.0009, %v5378_v53  ;;  %v11039_v26 = vand.u32 4294901760, %v11028_v21  ;;  %24306 = vmatpush3.bf16.msra.mxu0 %v25519_v12  ;;  %23182 = vmatprep.mubr.f32.mxu0 %v26240_v46  ;;  %v16739_v46 = vsub.f32 %v26334_v50, %v16738_v23 }
 0x352   : > { %v5379_v2 = vadd.f32 0.0009, %v5377_v62  ;;  %v11134_v3 = vsub.f32 %v22764_v61, %v11042_v17  ;;  %24332 = vmatprep.subr.bf16.mxu0 %v25519_v12 }
 0x353   : > { %v5382_v20 = vmul.f32 %v5380_v57, %v5376_v63  ;;  %v26352_v47 = vpack.c.bf16 %v11042_v17, %v11039_v26  ;;  %v11127_v0 = vsub.f32 %v11028_v21, %v11039_v26  ;;  %v16740_v39 = vand.u32 4294901760, %v16739_v46 }
 0x354   : > { %v5381_v1 = vmul.f32 %v5379_v2, %v5375_v27  ;;  %v11135_v55 = vand.u32 4294901760, %v11134_v3 }
 0x355   : > { %v11128_v8 = vand.u32 4294901760, %v11127_v0  ;;  %22721 = vmatmul.mubr.f32.vlgmr.msra.gmra.mrb[18].mxu1 %v25657_v52  ;;  %24068 = vmatprep.subr.bf16.mxu1 %v26352_v47  ;;  %v5396_v11 = vmul.f32 %v25008_v25, %v5382_v20  ;;  %v24075_v6 = vpack.c.bf16 %v11134_v3, %v11127_v0 }
 0x356   : > { %v11136_v18 = vsub.f32 %v11134_v3, %v11135_v55  ;;  %24070 = vmatpush3.bf16.msra.mxu1 %v26352_v47  ;;  %22769 = vmatprep.mubr.f32.mxu1 %v25597_v19  ;;  %v5394_v24 = vmul.f32 %v25010_v9, %v5381_v1 }
 0x357   : > { %v11129_v22 = vsub.f32 %v11127_v0, %v11128_v8  ;;  %v5398_v14 = vsel %vm298_vm0, %v5396_v11, 0.0  ;;  %v24083_v37 = vpack.c.bf16 %v11135_v55, %v11128_v8  ;;  %v18676_v8 = vmul.f32 %v26312_v5, %v26312_v5 }
 0x358   : > { %23183 = vmatmul.mubr.f32.vlgmr.msra.gmra.mrb[30].mxu0 %v26243_v49  ;;  %v5397_v38 = vsel %vm298_vm0, %v5394_v24, 0.0  ;;  %v11137_v40 = vand.u32 4294901760, %v11136_v18  ;;  %v17663_v49 = vmul.f32 %v26227_v7, %v26227_v7 }
 0x359   : > { %22770 = vmatmul.mubr.f32.vlgmr.msra.gmra.mrb[20].mxu1 %v25684_v15  ;;  %24334 = vmatpush3.bf16.msra.mxu0 %v25519_v12  ;;  %v5399_v41 = vadd.f32 %v5398_v14, %v5397_v38  ;;  %v11130_v42 = vand.u32 4294901760, %v11129_v22 }
 0x35a   : > { %23231 = vmatprep.mubr.f32.mxu0 %v16730_v28  ;;  %22776 = vmatprep.mubr.f32.mxu1 %v25585_v10  ;;  %v17666_v36 = vsel %vm298_vm0, %v17663_v49, 0 }
 0x35b   : > { %5400 = vadd.xlane.f32.xlu0 %v5399_v41  ;;  %v24071_v34 = vpack.c.bf16 %v11137_v40, %v11130_v42  ;;  %24336 = vmatprep.subr.bf16.mxu0 %v25527_v31  ;;  %v26394_v58 = vand.u32 4294901760, %v17666_v36 }
 0x35c   : > { %23232 = vmatmul.mubr.f32.vlgmr.msra.gmra.mrb[32].mxu0 %v16740_v39 }
 0x35d   : > { %24072 = vmatprep.subr.bf16.mxu1 %v24071_v34  ;;  %24338 = vmatpush3.bf16.msra.mxu0 %v25527_v31  ;;  %v26405_v54 = vsub.f32 %v17666_v36, %v26394_v58 }
 0x35e   : > { %24074 = vmatpush3.bf16.msra.mxu1 %v24071_v34  ;;  %23238 = vmatprep.mubr.f32.mxu0 %v26320_v43 }
 0x35f   : > { %24076 = vmatprep.subr.bf16.mxu1 %v24075_v6  ;;  %24340 = vmatprep.subr.bf16.mxu0 %v25529_v32 }
 0x361   : > { %22777 = vmatmul.mubr.f32.vlgmr.msra.gmra.mrb[20].mxu1 %v25657_v52 }
 0x362   : > { %24078 = vmatpush3.bf16.msra.mxu1 %v24075_v6  ;;  %22783 = vmatprep.mubr.f32.mxu1 %v25588_v13  ;;  %v18681_v6 = vsel %vm298_vm0, %v18676_v8, 0 }
 0x363   : > { %24080 = vmatprep.subr.bf16.mxu1 %v26352_v47  ;;  %v26463_v28 = vand.u32 4294901760, %v18681_v6 }
 0x364   : > { %23239 = vmatmul.mubr.f32.vlgmr.msra.gmra.mrb[32].mxu0 %v26325_v44 }
 0x365   : > { %24342 = vmatpush3.bf16.msra.mxu0 %v25529_v32  ;;  %23245 = vmatprep.mubr.f32.mxu0 %v26331_v45  ;;  %v26399_v45 = vand.u32 4294901760, %v17669_v51  ;;  %v26472_v14 = vsub.f32 %v18681_v6, %v26463_v28 }
 0x366   : > { %24344 = vmatprep.subr.bf16.mxu0 %v25519_v12 }
 0x369   : > { %22784 = vmatmul.mubr.f32.vlgmr.msra.gmra.mrb[20].mxu1 %v25667_v56 }
 0x36a   : > { %24082 = vmatpush3.bf16.msra.mxu1 %v26352_v47  ;;  %22790 = vmatprep.mubr.f32.mxu1 %v25591_v16 }
 0x36b   : > { %24084 = vmatprep.subr.bf16.mxu1 %v24083_v37 }
 0x36c   : > { %23246 = vmatmul.mubr.f32.vlgmr.msra.gmra.mrb[32].mxu0 %v26334_v50  ;;  %v17740_v50 = vand.u32 4294901760, %v26405_v54 }
 0x36d   : > { %24346 = vmatpush3.bf16.msra.mxu0 %v25519_v12  ;;  %23252 = vmatprep.mubr.f32.mxu0 %v16728_v29  ;;  %v26410_v29 = vsub.f32 %v17669_v51, %v26399_v45 }
 0x36e   : > { %24348 = vmatprep.subr.bf16.mxu0 %v25536_v33  ;;  %v17741_v57 = vsub.f32 %v26405_v54, %v17740_v50 }
 0x36f   : > { %v17750_v21 = vand.u32 4294901760, %v26410_v29 }
 0x371   : > { %22791 = vmatmul.mubr.f32.vlgmr.msra.gmra.mrb[20].mxu1 %v25675_v59  ;;  %v17751_v3 = vsub.f32 %v26410_v29, %v17750_v21 }
 0x372   : > { %24086 = vmatpush3.bf16.msra.mxu1 %v24083_v37  ;;  %22797 = vmatprep.mubr.f32.mxu1 %v25585_v10 }
 0x373   : > { %24088 = vmatprep.subr.bf16.mxu1 %v26352_v47  ;;  %v17752_v1 = vand.u32 4294901760, %v17751_v3 }
 0x374   : > { %23253 = vmatmul.mubr.f32.vlgmr.msra.gmra.mrb[32].mxu0 %v16738_v23 }
 0x375   : > { %24350 = vmatpush3.bf16.msra.mxu0 %v25536_v33  ;;  %23259 = vmatprep.mubr.f32.mxu0 %v26320_v43 }
 0x376   : > { %24352 = vmatprep.subr.bf16.mxu0 %v25519_v12 }
 0x378   : > { %v26407_v60 = vpop.f32.mrb[10].mxu1 }
 0x379   : > { %v26412_v53 = vpop.f32.mrb[11].mxu1  ;;  %22798 = vmatmul.mubr.f32.vlgmr.msra.gmra.mrb[20].mxu1 %v25657_v52  ;;  %v26476_v37 = vmul.f32 %v26407_v60, %v26407_v60 }
 0x37a   : > { %24090 = vmatpush3.bf16.msra.mxu1 %v26352_v47  ;;  %22804 = vmatprep.mubr.f32.mxu1 %v25585_v10  ;;  %v26486_v41 = vmul.f32 %v26412_v53, %v26412_v53 }
 0x37b   : > { %v22848_v61 = vpop.f32.mrb[22].mxu0 }
 0x37c   : > { %v12052_v62 = vand.u32 4294901760, %v22848_v61  ;;  %v12038_v17 = vpop.f32.mrb[23].mxu0  ;;  %23260 = vmatmul.mubr.f32.vlgmr.msra.gmra.mrb[32].mxu0 %v26325_v44 }
 0x37d   : > { %v12049_v23 = vand.u32 4294901760, %v12038_v17  ;;  %24354 = vmatpush3.bf16.msra.mxu0 %v25519_v12  ;;  %23266 = vmatprep.mubr.f32.mxu0 %v26320_v43  ;;  %v17742_v43 = vand.u32 4294901760, %v17741_v57 }
 0x37e   : > { %v12144_v63 = vsub.f32 %v22848_v61, %v12052_v62  ;;  %24380 = vmatprep.subr.bf16.mxu0 %v25519_v12 }
 0x37f   : > { %v26424_v26 = vpack.c.bf16 %v12052_v62, %v12049_v23  ;;  %v12137_v27 = vsub.f32 %v12038_v17, %v12049_v23 }
 0x380   : > { %v12145_v2 = vand.u32 4294901760, %v12144_v63 }
 0x381   : > { %v12138_v4 = vand.u32 4294901760, %v12137_v27  ;;  %22805 = vmatmul.mubr.f32.vlgmr.msra.gmra.mrb[20].mxu1 %v25657_v52  ;;  %24116 = vmatprep.subr.bf16.mxu1 %v26424_v26  ;;  %v24123_v20 = vpack.c.bf16 %v12144_v63, %v12137_v27 }
 0x382   : > { %v12146_v47 = vsub.f32 %v12144_v63, %v12145_v2  ;;  %24118 = vmatpush3.bf16.msra.mxu1 %v26424_v26  ;;  %22853 = vmatprep.mubr.f32.mxu1 %v25597_v19 }
 0x383   : > { %v12139_v0 = vsub.f32 %v12137_v27, %v12138_v4  ;;  %v24131_v25 = vpack.c.bf16 %v12145_v2, %v12138_v4 }
 0x384   : > { %23267 = vmatmul.mubr.f32.vlgmr.msra.gmra.mrb[32].mxu0 %v26325_v44  ;;  %v12147_v55 = vand.u32 4294901760, %v12146_v47  ;;  %v18675_v44 = vmul.f32 %v26305_v48, %v26305_v48 }
 0x385   : > { %22854 = vmatmul.mubr.f32.vlgmr.msra.gmra.mrb[22].mxu1 %v25684_v15  ;;  %24382 = vmatpush3.bf16.msra.mxu0 %v25519_v12  ;;  %v12140_v46 = vand.u32 4294901760, %v12139_v0 }
 0x386   : > { %23315 = vmatprep.mubr.f32.mxu0 %v17742_v43  ;;  %22860 = vmatprep.mubr.f32.mxu1 %v25585_v10  ;;  %v18678_v11 = vsel %vm298_vm0, %v18675_v44, 0  ;;  %v19688_v43 = vmul.f32 %v26312_v5, %v26232_v35 }
 0x387   : > { %v24119_v9 = vpack.c.bf16 %v12147_v55, %v12140_v46  ;;  %24384 = vmatprep.subr.bf16.mxu0 %v25527_v31  ;;  %v26460_v18 = vand.u32 4294901760, %v18678_v11 }
 0x388   : > { %23316 = vmatmul.mubr.f32.vlgmr.msra.gmra.mrb[34].mxu0 %v17752_v1 }
 0x389   : > { %24120 = vmatprep.subr.bf16.mxu1 %v24119_v9  ;;  %24386 = vmatpush3.bf16.msra.mxu0 %v25527_v31  ;;  %v26469_v24 = vsub.f32 %v18678_v11, %v26460_v18 }
 0x38a   : > { %24122 = vmatpush3.bf16.msra.mxu1 %v24119_v9  ;;  %23322 = vmatprep.mubr.f32.mxu0 %v26394_v58 }
 0x38b   : > { %24124 = vmatprep.subr.bf16.mxu1 %v24123_v20  ;;  %24388 = vmatprep.subr.bf16.mxu0 %v25529_v32  ;;  %v18752_v49 = vand.u32 4294901760, %v26469_v24 }
 0x38d   : > { %22861 = vmatmul.mubr.f32.vlgmr.msra.gmra.mrb[22].mxu1 %v25657_v52  ;;  %v18753_v61 = vsub.f32 %v26469_v24, %v18752_v49 }
 0x38e   : > { %24126 = vmatpush3.bf16.msra.mxu1 %v24123_v20  ;;  %22867 = vmatprep.mubr.f32.mxu1 %v25588_v13 }
 0x38f   : > { %24128 = vmatprep.subr.bf16.mxu1 %v26424_v26 }
 0x390   : > { %23323 = vmatmul.mubr.f32.vlgmr.msra.gmra.mrb[34].mxu0 %v26399_v45 }
 0x391   : > { %24390 = vmatpush3.bf16.msra.mxu0 %v25529_v32  ;;  %23329 = vmatprep.mubr.f32.mxu0 %v26405_v54 }
 0x392   : > { %24392 = vmatprep.subr.bf16.mxu0 %v25519_v12 }
 0x395   : > { %22868 = vmatmul.mubr.f32.vlgmr.msra.gmra.mrb[22].mxu1 %v25667_v56 }
 0x396   : > { %24130 = vmatpush3.bf16.msra.mxu1 %v26424_v26  ;;  %22874 = vmatprep.mubr.f32.mxu1 %v25591_v16 }
 0x397   : > { %24132 = vmatprep.subr.bf16.mxu1 %v24131_v25 }
 0x398   : > { %23330 = vmatmul.mubr.f32.vlgmr.msra.gmra.mrb[34].mxu0 %v26410_v29  ;;  %v18762_v29 = vand.u32 4294901760, %v26472_v14 }
 0x399   : > { %24394 = vmatpush3.bf16.msra.mxu0 %v25519_v12  ;;  %23336 = vmatprep.mubr.f32.mxu0 %v17740_v50 }
 0x39a   : > { %24396 = vmatprep.subr.bf16.mxu0 %v25536_v33  ;;  %v18763_v23 = vsub.f32 %v26472_v14, %v18762_v29 }
 0x39c   : > { %v18764_v3 = vand.u32 4294901760, %v18763_v23 }
 0x39d   : > { %22875 = vmatmul.mubr.f32.vlgmr.msra.gmra.mrb[22].mxu1 %v25675_v59 }
 0x39e   : > { %24134 = vmatpush3.bf16.msra.mxu1 %v24131_v25  ;;  %22881 = vmatprep.mubr.f32.mxu1 %v25585_v10  ;;  %v19693_v25 = vsel %vm298_vm0, %v19688_v43, 0 }
 0x39f   : > { %24136 = vmatprep.subr.bf16.mxu1 %v26424_v26 }
 0x3a0   : > { %23337 = vmatmul.mubr.f32.vlgmr.msra.gmra.mrb[34].mxu0 %v17750_v21 }
 0x3a1   : > { %24398 = vmatpush3.bf16.msra.mxu0 %v25536_v33  ;;  %23343 = vmatprep.mubr.f32.mxu0 %v26394_v58 }
 0x3a2   : > { %24400 = vmatprep.subr.bf16.mxu0 %v25519_v12 }
 0x3a4   : > { %v22470_v22 = vpop.f32.mrb[12].mxu1 }
 0x3a5   : > { %v26478_v38 = vmul.f32 %v22470_v22, %v22470_v22  ;;  %v26481_v39 = vmul.f32 %v22470_v22, %v26407_v60  ;;  %v7427_v40 = vpop.f32.mrb[13].mxu1  ;;  %22882 = vmatmul.mubr.f32.vlgmr.msra.gmra.mrb[22].mxu1 %v25657_v52 }
 0x3a6   : > { %v26488_v42 = vmul.f32 %v7427_v40, %v7427_v40  ;;  %v26491_v34 = vmul.f32 %v7427_v40, %v26412_v53  ;;  %24138 = vmatpush3.bf16.msra.mxu1 %v26424_v26  ;;  %22888 = vmatprep.mubr.f32.mxu1 %v25585_v10 }
 0x3a7   : > { %v26498_v30 = vadd.f32 %v26478_v38, %v26476_v37  ;;  %v22932_v36 = vpop.f32.mrb[24].mxu0 }
 0x3a8   : > { %v26502_v51 = vadd.f32 %v26488_v42, %v26486_v41  ;;  %v13064_v54 = vand.u32 4294901760, %v22932_v36  ;;  %v13050_v60 = vpop.f32.mrb[25].mxu0  ;;  %23344 = vmatmul.mubr.f32.vlgmr.msra.gmra.mrb[34].mxu0 %v26399_v45 }
 0x3a9   : > { %v13061_v53 = vand.u32 4294901760, %v13050_v60  ;;  %24402 = vmatpush3.bf16.msra.mxu0 %v25519_v12  ;;  %23350 = vmatprep.mubr.f32.mxu0 %v26394_v58  ;;  %v18754_v58 = vand.u32 4294901760, %v18753_v61 }
 0x3aa   : > { %v13156_v50 = vsub.f32 %v22932_v36, %v13064_v54  ;;  %24428 = vmatprep.subr.bf16.mxu0 %v25519_v12 }
 0x3ab   : > { %v26510_v62 = vpack.c.bf16 %v13064_v54, %v13061_v53  ;;  %v13149_v17 = vsub.f32 %v13050_v60, %v13061_v53 }
 0x3ac   : > { %v13157_v21 = vand.u32 4294901760, %v13156_v50 }
 0x3ad   : > { %v13150_v63 = vand.u32 4294901760, %v13149_v17  ;;  %22889 = vmatmul.mubr.f32.vlgmr.msra.gmra.mrb[22].mxu1 %v25657_v52  ;;  %24164 = vmatprep.subr.bf16.mxu1 %v26510_v62  ;;  %v24171_v57 = vpack.c.bf16 %v13156_v50, %v13149_v17 }
 0x3ae   : > { %v13158_v26 = vsub.f32 %v13156_v50, %v13157_v21  ;;  %24166 = vmatpush3.bf16.msra.mxu1 %v26510_v62  ;;  %22937 = vmatprep.mubr.f32.mxu1 %v25597_v19 }
 0x3af   : > { %v13151_v27 = vsub.f32 %v13149_v17, %v13150_v63  ;;  %v24179_v2 = vpack.c.bf16 %v13157_v21, %v13150_v63 }
 0x3b0   : > { %23351 = vmatmul.mubr.f32.vlgmr.msra.gmra.mrb[34].mxu0 %v26399_v45  ;;  %v13159_v4 = vand.u32 4294901760, %v13158_v26  ;;  %v19687_v45 = vmul.f32 %v26305_v48, %v26227_v7  ;;  %v26549_v48 = vand.u32 4294901760, %v19693_v25 }
 0x3b1   : > { %22938 = vmatmul.mubr.f32.vlgmr.msra.gmra.mrb[24].mxu1 %v25684_v15  ;;  %24430 = vmatpush3.bf16.msra.mxu0 %v25519_v12  ;;  %v13152_v20 = vand.u32 4294901760, %v13151_v27 }
 0x3b2   : > { %23399 = vmatprep.mubr.f32.mxu0 %v18754_v58  ;;  %22944 = vmatprep.mubr.f32.mxu1 %v25585_v10  ;;  %v19690_v0 = vsel %vm298_vm0, %v19687_v45, 0  ;;  %v26560_v1 = vsub.f32 %v19693_v25, %v26549_v48 }
 0x3b3   : > { %v24167_v47 = vpack.c.bf16 %v13159_v4, %v13152_v20  ;;  %24432 = vmatprep.subr.bf16.mxu0 %v25527_v31  ;;  %v26546_v7 = vand.u32 4294901760, %v19690_v0 }
 0x3b4   : > { %23400 = vmatmul.mubr.f32.vlgmr.msra.gmra.mrb[36].mxu0 %v18764_v3 }
 0x3b5   : > { %24168 = vmatprep.subr.bf16.mxu1 %v24167_v47  ;;  %24434 = vmatpush3.bf16.msra.mxu0 %v25527_v31  ;;  %v26555_v35 = vsub.f32 %v19690_v0, %v26546_v7  ;;  %v10498_v0 = vadd.f32 0.0001, %v26498_v30 }
 0x3b6   : > { %24170 = vmatpush3.bf16.msra.mxu1 %v24167_v47  ;;  %23406 = vmatprep.mubr.f32.mxu0 %v26460_v18 }
 0x3b7   : > { %24172 = vmatprep.subr.bf16.mxu1 %v24171_v57  ;;  %24436 = vmatprep.subr.bf16.mxu0 %v25529_v32  ;;  %v19764_v44 = vand.u32 4294901760, %v26555_v35 }
 0x3b9   : > { %22945 = vmatmul.mubr.f32.vlgmr.msra.gmra.mrb[24].mxu1 %v25657_v52  ;;  %v19765_v40 = vsub.f32 %v26555_v35, %v19764_v44 }
 0x3ba   : > { %24174 = vmatpush3.bf16.msra.mxu1 %v24171_v57  ;;  %22951 = vmatprep.mubr.f32.mxu1 %v25588_v13 }
 0x3bb   : > { %24176 = vmatprep.subr.bf16.mxu1 %v26510_v62  ;;  %v19766_v50 = vand.u32 4294901760, %v19765_v40 }
 0x3bc   : > { %23407 = vmatmul.mubr.f32.vlgmr.msra.gmra.mrb[36].mxu0 %v26463_v28 }
 0x3bd   : > { %24438 = vmatpush3.bf16.msra.mxu0 %v25529_v32  ;;  %23413 = vmatprep.mubr.f32.mxu0 %v26469_v24  ;;  %v19774_v24 = vand.u32 4294901760, %v26560_v1 }
 0x3be   : > { %24440 = vmatprep.subr.bf16.mxu0 %v25519_v12 }
 0x3bf   : > { %v19775_v60 = vsub.f32 %v26560_v1, %v19774_v24 }
 0x3c1   : > { %22952 = vmatmul.mubr.f32.vlgmr.msra.gmra.mrb[24].mxu1 %v25667_v56  ;;  %v19776_v17 = vand.u32 4294901760, %v19775_v60 }
 0x3c2   : > { %24178 = vmatpush3.bf16.msra.mxu1 %v26510_v62  ;;  %22958 = vmatprep.mubr.f32.mxu1 %v25591_v16 }
 0x3c3   : > { %24180 = vmatprep.subr.bf16.mxu1 %v24179_v2 }
 0x3c4   : > { %23414 = vmatmul.mubr.f32.vlgmr.msra.gmra.mrb[36].mxu0 %v26472_v14 }
 0x3c5   : > { %24442 = vmatpush3.bf16.msra.mxu0 %v25519_v12  ;;  %23420 = vmatprep.mubr.f32.mxu0 %v18752_v49 }
 0x3c6   : > { %24444 = vmatprep.subr.bf16.mxu0 %v25536_v33 }
 0x3c9   : > { %22959 = vmatmul.mubr.f32.vlgmr.msra.gmra.mrb[24].mxu1 %v25675_v59 }
 0x3ca   : > { %24182 = vmatpush3.bf16.msra.mxu1 %v24179_v2  ;;  %22965 = vmatprep.mubr.f32.mxu1 %v25585_v10 }
 0x3cb   : > { %24184 = vmatprep.subr.bf16.mxu1 %v26510_v62 }
 0x3cc   : > { %23421 = vmatmul.mubr.f32.vlgmr.msra.gmra.mrb[36].mxu0 %v18762_v29 }
 0x3cd   : > { %24446 = vmatpush3.bf16.msra.mxu0 %v25536_v33  ;;  %23427 = vmatprep.mubr.f32.mxu0 %v26460_v18 }
 0x3ce   : > { %24448 = vmatprep.subr.bf16.mxu0 %v25519_v12 }
 0x3d0   : > { %v26557_v5 = vpop.f32.mrb[14].mxu1 }
 0x3d1   : > { %v10480_v55 = vsub.f32 %v26557_v5, %v26476_v37  ;;  %v26564_v46 = vpop.f32.mrb[15].mxu1  ;;  %22966 = vmatmul.mubr.f32.vlgmr.msra.gmra.mrb[24].mxu1 %v25657_v52  ;;  %v10497_v37 = vadd.f32 0.0001, %v26502_v51 }
 0x3d2   : > { %v10479_v9 = vsub.f32 %v26564_v46, %v26486_v41  ;;  %24186 = vmatpush3.bf16.msra.mxu1 %v26510_v62  ;;  %22972 = vmatprep.mubr.f32.mxu1 %v25585_v10 }
 0x3d3   : > { %v23016_v8 = vpop.f32.mrb[26].mxu0 }
 0x3d4   : > { %v14076_v11 = vand.u32 4294901760, %v23016_v8  ;;  %v14062_v6 = vpop.f32.mrb[27].mxu0  ;;  %23428 = vmatmul.mubr.f32.vlgmr.msra.gmra.mrb[36].mxu0 %v26463_v28 }
 0x3d5   : > { %v14073_v22 = vand.u32 4294901760, %v14062_v6  ;;  %24450 = vmatpush3.bf16.msra.mxu0 %v25519_v12  ;;  %23434 = vmatprep.mubr.f32.mxu0 %v26460_v18 }
 0x3d6   : > { %v14168_v14 = vsub.f32 %v23016_v8, %v14076_v11  ;;  %24476 = vmatprep.subr.bf16.mxu0 %v25519_v12 }
 0x3d7   : > { %v26578_v49 = vpack.c.bf16 %v14076_v11, %v14073_v22  ;;  %v14161_v36 = vsub.f32 %v14062_v6, %v14073_v22  ;;  %v10486_v22 = vmul.f32 2.0, %v26481_v39 }
 0x3d8   : > { %v14169_v54 = vand.u32 4294901760, %v14168_v14 }
 0x3d9   : > { %v14162_v29 = vand.u32 4294901760, %v14161_v36  ;;  %22973 = vmatmul.mubr.f32.vlgmr.msra.gmra.mrb[24].mxu1 %v25657_v52  ;;  %24212 = vmatprep.subr.bf16.mxu1 %v26578_v49  ;;  %v24219_v53 = vpack.c.bf16 %v14168_v14, %v14161_v36 }
 0x3da   : > { %v14170_v18 = vsub.f32 %v14168_v14, %v14169_v54  ;;  %24214 = vmatpush3.bf16.msra.mxu1 %v26578_v49  ;;  %23021 = vmatprep.mubr.f32.mxu1 %v25597_v19 }
 0x3db   : > { %v14163_v61 = vsub.f32 %v14161_v36, %v14162_v29  ;;  %v24227_v62 = vpack.c.bf16 %v14169_v54, %v14162_v29 }
 0x3dc   : > { %23435 = vmatmul.mubr.f32.vlgmr.msra.gmra.mrb[36].mxu0 %v26463_v28  ;;  %v14171_v21 = vand.u32 4294901760, %v14170_v18 }
 0x3dd   : > { %23022 = vmatmul.mubr.f32.vlgmr.msra.gmra.mrb[26].mxu1 %v25684_v15  ;;  %24478 = vmatpush3.bf16.msra.mxu0 %v25519_v12  ;;  %v14164_v23 = vand.u32 4294901760, %v14163_v61 }
 0x3de   : > { %23483 = vmatprep.mubr.f32.mxu0 %v19766_v50  ;;  %23028 = vmatprep.mubr.f32.mxu1 %v25585_v10  ;;  %v10488_v50 = vadd.f32 0.0001, %v10486_v22 }
 0x3df   : > { %v24215_v63 = vpack.c.bf16 %v14171_v21, %v14164_v23  ;;  %24480 = vmatprep.subr.bf16.mxu0 %v25527_v31 }
 0x3e0   : > { %23484 = vmatmul.mubr.f32.vlgmr.msra.gmra.mrb[38].mxu0 %v19776_v17 }
 0x3e1   : > { %24216 = vmatprep.subr.bf16.mxu1 %v24215_v63  ;;  %24482 = vmatpush3.bf16.msra.mxu0 %v25527_v31 }
 0x3e2   : > { %24218 = vmatpush3.bf16.msra.mxu1 %v24215_v63  ;;  %23490 = vmatprep.mubr.f32.mxu0 %v26546_v7 }
 0x3e3   : > { %24220 = vmatprep.subr.bf16.mxu1 %v24219_v53  ;;  %24484 = vmatprep.subr.bf16.mxu0 %v25529_v32 }
 0x3e5   : > { %23029 = vmatmul.mubr.f32.vlgmr.msra.gmra.mrb[26].mxu1 %v25657_v52 }
 0x3e6   : > { %24222 = vmatpush3.bf16.msra.mxu1 %v24219_v53  ;;  %23035 = vmatprep.mubr.f32.mxu1 %v25588_v13 }
 0x3e7   : > { %24224 = vmatprep.subr.bf16.mxu1 %v26578_v49 }
 0x3e8   : > { %23491 = vmatmul.mubr.f32.vlgmr.msra.gmra.mrb[38].mxu0 %v26549_v48  ;;  %v5401_v28 = vpop.xlane.xlu0 %5400 }
 0x3e9   : > { %v5402_v57 = vrot.slane %v5401_v28, 4  ;;  %24486 = vmatpush3.bf16.msra.mxu0 %v25529_v32  ;;  %23497 = vmatprep.mubr.f32.mxu0 %v26555_v35 }
 0x3ea   : > { %24488 = vmatprep.subr.bf16.mxu0 %v25519_v12 }
 0x3eb   : > { %v5403_v31 = vadd.f32 %v5402_v57, %v5401_v28 }
 0x3ed   : > { %v5404_v26 = vrot.slane %v5403_v31, 2  ;;  %23036 = vmatmul.mubr.f32.vlgmr.msra.gmra.mrb[26].mxu1 %v25667_v56 }
 0x3ee   : > { %24226 = vmatpush3.bf16.msra.mxu1 %v26578_v49  ;;  %23042 = vmatprep.mubr.f32.mxu1 %v25591_v16 }
 0x3ef   : > { %24228 = vmatprep.subr.bf16.mxu1 %v24227_v62  ;;  %v5405_v58 = vadd.f32 %v5404_v26, %v5403_v31 }
 0x3f0   : > { %23498 = vmatmul.mubr.f32.vlgmr.msra.gmra.mrb[38].mxu0 %v26560_v1 }
 0x3f1   : > { %v5406_v27 = vrot.slane %v5405_v58, 1  ;;  %24490 = vmatpush3.bf16.msra.mxu0 %v25519_v12  ;;  %23504 = vmatprep.mubr.f32.mxu0 %v19764_v44 }
 0x3f2   : > { %24492 = vmatprep.subr.bf16.mxu0 %v25536_v33 }
 0x3f3   : > { %v5407_v32 = vadd.f32 %v5406_v27, %v5405_v58 }
 0x3f5   : > { %24923 = vpush %v5407_v32  ;;  %23043 = vmatmul.mubr.f32.vlgmr.msra.gmra.mrb[26].mxu1 %v25675_v59 }
 0x3f6   : > { %24230 = vmatpush3.bf16.msra.mxu1 %v24227_v62  ;;  %23049 = vmatprep.mubr.f32.mxu1 %v25585_v10 }
 0x3f7   : > { %24232 = vmatprep.subr.bf16.mxu1 %v26578_v49 }
 0x3f8   : > { %23505 = vmatmul.mubr.f32.vlgmr.msra.gmra.mrb[38].mxu0 %v19774_v24 }
 0x3f9   : > { %24494 = vmatpush3.bf16.msra.mxu0 %v25536_v33  ;;  %23511 = vmatprep.mubr.f32.mxu0 %v26546_v7 }
 0x3fa   : > { %24496 = vmatprep.subr.bf16.mxu0 %v25519_v12 }
 0x3fc   : > { %v22638_v2 = vpop.f32.mrb[16].mxu1 }
 0x3fd   : > { %v10482_v3 = vsub.f32 %v22638_v2, %v26478_v38  ;;  %v9451_v4 = vpop.f32.mrb[17].mxu1  ;;  %23050 = vmatmul.mubr.f32.vlgmr.msra.gmra.mrb[26].mxu1 %v25657_v52 }
 0x3fe   : > { %v10481_v20 = vsub.f32 %v9451_v4, %v26488_v42  ;;  %24234 = vmatpush3.bf16.msra.mxu1 %v26578_v49  ;;  %23056 = vmatprep.mubr.f32.mxu1 %v25585_v10  ;;  %v10485_v49 = vmul.f32 2.0, %v26491_v34 }
 0x3ff   : > { %v10500_v33 = vadd.f32 %v10482_v3, %v10480_v55  ;;  %v23100_v47 = vpop.f32.mrb[28].mxu0 }
 0x400   : > { %v10499_v45 = vadd.f32 %v10481_v20, %v10479_v9  ;;  %v15088_v43 = vand.u32 4294901760, %v23100_v47  ;;  %v15074_v38 = vpop.f32.mrb[29].mxu0  ;;  %23512 = vmatmul.mubr.f32.vlgmr.msra.gmra.mrb[38].mxu0 %v26549_v48  ;;  %v10487_v17 = vadd.f32 0.0001, %v10485_v49 }
 0x401   : > { %v10502_v42 = vadd.f32 0.0009, %v10500_v33  ;;  %v15085_v25 = vand.u32 4294901760, %v15074_v38  ;;  %24498 = vmatpush3.bf16.msra.mxu0 %v25519_v12  ;;  %23518 = vmatprep.mubr.f32.mxu0 %v26546_v7 }
 0x402   : > { %v10501_v35 = vadd.f32 0.0009, %v10499_v45  ;;  %v15180_v5 = vsub.f32 %v23100_v47, %v15088_v43 }
 0x403   : > { %v10504_v1 = vmul.f32 %v10502_v42, %v10498_v0  ;;  %v24259_v55 = vpack.c.bf16 %v15088_v43, %v15085_v25  ;;  %v15173_v41 = vsub.f32 %v15074_v38, %v15085_v25 }
 0x404   : > { %v10503_v46 = vmul.f32 %v10501_v35, %v10497_v37  ;;  %v15181_v9 = vand.u32 4294901760, %v15180_v5 }
 0x405   : > { %v15174_v44 = vand.u32 4294901760, %v15173_v41  ;;  %23057 = vmatmul.mubr.f32.vlgmr.msra.gmra.mrb[26].mxu1 %v25657_v52  ;;  %24260 = vmatprep.subr.bf16.mxu1 %v24259_v55  ;;  %v24267_v30 = vpack.c.bf16 %v15180_v5, %v15173_v41  ;;  %25011 = vrcp.f32 %v10504_v1 }
 0x406   : > { %v15182_v8 = vsub.f32 %v15180_v5, %v15181_v9  ;;  %24262 = vmatpush3.bf16.msra.mxu1 %v24259_v55  ;;  %23105 = vmatprep.mubr.f32.mxu1 %v25597_v19  ;;  %25013 = vrcp.f32 %v10503_v46 }
 0x407   : > { %v15175_v12 = vsub.f32 %v15173_v41, %v15174_v44  ;;  %v24275_v7 = vpack.c.bf16 %v15181_v9, %v15174_v44 }
 0x408   : > { %23519 = vmatmul.mubr.f32.vlgmr.msra.gmra.mrb[38].mxu0 %v26549_v48  ;;  %v15183_v51 = vand.u32 4294901760, %v15182_v8 }
 0x409   : > { %23106 = vmatmul.mubr.f32.vlgmr.msra.gmra.mrb[28].mxu1 %v25684_v15  ;;  %v15176_v11 = vand.u32 4294901760, %v15175_v12 }
 0x40a   : > { %23112 = vmatprep.mubr.f32.mxu1 %v25585_v10 }
 0x40b   : > { %v24263_v6 = vpack.c.bf16 %v15183_v51, %v15176_v11 }
 0x40d   : > { %24264 = vmatprep.subr.bf16.mxu1 %v24263_v6 }
 0x40e   : > { %24266 = vmatpush3.bf16.msra.mxu1 %v24263_v6 }
 0x40f   : > { %24268 = vmatprep.subr.bf16.mxu1 %v24267_v30  ;;  %v25012_v57 = vpop.eup %25011 }
 0x410   : > { %v25014_v26 = vpop.eup %25013 }
 0x411   : > { %23113 = vmatmul.mubr.f32.vlgmr.msra.gmra.mrb[28].mxu1 %v25657_v52 }
 0x412   : > { %24270 = vmatpush3.bf16.msra.mxu1 %v24267_v30  ;;  %23119 = vmatprep.mubr.f32.mxu1 %v25588_v13 }
 0x413   : > { %24272 = vmatprep.subr.bf16.mxu1 %v24259_v55 }
 0x419   : > { %23120 = vmatmul.mubr.f32.vlgmr.msra.gmra.mrb[28].mxu1 %v25667_v56 }
 0x41a   : > { %24274 = vmatpush3.bf16.msra.mxu1 %v24259_v55  ;;  %23126 = vmatprep.mubr.f32.mxu1 %v25591_v16 }
 0x41b   : > { %24276 = vmatprep.subr.bf16.mxu1 %v24275_v7 }
 0x421   : > { %23127 = vmatmul.mubr.f32.vlgmr.msra.gmra.mrb[28].mxu1 %v25675_v59 }
 0x422   : > { %24278 = vmatpush3.bf16.msra.mxu1 %v24275_v7  ;;  %23133 = vmatprep.mubr.f32.mxu1 %v25585_v10 }
 0x423   : > { %24280 = vmatprep.subr.bf16.mxu1 %v24259_v55 }
 0x426   : > { %s24924_s27 = spop %24923 }
 0x427   : > { %v5409_v48 = vstv %s24924_s27 }
 0x428   : > { %5410 = vst [vmem:[%s26644_s10] sm:$0x1] %v5409_v48  ;;  %v22722_v24 = vpop.f32.mrb[18].mxu1 }
 0x429   : > { %v10484_v14 = vsub.f32 %v22722_v24, %v26481_v39  ;;  %v10463_v40 = vpop.f32.mrb[19].mxu1  ;;  %23134 = vmatmul.mubr.f32.vlgmr.msra.gmra.mrb[28].mxu1 %v25657_v52 }
 0x42a   : > { %v10483_v36 = vsub.f32 %v10463_v40, %v26491_v34  ;;  %24282 = vmatpush3.bf16.msra.mxu1 %v24259_v55  ;;  %23140 = vmatprep.mubr.f32.mxu1 %v25585_v10 }
 0x42b   : > { %v10490_v54 = vmul.f32 2.0, %v10484_v14  ;;  %v23184_v60 = vpop.f32.mrb[30].mxu0 }
 0x42c   : > { %v10489_v29 = vmul.f32 2.0, %v10483_v36  ;;  %v16155_v53 = vand.u32 4294901760, %v23184_v60  ;;  %v16141_v18 = vpop.f32.mrb[31].mxu0 }
 0x42d   : > { %v10492_v61 = vadd.f32 0.0009, %v10490_v54  ;;  %v16152_v62 = vand.u32 4294901760, %v16141_v18 }
 0x42e   : > { %v10491_v39 = vadd.f32 0.0009, %v10489_v29  ;;  %v16247_v21 = vsub.f32 %v23184_v60, %v16155_v53 }
 0x42f   : > { %v10494_v23 = vmul.f32 %v10492_v61, %v10488_v50  ;;  %v24307_v63 = vpack.c.bf16 %v16155_v53, %v16152_v62  ;;  %v16240_v28 = vsub.f32 %v16141_v18, %v16152_v62 }
 0x430   : > { %v10493_v31 = vmul.f32 %v10491_v39, %v10487_v17  ;;  %v16248_v34 = vand.u32 4294901760, %v16247_v21 }
 0x431   : > { %v16241_v58 = vand.u32 4294901760, %v16240_v28  ;;  %23141 = vmatmul.mubr.f32.vlgmr.msra.gmra.mrb[28].mxu1 %v25657_v52  ;;  %24308 = vmatprep.subr.bf16.mxu1 %v24307_v63  ;;  %v10508_v27 = vmul.f32 %v25012_v57, %v10494_v23  ;;  %v24315_v32 = vpack.c.bf16 %v16247_v21, %v16240_v28 }
 0x432   : > { %v16249_v2 = vsub.f32 %v16247_v21, %v16248_v34  ;;  %24310 = vmatpush3.bf16.msra.mxu1 %v24307_v63  ;;  %23189 = vmatprep.mubr.f32.mxu1 %v25597_v19  ;;  %v10506_v3 = vmul.f32 %v25014_v26, %v10493_v31 }
 0x433   : > { %v16242_v4 = vsub.f32 %v16240_v28, %v16241_v58  ;;  %v10510_v20 = vsel %vm298_vm0, %v10508_v27, 0.0  ;;  %v24323_v33 = vpack.c.bf16 %v16248_v34, %v16241_v58 }
 0x434   : > { %v10509_v47 = vsel %vm298_vm0, %v10506_v3, 0.0  ;;  %v16250_v45 = vand.u32 4294901760, %v16249_v2 }
 0x435   : > { %23190 = vmatmul.mubr.f32.vlgmr.msra.gmra.mrb[30].mxu1 %v25684_v15  ;;  %v10511_v43 = vadd.f32 %v10510_v20, %v10509_v47  ;;  %v16243_v38 = vand.u32 4294901760, %v16242_v4 }
 0x436   : > { %23196 = vmatprep.mubr.f32.mxu1 %v25585_v10 }
 0x437   : > { %10512 = vadd.xlane.f32.xlu0 %v10511_v43  ;;  %v24311_v0 = vpack.c.bf16 %v16250_v45, %v16243_v38 }
 0x439   : > { %24312 = vmatprep.subr.bf16.mxu1 %v24311_v0 }
 0x43a   : > { %24314 = vmatpush3.bf16.msra.mxu1 %v24311_v0 }
 0x43b   : > { %24316 = vmatprep.subr.bf16.mxu1 %v24315_v32 }
 0x43d   : > { %23197 = vmatmul.mubr.f32.vlgmr.msra.gmra.mrb[30].mxu1 %v25657_v52 }
 0x43e   : > { %24318 = vmatpush3.bf16.msra.mxu1 %v24315_v32  ;;  %23203 = vmatprep.mubr.f32.mxu1 %v25588_v13 }
 0x43f   : > { %24320 = vmatprep.subr.bf16.mxu1 %v24307_v63 }
 0x445   : > { %23204 = vmatmul.mubr.f32.vlgmr.msra.gmra.mrb[30].mxu1 %v25667_v56 }
 0x446   : > { %24322 = vmatpush3.bf16.msra.mxu1 %v24307_v63  ;;  %23210 = vmatprep.mubr.f32.mxu1 %v25591_v16 }
 0x447   : > { %24324 = vmatprep.subr.bf16.mxu1 %v24323_v33 }
 0x44d   : > { %23211 = vmatmul.mubr.f32.vlgmr.msra.gmra.mrb[30].mxu1 %v25675_v59 }
 0x44e   : > { %24326 = vmatpush3.bf16.msra.mxu1 %v24323_v33  ;;  %23217 = vmatprep.mubr.f32.mxu1 %v25585_v10 }
 0x44f   : > { %24328 = vmatprep.subr.bf16.mxu1 %v24307_v63 }
 0x454   : > { %v22806_v42 = vpop.f32.mrb[20].mxu1 }
 0x455   : > { %v11530_v25 = vpop.f32.mrb[21].mxu1  ;;  %23218 = vmatmul.mubr.f32.vlgmr.msra.gmra.mrb[30].mxu1 %v25657_v52  ;;  %v26677_v24 = vmul.f32 %v22806_v42, %v22806_v42 }
 0x456   : > { %24330 = vmatpush3.bf16.msra.mxu1 %v24307_v63  ;;  %23224 = vmatprep.mubr.f32.mxu1 %v25585_v10  ;;  %v26684_v49 = vmul.f32 %v11530_v25, %v11530_v25 }
 0x457   : > { %v23268_v37 = vpop.f32.mrb[32].mxu0 }
 0x458   : > { %v17165_v35 = vand.u32 4294901760, %v23268_v37  ;;  %v17151_v5 = vpop.f32.mrb[33].mxu0 }
 0x459   : > { %v17162_v1 = vand.u32 4294901760, %v17151_v5 }
 0x45a   : > { %v17257_v55 = vsub.f32 %v23268_v37, %v17165_v35 }
 0x45b   : > { %v24355_v41 = vpack.c.bf16 %v17165_v35, %v17162_v1  ;;  %v17250_v46 = vsub.f32 %v17151_v5, %v17162_v1 }
 0x45c   : > { %v17258_v9 = vand.u32 4294901760, %v17257_v55 }
 0x45d   : > { %v17251_v44 = vand.u32 4294901760, %v17250_v46  ;;  %23225 = vmatmul.mubr.f32.vlgmr.msra.gmra.mrb[30].mxu1 %v25657_v52  ;;  %24356 = vmatprep.subr.bf16.mxu1 %v24355_v41  ;;  %v24363_v30 = vpack.c.bf16 %v17257_v55, %v17250_v46 }
 0x45e   : > { %v17259_v8 = vsub.f32 %v17257_v55, %v17258_v9  ;;  %24358 = vmatpush3.bf16.msra.mxu1 %v24355_v41  ;;  %23273 = vmatprep.mubr.f32.mxu1 %v25597_v19 }
 0x45f   : > { %v17252_v12 = vsub.f32 %v17250_v46, %v17251_v44  ;;  %v24371_v7 = vpack.c.bf16 %v17258_v9, %v17251_v44 }
 0x460   : > { %v17260_v51 = vand.u32 4294901760, %v17259_v8 }
 0x461   : > { %23274 = vmatmul.mubr.f32.vlgmr.msra.gmra.mrb[32].mxu1 %v25684_v15  ;;  %v17253_v11 = vand.u32 4294901760, %v17252_v12 }
 0x462   : > { %23280 = vmatprep.mubr.f32.mxu1 %v25585_v10 }
 0x463   : > { %v24359_v6 = vpack.c.bf16 %v17260_v51, %v17253_v11 }
 0x465   : > { %24360 = vmatprep.subr.bf16.mxu1 %v24359_v6 }
 0x466   : > { %24362 = vmatpush3.bf16.msra.mxu1 %v24359_v6 }
 0x467   : > { %24364 = vmatprep.subr.bf16.mxu1 %v24363_v30 }
 0x469   : > { %23281 = vmatmul.mubr.f32.vlgmr.msra.gmra.mrb[32].mxu1 %v25657_v52 }
 0x46a   : > { %24366 = vmatpush3.bf16.msra.mxu1 %v24363_v30  ;;  %23287 = vmatprep.mubr.f32.mxu1 %v25588_v13 }
 0x46b   : > { %24368 = vmatprep.subr.bf16.mxu1 %v24355_v41 }
 0x471   : > { %23288 = vmatmul.mubr.f32.vlgmr.msra.gmra.mrb[32].mxu1 %v25667_v56 }
 0x472   : > { %24370 = vmatpush3.bf16.msra.mxu1 %v24355_v41  ;;  %23294 = vmatprep.mubr.f32.mxu1 %v25591_v16 }
 0x473   : > { %24372 = vmatprep.subr.bf16.mxu1 %v24371_v7 }
 0x479   : > { %23295 = vmatmul.mubr.f32.vlgmr.msra.gmra.mrb[32].mxu1 %v25675_v59 }
 0x47a   : > { %24374 = vmatpush3.bf16.msra.mxu1 %v24371_v7  ;;  %23301 = vmatprep.mubr.f32.mxu1 %v25585_v10 }
 0x47b   : > { %24376 = vmatprep.subr.bf16.mxu1 %v24355_v41 }
 0x480   : > { %v22890_v48 = vpop.f32.mrb[22].mxu1 }
 0x481   : > { %v26679_v22 = vmul.f32 %v22890_v48, %v22890_v48  ;;  %v26681_v14 = vmul.f32 %v22890_v48, %v22806_v42  ;;  %v12540_v40 = vpop.f32.mrb[23].mxu1  ;;  %23302 = vmatmul.mubr.f32.vlgmr.msra.gmra.mrb[32].mxu1 %v25657_v52 }
 0x482   : > { %v26686_v36 = vmul.f32 %v12540_v40, %v12540_v40  ;;  %v26688_v54 = vmul.f32 %v12540_v40, %v11530_v25  ;;  %24378 = vmatpush3.bf16.msra.mxu1 %v24355_v41  ;;  %23308 = vmatprep.mubr.f32.mxu1 %v25585_v10 }
 0x483   : > { %v26693_v60 = vadd.f32 %v26679_v22, %v26677_v24  ;;  %v23352_v29 = vpop.f32.mrb[34].mxu0 }
 0x484   : > { %v26697_v53 = vadd.f32 %v26686_v36, %v26684_v49  ;;  %v18177_v18 = vand.u32 4294901760, %v23352_v29  ;;  %v18163_v50 = vpop.f32.mrb[35].mxu0 }
 0x485   : > { %v18174_v61 = vand.u32 4294901760, %v18163_v50 }
 0x486   : > { %v18269_v62 = vsub.f32 %v23352_v29, %v18177_v18 }
 0x487   : > { %v24403_v17 = vpack.c.bf16 %v18177_v18, %v18174_v61  ;;  %v18262_v39 = vsub.f32 %v18163_v50, %v18174_v61  ;;  %v15611_v50 = vadd.f32 0.0001, %v26693_v60 }
 0x488   : > { %v18270_v21 = vand.u32 4294901760, %v18269_v62 }
 0x489   : > { %v18263_v23 = vand.u32 4294901760, %v18262_v39  ;;  %23309 = vmatmul.mubr.f32.vlgmr.msra.gmra.mrb[32].mxu1 %v25657_v52  ;;  %24404 = vmatprep.subr.bf16.mxu1 %v24403_v17  ;;  %v24411_v63 = vpack.c.bf16 %v18269_v62, %v18262_v39 }
 0x48a   : > { %v18271_v28 = vsub.f32 %v18269_v62, %v18270_v21  ;;  %24406 = vmatpush3.bf16.msra.mxu1 %v24403_v17  ;;  %23357 = vmatprep.mubr.f32.mxu1 %v25597_v19 }
 0x48b   : > { %v18264_v57 = vsub.f32 %v18262_v39, %v18263_v23  ;;  %v24419_v31 = vpack.c.bf16 %v18270_v21, %v18263_v23 }
 0x48c   : > { %v18272_v34 = vand.u32 4294901760, %v18271_v28 }
 0x48d   : > { %23358 = vmatmul.mubr.f32.vlgmr.msra.gmra.mrb[34].mxu1 %v25684_v15  ;;  %v18265_v26 = vand.u32 4294901760, %v18264_v57 }
 0x48e   : > { %23364 = vmatprep.mubr.f32.mxu1 %v25585_v10 }
 0x48f   : > { %v24407_v58 = vpack.c.bf16 %v18272_v34, %v18265_v26 }
 0x491   : > { %24408 = vmatprep.subr.bf16.mxu1 %v24407_v58 }
 0x492   : > { %24410 = vmatpush3.bf16.msra.mxu1 %v24407_v58 }
 0x493   : > { %24412 = vmatprep.subr.bf16.mxu1 %v24411_v63 }
 0x495   : > { %23365 = vmatmul.mubr.f32.vlgmr.msra.gmra.mrb[34].mxu1 %v25657_v52 }
 0x496   : > { %24414 = vmatpush3.bf16.msra.mxu1 %v24411_v63  ;;  %23371 = vmatprep.mubr.f32.mxu1 %v25588_v13 }
 0x497   : > { %24416 = vmatprep.subr.bf16.mxu1 %v24403_v17 }
 0x49d   : > { %23372 = vmatmul.mubr.f32.vlgmr.msra.gmra.mrb[34].mxu1 %v25667_v56 }
 0x49e   : > { %24418 = vmatpush3.bf16.msra.mxu1 %v24403_v17  ;;  %23378 = vmatprep.mubr.f32.mxu1 %v25591_v16 }
 0x49f   : > { %24420 = vmatprep.subr.bf16.mxu1 %v24419_v31 }
 0x4a5   : > { %23379 = vmatmul.mubr.f32.vlgmr.msra.gmra.mrb[34].mxu1 %v25675_v59 }
 0x4a6   : > { %24422 = vmatpush3.bf16.msra.mxu1 %v24419_v31  ;;  %23385 = vmatprep.mubr.f32.mxu1 %v25585_v10 }
 0x4a7   : > { %24424 = vmatprep.subr.bf16.mxu1 %v24403_v17 }
 0x4ac   : > { %v22974_v27 = vpop.f32.mrb[24].mxu1 }
 0x4ad   : > { %v15593_v32 = vsub.f32 %v22974_v27, %v26677_v24  ;;  %v13552_v2 = vpop.f32.mrb[25].mxu1  ;;  %23386 = vmatmul.mubr.f32.vlgmr.msra.gmra.mrb[34].mxu1 %v25657_v52 }
 0x4ae   : > { %v15592_v3 = vsub.f32 %v13552_v2, %v26684_v49  ;;  %24426 = vmatpush3.bf16.msra.mxu1 %v24403_v17  ;;  %23392 = vmatprep.mubr.f32.mxu1 %v25585_v10  ;;  %v15610_v17 = vadd.f32 0.0001, %v26697_v53 }
 0x4af   : > { %v23436_v4 = vpop.f32.mrb[36].mxu0 }
 0x4b0   : > { %v19189_v20 = vand.u32 4294901760, %v23436_v4  ;;  %v19175_v33 = vpop.f32.mrb[37].mxu0 }
 0x4b1   : > { %v19186_v47 = vand.u32 4294901760, %v19175_v33 }
 0x4b2   : > { %v19281_v45 = vsub.f32 %v23436_v4, %v19189_v20 }
 0x4b3   : > { %v24451_v43 = vpack.c.bf16 %v19189_v20, %v19186_v47  ;;  %v19274_v38 = vsub.f32 %v19175_v33, %v19186_v47 }
 0x4b4   : > { %v19282_v0 = vand.u32 4294901760, %v19281_v45 }
 0x4b5   : > { %v19275_v42 = vand.u32 4294901760, %v19274_v38  ;;  %23393 = vmatmul.mubr.f32.vlgmr.msra.gmra.mrb[34].mxu1 %v25657_v52  ;;  %24452 = vmatprep.subr.bf16.mxu1 %v24451_v43  ;;  %v24459_v25 = vpack.c.bf16 %v19281_v45, %v19274_v38 }
 0x4b6   : > { %v19283_v37 = vsub.f32 %v19281_v45, %v19282_v0  ;;  %24454 = vmatpush3.bf16.msra.mxu1 %v24451_v43  ;;  %23441 = vmatprep.mubr.f32.mxu1 %v25597_v19 }
 0x4b7   : > { %v19276_v35 = vsub.f32 %v19274_v38, %v19275_v42  ;;  %v24467_v5 = vpack.c.bf16 %v19282_v0, %v19275_v42 }
 0x4b8   : > { %v19284_v1 = vand.u32 4294901760, %v19283_v37 }
 0x4b9   : > { %23442 = vmatmul.mubr.f32.vlgmr.msra.gmra.mrb[36].mxu1 %v25684_v15  ;;  %v19277_v55 = vand.u32 4294901760, %v19276_v35 }
 0x4ba   : > { %23448 = vmatprep.mubr.f32.mxu1 %v25585_v10 }
 0x4bb   : > { %v24455_v41 = vpack.c.bf16 %v19284_v1, %v19277_v55 }
 0x4bd   : > { %24456 = vmatprep.subr.bf16.mxu1 %v24455_v41 }
 0x4be   : > { %24458 = vmatpush3.bf16.msra.mxu1 %v24455_v41 }
 0x4bf   : > { %24460 = vmatprep.subr.bf16.mxu1 %v24459_v25 }
 0x4c1   : > { %23449 = vmatmul.mubr.f32.vlgmr.msra.gmra.mrb[36].mxu1 %v25657_v52 }
 0x4c2   : > { %24462 = vmatpush3.bf16.msra.mxu1 %v24459_v25  ;;  %23455 = vmatprep.mubr.f32.mxu1 %v25588_v13 }
 0x4c3   : > { %24464 = vmatprep.subr.bf16.mxu1 %v24451_v43 }
 0x4c4   : > { %v10513_v46 = vpop.xlane.xlu0 %10512 }
 0x4c5   : > { %v10514_v9 = vrot.slane %v10513_v46, 4 }
 0x4c7   : > { %v10515_v44 = vadd.f32 %v10514_v9, %v10513_v46 }
 0x4c9   : > { %v10516_v30 = vrot.slane %v10515_v44, 2  ;;  %23456 = vmatmul.mubr.f32.vlgmr.msra.gmra.mrb[36].mxu1 %v25667_v56 }
 0x4ca   : > { %24466 = vmatpush3.bf16.msra.mxu1 %v24451_v43  ;;  %23462 = vmatprep.mubr.f32.mxu1 %v25591_v16 }
 0x4cb   : > { %v10517_v8 = vadd.f32 %v10516_v30, %v10515_v44  ;;  %24468 = vmatprep.subr.bf16.mxu1 %v24467_v5 }
 0x4cd   : > { %v10518_v12 = vrot.slane %v10517_v8, 1 }
 0x4cf   : > { %v10519_v7 = vadd.f32 %v10518_v12, %v10517_v8 }
 0x4d1   : > { %24925 = vpush %v10519_v7  ;;  %23463 = vmatmul.mubr.f32.vlgmr.msra.gmra.mrb[36].mxu1 %v25675_v59 }
 0x4d2   : > { %24470 = vmatpush3.bf16.msra.mxu1 %v24467_v5  ;;  %23469 = vmatprep.mubr.f32.mxu1 %v25585_v10 }
 0x4d3   : > { %24472 = vmatprep.subr.bf16.mxu1 %v24451_v43 }
 0x4d8   : > { %v23058_v51 = vpop.f32.mrb[26].mxu1 }
 0x4d9   : > { %v15595_v11 = vsub.f32 %v23058_v51, %v26679_v22  ;;  %v14564_v6 = vpop.f32.mrb[27].mxu1  ;;  %23470 = vmatmul.mubr.f32.vlgmr.msra.gmra.mrb[36].mxu1 %v25657_v52 }
 0x4da   : > { %v15594_v48 = vsub.f32 %v14564_v6, %v26686_v36  ;;  %24474 = vmatpush3.bf16.msra.mxu1 %v24451_v43  ;;  %23476 = vmatprep.mubr.f32.mxu1 %v25585_v10 }
 0x4db   : > { %v15613_v24 = vadd.f32 %v15595_v11, %v15593_v32  ;;  %v23520_v40 = vpop.f32.mrb[38].mxu0 }
 0x4dc   : > { %v15612_v49 = vadd.f32 %v15594_v48, %v15592_v3  ;;  %v20201_v29 = vand.u32 4294901760, %v23520_v40  ;;  %v20187_v18 = vpop.f32.mrb[39].mxu0 }
 0x4dd   : > { %v15615_v61 = vadd.f32 0.0009, %v15613_v24  ;;  %v20198_v62 = vand.u32 4294901760, %v20187_v18 }
 0x4de   : > { %v15614_v22 = vadd.f32 0.0009, %v15612_v49  ;;  %v20293_v39 = vsub.f32 %v23520_v40, %v20201_v29 }
 0x4df   : > { %v15617_v21 = vmul.f32 %v15615_v61, %v15611_v50  ;;  %v24499_v23 = vpack.c.bf16 %v20201_v29, %v20198_v62  ;;  %v20286_v63 = vsub.f32 %v20187_v18, %v20198_v62 }
 0x4e0   : > { %v15616_v36 = vmul.f32 %v15614_v22, %v15610_v17  ;;  %v20294_v28 = vand.u32 4294901760, %v20293_v39 }
 0x4e1   : > { %v20287_v57 = vand.u32 4294901760, %v20286_v63  ;;  %23477 = vmatmul.mubr.f32.vlgmr.msra.gmra.mrb[36].mxu1 %v25657_v52  ;;  %24500 = vmatprep.subr.bf16.mxu1 %v24499_v23  ;;  %v24507_v31 = vpack.c.bf16 %v20293_v39, %v20286_v63  ;;  %25015 = vrcp.f32 %v15617_v21 }
 0x4e2   : > { %v20295_v34 = vsub.f32 %v20293_v39, %v20294_v28  ;;  %24502 = vmatpush3.bf16.msra.mxu1 %v24499_v23  ;;  %23525 = vmatprep.mubr.f32.mxu1 %v25597_v19  ;;  %25017 = vrcp.f32 %v15616_v36 }
 0x4e3   : > { %v20288_v60 = vsub.f32 %v20286_v63, %v20287_v57  ;;  %v24515_v26 = vpack.c.bf16 %v20294_v28, %v20287_v57 }
 0x4e4   : > { %v20296_v58 = vand.u32 4294901760, %v20295_v34 }
 0x4e5   : > { %v20289_v53 = vand.u32 4294901760, %v20288_v60  ;;  %23526 = vmatmul.mubr.f32.vlgmr.msra.gmra.mrb[38].mxu1 %v25684_v15 }
 0x4e6   : > { %23532 = vmatprep.mubr.f32.mxu1 %v25585_v10 }
 0x4e7   : > { %v24503_v27 = vpack.c.bf16 %v20296_v58, %v20289_v53 }
 0x4e9   : > { %24504 = vmatprep.subr.bf16.mxu1 %v24503_v27 }
 0x4ea   : > { %24506 = vmatpush3.bf16.msra.mxu1 %v24503_v27 }
 0x4eb   : > { %24508 = vmatprep.subr.bf16.mxu1 %v24507_v31  ;;  %v25016_v43 = vpop.eup %25015 }
 0x4ed   : > { %23533 = vmatmul.mubr.f32.vlgmr.msra.gmra.mrb[38].mxu1 %v25657_v52 }
 0x4ee   : > { %24510 = vmatpush3.bf16.msra.mxu1 %v24507_v31  ;;  %23539 = vmatprep.mubr.f32.mxu1 %v25588_v13  ;;  %v15599_v13 = vmul.f32 2.0, %v26681_v14 }
 0x4ef   : > { %24512 = vmatprep.subr.bf16.mxu1 %v24499_v23 }
 0x4f0   : > { %v15601_v4 = vadd.f32 0.0001, %v15599_v13 }
 0x4f5   : > { %23540 = vmatmul.mubr.f32.vlgmr.msra.gmra.mrb[38].mxu1 %v25667_v56 }
 0x4f6   : > { %24514 = vmatpush3.bf16.msra.mxu1 %v24499_v23  ;;  %23546 = vmatprep.mubr.f32.mxu1 %v25591_v16  ;;  %v15598_v16 = vmul.f32 2.0, %v26688_v54 }
 0x4f7   : > { %24516 = vmatprep.subr.bf16.mxu1 %v24515_v26 }
 0x4f8   : > { %v15600_v33 = vadd.f32 0.0001, %v15598_v16 }
 0x4fd   : > { %23547 = vmatmul.mubr.f32.vlgmr.msra.gmra.mrb[38].mxu1 %v25675_v59 }
 0x4fe   : > { %24518 = vmatpush3.bf16.msra.mxu1 %v24515_v26  ;;  %23553 = vmatprep.mubr.f32.mxu1 %v25585_v10 }
 0x4ff   : > { %24520 = vmatprep.subr.bf16.mxu1 %v24499_v23 }
 0x502   : > { %s24926_s5 = spop %24925 }
 0x503   : > { %v10521_v19 = vstv %s24926_s5 }
 0x504   : > { %20902 = vst [vmem:[%s26644_s10 + $0x1] sm:$0x1] %v10521_v19  ;;  %v23142_v15 = vpop.f32.mrb[28].mxu1 }
 0x505   : > { %v15597_v56 = vsub.f32 %v23142_v15, %v26681_v14  ;;  %v15576_v32 = vpop.f32.mrb[29].mxu1  ;;  %23554 = vmatmul.mubr.f32.vlgmr.msra.gmra.mrb[38].mxu1 %v25657_v52  ;;  %v25018_v14 = vpop.eup %25017 }
 0x506   : > { %v15596_v59 = vsub.f32 %v15576_v32, %v26688_v54  ;;  %24522 = vmatpush3.bf16.msra.mxu1 %v24499_v23  ;;  %23560 = vmatprep.mubr.f32.mxu1 %v25585_v10 }
 0x507   : > { %v15603_v2 = vmul.f32 2.0, %v15597_v56 }
 0x508   : > { %v15602_v3 = vmul.f32 2.0, %v15596_v59 }
 0x509   : > { %v15605_v20 = vadd.f32 0.0009, %v15603_v2 }
 0x50a   : > { %v15604_v47 = vadd.f32 0.0009, %v15602_v3 }
 0x50b   : > { %v15607_v45 = vmul.f32 %v15605_v20, %v15601_v4 }
 0x50c   : > { %v15606_v38 = vmul.f32 %v15604_v47, %v15600_v33 }
 0x50d   : > { %23561 = vmatmul.mubr.f32.vlgmr.msra.gmra.mrb[38].mxu1 %v25657_v52  ;;  %v15621_v0 = vmul.f32 %v25016_v43, %v15607_v45 }
 0x50e   : > { %v15619_v42 = vmul.f32 %v25018_v14, %v15606_v38 }
 0x50f   : > { %v15623_v25 = vsel %vm298_vm0, %v15621_v0, 0.0 }
 0x510   : > { %v15622_v54 = vsel %vm298_vm0, %v15619_v42, 0.0 }
 0x511   : > { %v15624_v37 = vadd.f32 %v15623_v25, %v15622_v54 }
 0x513   : > { %15625 = vadd.xlane.f32.xlu1 %v15624_v37 }
 0x530   : > { %v23226_v10 = vpop.f32.mrb[30].mxu1 }
 0x531   : > { %v16643_v35 = vpop.f32.mrb[31].mxu1  ;;  %v20700_v1 = vmul.f32 %v23226_v10, %v23226_v10 }
 0x532   : > { %v20699_v9 = vmul.f32 %v16643_v35, %v16643_v35 }
 0x55c   : > { %v23310_v5 = vpop.f32.mrb[32].mxu1 }
 0x55d   : > { %v20702_v55 = vmul.f32 %v23310_v5, %v23310_v5  ;;  %v20704_v41 = vmul.f32 %v23310_v5, %v23226_v10  ;;  %v17653_v46 = vpop.f32.mrb[33].mxu1 }
 0x55e   : > { %v20701_v44 = vmul.f32 %v17653_v46, %v17653_v46  ;;  %v20703_v30 = vmul.f32 %v17653_v46, %v16643_v35 }
 0x55f   : > { %v20722_v8 = vadd.f32 %v20702_v55, %v20700_v1  ;;  %v20712_v60 = vmul.f32 2.0, %v20704_v41 }
 0x560   : > { %v20721_v52 = vadd.f32 %v20701_v44, %v20699_v9  ;;  %v20711_v53 = vmul.f32 2.0, %v20703_v30 }
 0x561   : > { %v20724_v21 = vadd.f32 0.0001, %v20722_v8  ;;  %v20714_v13 = vadd.f32 0.0001, %v20712_v60 }
 0x562   : > { %v20723_v63 = vadd.f32 0.0001, %v20721_v52  ;;  %v20713_v32 = vadd.f32 0.0001, %v20711_v53 }
 0x588   : > { %v23394_v12 = vpop.f32.mrb[34].mxu1 }
 0x589   : > { %v20706_v7 = vsub.f32 %v23394_v12, %v20700_v1  ;;  %v18665_v51 = vpop.f32.mrb[35].mxu1 }
 0x58a   : > { %v20705_v11 = vsub.f32 %v18665_v51, %v20699_v9 }
 0x5a0   : > { %v15626_v6 = vpop.xlane.xlu1 %15625 }
 0x5a1   : > { %v15627_v48 = vrot.slane %v15626_v6, 4 }
 0x5a3   : > { %v15628_v24 = vadd.f32 %v15627_v48, %v15626_v6 }
 0x5a5   : > { %v15629_v40 = vrot.slane %v15628_v24, 2 }
 0x5a7   : > { %v15630_v49 = vadd.f32 %v15629_v40, %v15628_v24 }
 0x5a9   : > { %v15631_v29 = vrot.slane %v15630_v49, 1 }
 0x5ab   : > { %v15632_v18 = vadd.f32 %v15631_v29, %v15630_v49 }
 0x5ad   : > { %24927 = vpush %v15632_v18 }
 0x5b4   : > { %v23478_v50 = vpop.f32.mrb[36].mxu1 }
 0x5b5   : > { %v20708_v61 = vsub.f32 %v23478_v50, %v20702_v55  ;;  %v19677_v62 = vpop.f32.mrb[37].mxu1 }
 0x5b6   : > { %v20707_v17 = vsub.f32 %v19677_v62, %v20701_v44 }
 0x5b7   : > { %v20726_v22 = vadd.f32 %v20708_v61, %v20706_v7 }
 0x5b8   : > { %v20725_v39 = vadd.f32 %v20707_v17, %v20705_v11 }
 0x5b9   : > { %v20728_v23 = vadd.f32 0.0009, %v20726_v22 }
 0x5ba   : > { %v20727_v36 = vadd.f32 0.0009, %v20725_v39 }
 0x5bb   : > { %v20730_v28 = vmul.f32 %v20728_v23, %v20724_v21 }
 0x5bc   : > { %v20729_v57 = vmul.f32 %v20727_v36, %v20723_v63 }
 0x5bd   : > { %25019 = vrcp.f32 %v20730_v28 }
 0x5be   : > { %25021 = vrcp.f32 %v20729_v57 }
 0x5c7   : > { %v25020_v2 = vpop.eup %25019 }
 0x5c8   : > { %v25022_v4 = vpop.eup %25021 }
 0x5de   : > { %s24928_s8 = spop %24927 }
 0x5df   : > { %v15634_v31 = vstv %s24928_s8 }
 0x5e0   : > { %20907 = vst [vmem:[%s26644_s10 + $0x2] sm:$0x1] %v15634_v31  ;;  %v23562_v34 = vpop.f32.mrb[38].mxu1 }
 0x5e1   : > { %v20710_v26 = vsub.f32 %v23562_v34, %v20704_v41  ;;  %v20689_v58 = vpop.f32.mrb[39].mxu1 }
 0x5e2   : > { %v20709_v27 = vsub.f32 %v20689_v58, %v20703_v30 }
 0x5e3   : > { %v20716_v19 = vmul.f32 2.0, %v20710_v26 }
 0x5e4   : > { %v20715_v15 = vmul.f32 2.0, %v20709_v27 }
 0x5e5   : > { %v20718_v56 = vadd.f32 0.0009, %v20716_v19 }
 0x5e6   : > { %v20717_v16 = vadd.f32 0.0009, %v20715_v15 }
 0x5e7   : > { %v20720_v59 = vmul.f32 %v20718_v56, %v20714_v13 }
 0x5e8   : > { %v20719_v3 = vmul.f32 %v20717_v16, %v20713_v32 }
 0x5e9   : > { %v20734_v20 = vmul.f32 %v25020_v2, %v20720_v59 }
 0x5ea   : > { %v20732_v33 = vmul.f32 %v25022_v4, %v20719_v3 }
 0x5eb   : > { %v20736_v47 = vsel %vm298_vm0, %v20734_v20, 0.0 }
 0x5ec   : > { %v20735_v45 = vsel %vm298_vm0, %v20732_v33, 0.0 }
 0x5ed   : > { %v20737_v43 = vadd.f32 %v20736_v47, %v20735_v45 }
 0x5ef   : > { %20738 = vadd.xlane.f32.xlu1 %v20737_v43 }
 0x67c   : > { %v20739_v38 = vpop.xlane.xlu1 %20738 }
 0x67d   : > { %v20740_v14 = vrot.slane %v20739_v38, 4 }
 0x67f   : > { %v20741_v0 = vadd.f32 %v20740_v14, %v20739_v38 }
 0x681   : > { %v20742_v42 = vrot.slane %v20741_v0, 2 }
 0x683   : > { %v20743_v25 = vadd.f32 %v20742_v42, %v20741_v0 }
 0x685   : > { %v20744_v54 = vrot.slane %v20743_v25, 1 }
 0x687   : > { %v20745_v37 = vadd.f32 %v20744_v54, %v20743_v25 }
 0x689   : > { %24929 = vpush %v20745_v37 }
 0x6ba   : > { %s24930_s0 = spop %24929 }
 0x6bb   : > { %v20747_v10 = vstv %s24930_s0 }
 0x6bc   : > { %20912 = vst [vmem:[%s26644_s10 + $0x3] sm:$0x1] %v20747_v10 }
 0x6bd   : > { %25152 = shalt.err (!%p25149_p7)
}
 0x6be   : > { %s25153_s23 = scalar_lea.hbm %s26759_s29, 64  ;;  %s25157_s27 = scalar_lea.hbm %s26808_s4, 128 }
 0x6bf   : > { %p25154_p9 = scmp.ne.s32.totalorder %s26759_s29, %s25153_s23  ;;  %p25158_p11 = scmp.lt.u32.totalorder %s26759_s29, %s26808_s4 }
 0x6c0   : > { %p25159_p2 = scmp.lt.u32.totalorder %s25157_s27, %s25153_s23  ;;  %p25161_p1 = scmp.lt.u32.totalorder %s25153_s23, %s26759_s29 }
 0x6c1   : > { %p25155_p0 = pnand %p25154_p9, %p26832_p13 }
 0x6c2   : > { %p25160_p12 = por %p25159_p2, %p25158_p11 }
 0x6c3   : > { %p25156_p8 = pneg %p25155_p0 }
 0x6c4   : > { %p25162_p6 = por %p25161_p1, %p25160_p12 }
 0x6c6   : > { %p25163_p10 = pnand %p25162_p6, %p25156_p8 }
 0x6c8   : > { %25166 = shalt.err (!%p25163_p10)
}
 0x6c9   : > { %s25226_s8 = smov 16   ;;  %s25227_s24 = smov 1  }
 0x6ca   : > { %24943 = dma.vmem_to_hbm [thread:$0]  (%p26832_p13), %s26754_s12, 64, %s26759_s29, %s20751_s28, %s25226_s8, %s25226_s8, %s25227_s24  }
 0x6cb PF: > { %s20779_s30 = sand.u32 1, %s25205_s15   ;;  %p26833_p4 = scmp.ne.s32.totalorder %s26818_s22, 0 }
 0x6cc   : > { %p26834_p5 = scmp.ge.s32.totalorder %s25217_s18, 2  ;;  %s20780_s6 = scalar_lea.sflag [#allocation4], %s20779_s30 }
 0x6ce   : > { %p24960_p3 = pnand %p26834_p5, %p26833_p4 }
 0x6d0   : > { %25200 = dma.done.wait (!%p24960_p3), %s20780_s6, 64  }
 0x6d1   : > { %25202 = vsyncadd (!%p24960_p3), %s20780_s6, 4294967232  ;;  %p21_p7 = scmp.ge.s32.totalorder %s25369_s26, 4   ;;  %s26835_s15 = smov %s25209_s16 }
 0x6d2   : > { %s26836_s16 = smov %s25213_s17  ;;  %s26837_s17 = smov %s25385_s14 }
 0x6d3   : > { %s26838_s18 = smov %s25369_s26  ;;  %23 = sbr.rel (!%p21_p7) target bundleno = 10 (0xa), region = 111 }
 0x6da   :  { %20785 = vsyncpa [#allocation3], 1 }
 0x6db   :  { %20787 = vsyncpa [#allocation3 + $0x1], 1 }
 0x6dc   :  { %20788 = vsyncpa [#allocation6], 1 }
 0x6dd   :  { %20790 = vsyncpa [#allocation6 + $0x1], 1 }
 0x6de   :  { %20791 = vsyncpa [#allocation9], 1 }
 0x6df   :  { %20792 = vsyncpa [#allocation4], 1 }
 0x6e0   :  { %20794 = vsyncpa [#allocation4 + $0x1], 1 }

</bundles_post_ra>
